<compile_context>
chip_gen: v7x
topology: tpu7x:2x2x1
jax: 0.10.0
libtpu: 0.0.40
codegen_flags: <defaults>
</compile_context>

<pallas_src>
import functools

import jax
import jax.numpy as jnp
from jax.experimental import pallas as pl
from jax.experimental.pallas import tpu as pltpu


_COMPUTE_DTYPE = jnp.bfloat16       # MXU-input / intermediate-activation dtype
_VMEM_LIMIT = 32 * 1024 * 1024      # explicit scoped-VMEM budget (fits v5e/v6e/v7x)
_ROW_TILE_TARGET = 512              # rows per 1x1 tile (512-2048 ~ HBM roofline)


def _silu(x):
    return x * jax.nn.sigmoid(x)


def _round_up(x, m):
    return ((x + m - 1) // m) * m


def _row_tile(m):
    # At least 2 row tiles whenever M allows it (v7x has 2 TensorCores), capped
    # at _ROW_TILE_TARGET rows so double-buffered tiles stay well inside VMEM.
    half = _round_up(max((m + 1) // 2, 8), 8)
    return min(_ROW_TILE_TARGET, half)


def _compiler_params(semantics):
    return pltpu.CompilerParams(dimension_semantics=semantics,
                                vmem_limit_bytes=_VMEM_LIMIT)


# ----------------------------------------------------------------------------
# Kernel 1: C3 "head"  —  y1 = cv1(x), y2 = cv2(x), t = m[0].cv1(y1)
# (x read from HBM once; three chained 1x1-conv + BN + SiLU matmuls)
# ----------------------------------------------------------------------------
def _c3_head_kernel(x_ref, w1_ref, w2_ref, wm_ref,
                    s1_ref, b1_ref, s2_ref, b2_ref, sm_ref, bm_ref,
                    y1_ref, y2_ref, t_ref):
    x = x_ref[...]
    y1 = _silu(jnp.dot(x, w1_ref[...], preferred_element_type=jnp.float32)
               * s1_ref[...] + b1_ref[...])
    y2 = _silu(jnp.dot(x, w2_ref[...], preferred_element_type=jnp.float32)
               * s2_ref[...] + b2_ref[...])
    t = _silu(jnp.dot(y1.astype(x.dtype), wm_ref[...],
                      preferred_element_type=jnp.float32)
              * sm_ref[...] + bm_ref[...])
    y1_ref[...] = y1.astype(y1_ref.dtype)
    y2_ref[...] = y2.astype(y2_ref.dtype)
    t_ref[...] = t.astype(t_ref.dtype)


def c3_head(x2, w1, s1, b1, w2, s2, b2, wm, sm, bm):
    M, cin = x2.shape
    c_ = w1.shape[1]
    tm = _row_tile(M)
    grid = (pl.cdiv(M, tm),)

    def row_spec(c):
        return pl.BlockSpec((tm, c), lambda i: (i, 0))

    def const_spec(shape):
        return pl.BlockSpec(shape, lambda i: (0, 0))

    out_shape = tuple(jax.ShapeDtypeStruct((M, c_), _COMPUTE_DTYPE)
                      for _ in range(3))
    y1, y2, t = pl.pallas_call(
        _c3_head_kernel,
        out_shape=out_shape,
        grid=grid,
        in_specs=[row_spec(cin),
                  const_spec((cin, c_)), const_spec((cin, c_)),
                  const_spec((c_, c_)),
                  const_spec((1, c_)), const_spec((1, c_)),
                  const_spec((1, c_)), const_spec((1, c_)),
                  const_spec((1, c_)), const_spec((1, c_))],
        out_specs=tuple(row_spec(c_) for _ in range(3)),
        compiler_params=_compiler_params(("parallel",)),
    )(x2, w1, w2, wm, s1, b1, s2, b2, sm, bm)
    return y1, y2, t


# ----------------------------------------------------------------------------
# Kernel 2: standalone fused 1x1 conv + BN + SiLU (used for Bottleneck i > 0)
# ----------------------------------------------------------------------------
def _conv1x1_kernel(x_ref, w_ref, s_ref, b_ref, o_ref):
    y = jnp.dot(x_ref[...], w_ref[...], preferred_element_type=jnp.float32)
    o_ref[...] = _silu(y * s_ref[...] + b_ref[...]).astype(o_ref.dtype)


def conv1x1_bn_silu(x2, w, scale, bias, out_dtype=_COMPUTE_DTYPE):
    M, cin = x2.shape
    cout = w.shape[1]
    tm = _row_tile(M)
    grid = (pl.cdiv(M, tm),)
    return pl.pallas_call(
        _conv1x1_kernel,
        out_shape=jax.ShapeDtypeStruct((M, cout), out_dtype),
        grid=grid,
        in_specs=[pl.BlockSpec((tm, cin), lambda i: (i, 0)),
                  pl.BlockSpec((cin, cout), lambda i: (0, 0)),
                  pl.BlockSpec((1, cout), lambda i: (0, 0)),
                  pl.BlockSpec((1, cout), lambda i: (0, 0))],
        out_specs=pl.BlockSpec((tm, cout), lambda i: (i, 0)),
        compiler_params=_compiler_params(("parallel",)),
    )(x2, w, scale, bias)


# ----------------------------------------------------------------------------
# Kernel 3: C3 "tail"  —  out = cv3(concat(h, y2)) = h @ W3a + y2 @ W3b (+BN+SiLU)
# ----------------------------------------------------------------------------
def _c3_tail_kernel(h_ref, y2_ref, wa_ref, wb_ref, s_ref, b_ref, o_ref):
    acc = jnp.dot(h_ref[...], wa_ref[...], preferred_element_type=jnp.float32)
    acc = acc + jnp.dot(y2_ref[...], wb_ref[...],
                        preferred_element_type=jnp.float32)
    o_ref[...] = _silu(acc * s_ref[...] + b_ref[...]).astype(o_ref.dtype)


def c3_tail(h2, y22, wa, wb, scale, bias, out_dtype):
    M, c_ = h2.shape
    c2 = wa.shape[1]
    tm = _row_tile(M)
    grid = (pl.cdiv(M, tm),)
    return pl.pallas_call(
        _c3_tail_kernel,
        out_shape=jax.ShapeDtypeStruct((M, c2), out_dtype),
        grid=grid,
        in_specs=[pl.BlockSpec((tm, c_), lambda i: (i, 0)),
                  pl.BlockSpec((tm, c_), lambda i: (i, 0)),
                  pl.BlockSpec((c_, c2), lambda i: (0, 0)),
                  pl.BlockSpec((c_, c2), lambda i: (0, 0)),
                  pl.BlockSpec((1, c2), lambda i: (0, 0)),
                  pl.BlockSpec((1, c2), lambda i: (0, 0))],
        out_specs=pl.BlockSpec((tm, c2), lambda i: (i, 0)),
        compiler_params=_compiler_params(("parallel",)),
    )(h2, y22, wa, wb, scale, bias)


# ----------------------------------------------------------------------------
# Kernel 4: fused 3x3 "same" conv + BN + SiLU (+ fused residual variant)
# im2col -> single deep-K matmul (K = 9*Cin); flat (1, H*W, Cout) output block.
# ----------------------------------------------------------------------------
def _conv3x3_compute(x_ref, w_ref, s_ref, b_ref, H, W):
    cin = x_ref.shape[-1]
    xt = x_ref[0]                                     # (H+2, W+2, Cin)
    patches = jnp.concatenate(
        [xt[ky:ky + H, kx:kx + W, :].reshape(H * W, cin)
         for ky in range(3) for kx in range(3)], axis=1)   # (H*W, 9*Cin)
    y = jnp.dot(patches, w_ref[...], preferred_element_type=jnp.float32)
    return _silu(y * s_ref[...] + b_ref[...])


def _conv3x3_kernel(x_ref, w_ref, s_ref, b_ref, o_ref, *, H, W):
    y = _conv3x3_compute(x_ref, w_ref, s_ref, b_ref, H, W)
    o_ref[0] = y.astype(o_ref.dtype)


def _conv3x3_res_kernel(x_ref, w_ref, s_ref, b_ref, r_ref, o_ref, *, H, W):
    y = _conv3x3_compute(x_ref, w_ref, s_ref, b_ref, H, W)
    y = y + r_ref[0].astype(jnp.float32)              # residual (post-activation)
    o_ref[0] = y.astype(o_ref.dtype)


def conv3x3_bn_silu(t2, w9, scale, bias, n, h, w, residual=None,
                    out_dtype=_COMPUTE_DTYPE):
    # TODO(synk): grouped conv (g > 1) not implemented; C3 defaults use g=1.
    # TODO(synk): fold the zero-pad halo into the kernel (Element/manual-DMA
    # halos) and row-tile H for very large feature maps; here the whole padded
    # image per batch element is one VMEM block (fine for typical C3 maps).
    M, cin = t2.shape
    cout = w9.shape[1]
    x = t2.reshape(n, h, w, cin)
    xp = jnp.pad(x, ((0, 0), (1, 1), (1, 1), (0, 0)))
    args = [xp, w9, scale, bias]
    in_specs = [
        pl.BlockSpec((1, h + 2, w + 2, cin), lambda i: (i, 0, 0, 0)),
        pl.BlockSpec((9 * cin, cout), lambda i: (0, 0)),
        pl.BlockSpec((1, cout), lambda i: (0, 0)),
        pl.BlockSpec((1, cout), lambda i: (0, 0)),
    ]
    if residual is not None:
        kern = functools.partial(_conv3x3_res_kernel, H=h, W=w)
        args.append(residual.reshape(n, h * w, cout))
        in_specs.append(pl.BlockSpec((1, h * w, cout), lambda i: (i, 0, 0)))
    else:
        kern = functools.partial(_conv3x3_kernel, H=h, W=w)

    out = pl.pallas_call(
        kern,
        out_shape=jax.ShapeDtypeStruct((n, h * w, cout), out_dtype),
        grid=(n,),
        in_specs=in_specs,
        out_specs=pl.BlockSpec((1, h * w, cout), lambda i: (i, 0, 0)),
        compiler_params=_compiler_params(("parallel",)),
    )(*args)
    return out.reshape(M, cout)


# ----------------------------------------------------------------------------
# Parameter construction (deterministic, folds BN into scale/bias)
# ----------------------------------------------------------------------------
def make_conv_params(key, cin, cout, k):
    k1, k2, k3, k4, k5 = jax.random.split(key, 5)
    w = 0.1 * jax.random.normal(k1, (cout, cin, k, k), jnp.float32)
    gamma = 1.0 + 0.1 * jax.random.normal(k2, (cout,), jnp.float32)
    beta = 0.1 * jax.random.normal(k3, (cout,), jnp.float32)
    mean = 0.1 * jax.random.normal(k4, (cout,), jnp.float32)
    var = jax.nn.softplus(jax.random.normal(k5, (cout,), jnp.float32)) + 0.5
    eps = 1e-5
    scale = gamma / jnp.sqrt(var + eps)
    bias = beta - mean * scale
    return {"w": w, "scale": scale, "bias": bias}


def make_c3_params(key, c1, c2, n=1, e=0.5):
    c_ = int(c2 * e)
    keys = jax.random.split(key, 3 + 2 * n)
    params = {
        "cv1": make_conv_params(keys[0], c1, c_, 1),
        "cv2": make_conv_params(keys[1], c1, c_, 1),
        "cv3": make_conv_params(keys[2], 2 * c_, c2, 1),
        "m": [],
    }
    for i in range(n):
        # Bottleneck(c_, c_, e=1.0): cv1 is 1x1, cv2 is 3x3
        params["m"].append({
            "cv1": make_conv_params(keys[3 + 2 * i], c_, c_, 1),
            "cv2": make_conv_params(keys[4 + 2 * i], c_, c_, 3),
        })
    return params


# ----------------------------------------------------------------------------
# Weight prep (fold layouts once in the wrapper) + C3 forward
# ----------------------------------------------------------------------------
def _prep_1x1(p):
    w = p["w"]                                        # (Cout, Cin, 1, 1)
    cout, cin = w.shape[0], w.shape[1]
    w2 = jnp.transpose(w.reshape(cout, cin)).astype(_COMPUTE_DTYPE)
    return (w2,
            p["scale"].reshape(1, cout).astype(jnp.float32),
            p["bias"].reshape(1, cout).astype(jnp.float32))


def _prep_3x3(p):
    w = p["w"]                                        # (Cout, Cin, 3, 3)
    cout, cin = w.shape[0], w.shape[1]
    # (ky, kx, Cin, Cout) -> (9*Cin, Cout): matches in-kernel im2col order.
    w9 = jnp.transpose(w, (2, 3, 1, 0)).reshape(9 * cin, cout)
    return (w9.astype(_COMPUTE_DTYPE),
            p["scale"].reshape(1, cout).astype(jnp.float32),
            p["bias"].reshape(1, cout).astype(jnp.float32))


def c3_forward(x_nchw, params, shortcut=True):
    n, c1, h, w = x_nchw.shape
    x = jnp.transpose(x_nchw, (0, 2, 3, 1))           # NCHW -> NHWC
    x2 = x.reshape(n * h * w, c1).astype(_COMPUTE_DTYPE)

    w1, s1, b1 = _prep_1x1(params["cv1"])
    w2, s2, b2 = _prep_1x1(params["cv2"])
    c_ = w1.shape[1]

    m_params = params["m"]
    if m_params:
        wm, sm, bm = _prep_1x1(m_params[0]["cv1"])    # chained into the head
    else:
        # n == 0 bottlenecks: the head's chained third output is simply unused.
        wm = jnp.eye(c_, dtype=_COMPUTE_DTYPE)
        sm = jnp.ones((1, c_), jnp.float32)
        bm = jnp.zeros((1, c_), jnp.float32)

    y1, y2, t = c3_head(x2, w1, s1, b1, w2, s2, b2, wm, sm, bm)

    h_act = y1                                        # m(x) chain input
    for i, bp in enumerate(m_params):
        if i > 0:                                     # bottleneck i>0: own 1x1
            wmi, smi, bmi = _prep_1x1(bp["cv1"])
            t = conv1x1_bn_silu(h_act, wmi, smi, bmi)
        w9, s3, b3 = _prep_3x3(bp["cv2"])
        res = h_act if shortcut else None             # c1 == c2 == c_ always
        h_act = conv3x3_bn_silu(t, w9, s3, b3, n, h, w, residual=res)

    # cv3 over the channel concat, without materializing the concat.
    w3, s3c, b3c = _prep_1x1(params["cv3"])
    w3a, w3b = w3[:c_, :], w3[c_:, :]
    out2 = c3_tail(h_act, y2, w3a, w3b, s3c, b3c, out_dtype=x_nchw.dtype)

    c2 = w3.shape[1]
    out = out2.reshape(n, h, w, c2)
    return jnp.transpose(out, (0, 3, 1, 2))           # NHWC -> NCHW


if __name__ == "__main__":
    key = jax.random.PRNGKey(0)
    k_x, k_p = jax.random.split(key)

    # C3(c1=4, c2=8, n=1, shortcut=True, g=1, e=0.5); input NCHW = (2, 4, 16, 16)
    N, C1, H, W = 2, 4, 16, 16
    C2 = 8
    x = jax.random.normal(k_x, (N, C1, H, W), jnp.float32)
    params = make_c3_params(k_p, C1, C2, n=1, e=0.5)

    fwd = jax.jit(functools.partial(c3_forward, shortcut=True))
    out = fwd(x, params)
    jax.block_until_ready(out)

    assert out.shape == (N, C2, H, W), out.shape
    assert jnp.all(jnp.isfinite(out))
    print("KERNEL_OK")
</pallas_src>

<mosaic_0001>
module attributes {stable_mosaic.version = 11 : i64} {
  func.func @_c3_head_kernel(%arg0: i32, %arg1: memref<256x4xbf16, #tpu.memory_space<vmem>>, %arg2: memref<4x4xbf16, #tpu.memory_space<vmem>>, %arg3: memref<4x4xbf16, #tpu.memory_space<vmem>>, %arg4: memref<4x4xbf16, #tpu.memory_space<vmem>>, %arg5: memref<1x4xf32, #tpu.memory_space<vmem>>, %arg6: memref<1x4xf32, #tpu.memory_space<vmem>>, %arg7: memref<1x4xf32, #tpu.memory_space<vmem>>, %arg8: memref<1x4xf32, #tpu.memory_space<vmem>>, %arg9: memref<1x4xf32, #tpu.memory_space<vmem>>, %arg10: memref<1x4xf32, #tpu.memory_space<vmem>>, %arg11: memref<256x4xbf16, #tpu.memory_space<vmem>>, %arg12: memref<256x4xbf16, #tpu.memory_space<vmem>>, %arg13: memref<256x4xbf16, #tpu.memory_space<vmem>>) attributes {dimension_semantics = [#tpu.dimension_semantics<parallel>], iteration_bounds = array<i64: 2>, scalar_prefetch = 0 : i64, scratch_operands = 0 : i64, tpu.core_type = #tpu.core_type<tc>, window_params = [{transform_indices = @transform_0, window_bounds = array<i64: 256, 4>}, {pipeline_mode = #tpu.pipeline_mode<synchronous>, transform_indices = @transform_1, window_bounds = array<i64: 4, 4>}, {pipeline_mode = #tpu.pipeline_mode<synchronous>, transform_indices = @transform_2, window_bounds = array<i64: 4, 4>}, {pipeline_mode = #tpu.pipeline_mode<synchronous>, transform_indices = @transform_3, window_bounds = array<i64: 4, 4>}, {pipeline_mode = #tpu.pipeline_mode<synchronous>, transform_indices = @transform_4, window_bounds = array<i64: 1, 4>}, {pipeline_mode = #tpu.pipeline_mode<synchronous>, transform_indices = @transform_5, window_bounds = array<i64: 1, 4>}, {pipeline_mode = #tpu.pipeline_mode<synchronous>, transform_indices = @transform_6, window_bounds = array<i64: 1, 4>}, {pipeline_mode = #tpu.pipeline_mode<synchronous>, transform_indices = @transform_7, window_bounds = array<i64: 1, 4>}, {pipeline_mode = #tpu.pipeline_mode<synchronous>, transform_indices = @transform_8, window_bounds = array<i64: 1, 4>}, {pipeline_mode = #tpu.pipeline_mode<synchronous>, transform_indices = @transform_9, window_bounds = array<i64: 1, 4>}, {transform_indices = @transform_10, window_bounds = array<i64: 256, 4>}, {transform_indices = @transform_11, window_bounds = array<i64: 256, 4>}, {transform_indices = @transform_12, window_bounds = array<i64: 256, 4>}]} {
    %c0 = arith.constant 0 : index
    %c0_0 = arith.constant 0 : index
    %0 = vector.load %arg1[%c0, %c0_0] : memref<256x4xbf16, #tpu.memory_space<vmem>>, vector<256x4xbf16>
    %c0_1 = arith.constant 0 : index
    %c0_2 = arith.constant 0 : index
    %1 = vector.load %arg2[%c0_1, %c0_2] : memref<4x4xbf16, #tpu.memory_space<vmem>>, vector<4x4xbf16>
    %cst = arith.constant dense<0.000000e+00> : vector<256x4xf32>
    %2 = tpu.matmul %0, %1, %cst {dimension_numbers = #tpu.dot_dimension_numbers<[1], [0], [0], [1], [0, 0, 1, 1], [], []>} : vector<256x4xbf16>, vector<4x4xbf16>, vector<256x4xf32> -> vector<256x4xf32>
    %c0_3 = arith.constant 0 : index
    %c0_4 = arith.constant 0 : index
    %3 = vector.load %arg5[%c0_3, %c0_4] : memref<1x4xf32, #tpu.memory_space<vmem>>, vector<1x4xf32>
    %4 = vector.broadcast %3 : vector<1x4xf32> to vector<256x4xf32>
    %5 = arith.mulf %2, %4 : vector<256x4xf32>
    %c0_5 = arith.constant 0 : index
    %c0_6 = arith.constant 0 : index
    %6 = vector.load %arg6[%c0_5, %c0_6] : memref<1x4xf32, #tpu.memory_space<vmem>>, vector<1x4xf32>
    %7 = vector.broadcast %6 : vector<1x4xf32> to vector<256x4xf32>
    %8 = arith.addf %5, %7 : vector<256x4xf32>
    %9 = arith.negf %8 : vector<256x4xf32>
    %10 = math.exp %9 : vector<256x4xf32>
    %cst_7 = arith.constant 1.000000e+00 : f32
    %11 = vector.broadcast %cst_7 : f32 to vector<256x4xf32>
    %12 = arith.addf %11, %10 : vector<256x4xf32>
    %13 = arith.divf %11, %12 : vector<256x4xf32>
    %14 = arith.mulf %8, %13 : vector<256x4xf32>
    %c0_8 = arith.constant 0 : index
    %c0_9 = arith.constant 0 : index
    %15 = vector.load %arg3[%c0_8, %c0_9] : memref<4x4xbf16, #tpu.memory_space<vmem>>, vector<4x4xbf16>
    %cst_10 = arith.constant dense<0.000000e+00> : vector<256x4xf32>
    %16 = tpu.matmul %0, %15, %cst_10 {dimension_numbers = #tpu.dot_dimension_numbers<[1], [0], [0], [1], [0, 0, 1, 1], [], []>} : vector<256x4xbf16>, vector<4x4xbf16>, vector<256x4xf32> -> vector<256x4xf32>
    %c0_11 = arith.constant 0 : index
    %c0_12 = arith.constant 0 : index
    %17 = vector.load %arg7[%c0_11, %c0_12] : memref<1x4xf32, #tpu.memory_space<vmem>>, vector<1x4xf32>
    %18 = vector.broadcast %17 : vector<1x4xf32> to vector<256x4xf32>
    %19 = arith.mulf %16, %18 : vector<256x4xf32>
    %c0_13 = arith.constant 0 : index
    %c0_14 = arith.constant 0 : index
    %20 = vector.load %arg8[%c0_13, %c0_14] : memref<1x4xf32, #tpu.memory_space<vmem>>, vector<1x4xf32>
    %21 = vector.broadcast %20 : vector<1x4xf32> to vector<256x4xf32>
    %22 = arith.addf %19, %21 : vector<256x4xf32>
    %23 = arith.negf %22 : vector<256x4xf32>
    %24 = math.exp %23 : vector<256x4xf32>
    %cst_15 = arith.constant 1.000000e+00 : f32
    %25 = vector.broadcast %cst_15 : f32 to vector<256x4xf32>
    %26 = arith.addf %25, %24 : vector<256x4xf32>
    %27 = arith.divf %25, %26 : vector<256x4xf32>
    %28 = arith.mulf %22, %27 : vector<256x4xf32>
    %29 = arith.truncf %14 : vector<256x4xf32> to vector<256x4xbf16>
    %c0_16 = arith.constant 0 : index
    %c0_17 = arith.constant 0 : index
    %30 = vector.load %arg4[%c0_16, %c0_17] : memref<4x4xbf16, #tpu.memory_space<vmem>>, vector<4x4xbf16>
    %cst_18 = arith.constant dense<0.000000e+00> : vector<256x4xf32>
    %31 = tpu.matmul %29, %30, %cst_18 {dimension_numbers = #tpu.dot_dimension_numbers<[1], [0], [0], [1], [0, 0, 1, 1], [], []>} : vector<256x4xbf16>, vector<4x4xbf16>, vector<256x4xf32> -> vector<256x4xf32>
    %c0_19 = arith.constant 0 : index
    %c0_20 = arith.constant 0 : index
    %32 = vector.load %arg9[%c0_19, %c0_20] : memref<1x4xf32, #tpu.memory_space<vmem>>, vector<1x4xf32>
    %33 = vector.broadcast %32 : vector<1x4xf32> to vector<256x4xf32>
    %34 = arith.mulf %31, %33 : vector<256x4xf32>
    %c0_21 = arith.constant 0 : index
    %c0_22 = arith.constant 0 : index
    %35 = vector.load %arg10[%c0_21, %c0_22] : memref<1x4xf32, #tpu.memory_space<vmem>>, vector<1x4xf32>
    %36 = vector.broadcast %35 : vector<1x4xf32> to vector<256x4xf32>
    %37 = arith.addf %34, %36 : vector<256x4xf32>
    %38 = arith.negf %37 : vector<256x4xf32>
    %39 = math.exp %38 : vector<256x4xf32>
    %cst_23 = arith.constant 1.000000e+00 : f32
    %40 = vector.broadcast %cst_23 : f32 to vector<256x4xf32>
    %41 = arith.addf %40, %39 : vector<256x4xf32>
    %42 = arith.divf %40, %41 : vector<256x4xf32>
    %43 = arith.mulf %37, %42 : vector<256x4xf32>
    %44 = arith.truncf %14 : vector<256x4xf32> to vector<256x4xbf16>
    %c0_24 = arith.constant 0 : index
    %c0_25 = arith.constant 0 : index
    %45 = vector.load %arg11[%c0_24, %c0_25] : memref<256x4xbf16, #tpu.memory_space<vmem>>, vector<256x4xbf16>
    tpu.vector_store %arg11[%c0_24, %c0_25], %44 {strides = array<i32>} : memref<256x4xbf16, #tpu.memory_space<vmem>>, vector<256x4xbf16>,
    %46 = arith.truncf %28 : vector<256x4xf32> to vector<256x4xbf16>
    %c0_26 = arith.constant 0 : index
    %c0_27 = arith.constant 0 : index
    %47 = vector.load %arg12[%c0_26, %c0_27] : memref<256x4xbf16, #tpu.memory_space<vmem>>, vector<256x4xbf16>
    tpu.vector_store %arg12[%c0_26, %c0_27], %46 {strides = array<i32>} : memref<256x4xbf16, #tpu.memory_space<vmem>>, vector<256x4xbf16>,
    %48 = arith.truncf %43 : vector<256x4xf32> to vector<256x4xbf16>
    %c0_28 = arith.constant 0 : index
    %c0_29 = arith.constant 0 : index
    %49 = vector.load %arg13[%c0_28, %c0_29] : memref<256x4xbf16, #tpu.memory_space<vmem>>, vector<256x4xbf16>
    tpu.vector_store %arg13[%c0_28, %c0_29], %48 {strides = array<i32>} : memref<256x4xbf16, #tpu.memory_space<vmem>>, vector<256x4xbf16>,
    return
  }
  func.func @transform_0(%arg0: i32) -> (i32, i32) {
    %c0_i32 = arith.constant 0 : i32
    %c0_i32_0 = arith.constant 0 : i32
    return %arg0, %c0_i32 : i32, i32
  }
  func.func @transform_1(%arg0: i32) -> (i32, i32) {
    %c0_i32 = arith.constant 0 : i32
    %c0_i32_0 = arith.constant 0 : i32
    %c0_i32_1 = arith.constant 0 : i32
    return %c0_i32, %c0_i32_0 : i32, i32
  }
  func.func @transform_2(%arg0: i32) -> (i32, i32) {
    %c0_i32 = arith.constant 0 : i32
    %c0_i32_0 = arith.constant 0 : i32
    %c0_i32_1 = arith.constant 0 : i32
    return %c0_i32, %c0_i32_0 : i32, i32
  }
  func.func @transform_3(%arg0: i32) -> (i32, i32) {
    %c0_i32 = arith.constant 0 : i32
    %c0_i32_0 = arith.constant 0 : i32
    %c0_i32_1 = arith.constant 0 : i32
    return %c0_i32, %c0_i32_0 : i32, i32
  }
  func.func @transform_4(%arg0: i32) -> (i32, i32) {
    %c0_i32 = arith.constant 0 : i32
    %c0_i32_0 = arith.constant 0 : i32
    %c0_i32_1 = arith.constant 0 : i32
    return %c0_i32, %c0_i32_0 : i32, i32
  }
  func.func @transform_5(%arg0: i32) -> (i32, i32) {
    %c0_i32 = arith.constant 0 : i32
    %c0_i32_0 = arith.constant 0 : i32
    %c0_i32_1 = arith.constant 0 : i32
    return %c0_i32, %c0_i32_0 : i32, i32
  }
  func.func @transform_6(%arg0: i32) -> (i32, i32) {
    %c0_i32 = arith.constant 0 : i32
    %c0_i32_0 = arith.constant 0 : i32
    %c0_i32_1 = arith.constant 0 : i32
    return %c0_i32, %c0_i32_0 : i32, i32
  }
  func.func @transform_7(%arg0: i32) -> (i32, i32) {
    %c0_i32 = arith.constant 0 : i32
    %c0_i32_0 = arith.constant 0 : i32
    %c0_i32_1 = arith.constant 0 : i32
    return %c0_i32, %c0_i32_0 : i32, i32
  }
  func.func @transform_8(%arg0: i32) -> (i32, i32) {
    %c0_i32 = arith.constant 0 : i32
    %c0_i32_0 = arith.constant 0 : i32
    %c0_i32_1 = arith.constant 0 : i32
    return %c0_i32, %c0_i32_0 : i32, i32
  }
  func.func @transform_9(%arg0: i32) -> (i32, i32) {
    %c0_i32 = arith.constant 0 : i32
    %c0_i32_0 = arith.constant 0 : i32
    %c0_i32_1 = arith.constant 0 : i32
    return %c0_i32, %c0_i32_0 : i32, i32
  }
  func.func @transform_10(%arg0: i32) -> (i32, i32) {
    %c0_i32 = arith.constant 0 : i32
    %c0_i32_0 = arith.constant 0 : i32
    return %arg0, %c0_i32 : i32, i32
  }
  func.func @transform_11(%arg0: i32) -> (i32, i32) {
    %c0_i32 = arith.constant 0 : i32
    %c0_i32_0 = arith.constant 0 : i32
    return %arg0, %c0_i32 : i32, i32
  }
  func.func @transform_12(%arg0: i32) -> (i32, i32) {
    %c0_i32 = arith.constant 0 : i32
    %c0_i32_0 = arith.constant 0 : i32
    return %arg0, %c0_i32 : i32, i32
  }
}

module attributes {stable_mosaic.version = 11 : i64} {
  func.func @_conv3x3_res_kernel(%arg0: i32, %arg1: memref<1x18x18x4xbf16, #tpu.memory_space<vmem>>, %arg2: memref<36x4xbf16, #tpu.memory_space<vmem>>, %arg3: memref<1x4xf32, #tpu.memory_space<vmem>>, %arg4: memref<1x4xf32, #tpu.memory_space<vmem>>, %arg5: memref<1x256x4xbf16, #tpu.memory_space<vmem>>, %arg6: memref<1x256x4xbf16, #tpu.memory_space<vmem>>) attributes {dimension_semantics = [#tpu.dimension_semantics<parallel>], iteration_bounds = array<i64: 2>, scalar_prefetch = 0 : i64, scratch_operands = 0 : i64, tpu.core_type = #tpu.core_type<tc>, window_params = [{transform_indices = @transform_0, window_bounds = array<i64: 1, 18, 18, 4>}, {pipeline_mode = #tpu.pipeline_mode<synchronous>, transform_indices = @transform_1, window_bounds = array<i64: 36, 4>}, {pipeline_mode = #tpu.pipeline_mode<synchronous>, transform_indices = @transform_2, window_bounds = array<i64: 1, 4>}, {pipeline_mode = #tpu.pipeline_mode<synchronous>, transform_indices = @transform_3, window_bounds = array<i64: 1, 4>}, {transform_indices = @transform_4, window_bounds = array<i64: 1, 256, 4>}, {transform_indices = @transform_5, window_bounds = array<i64: 1, 256, 4>}]} {
    %c0 = arith.constant 0 : index
    %c0_0 = arith.constant 0 : index
    %c0_1 = arith.constant 0 : index
    %c0_2 = arith.constant 0 : index
    %0 = vector.load %arg1[%c0, %c0_0, %c0_1, %c0_2] : memref<1x18x18x4xbf16, #tpu.memory_space<vmem>>, vector<1x18x18x4xbf16>
    %1 = vector.shape_cast %0 : vector<1x18x18x4xbf16> to vector<18x18x4xbf16>
    %2 = vector.extract_strided_slice %1 {offsets = [0, 0, 0], sizes = [16, 16, 4], strides = [1, 1, 1]} : vector<18x18x4xbf16> to vector<16x16x4xbf16>
    %3 = vector.shape_cast %2 : vector<16x16x4xbf16> to vector<256x4xbf16>
    %4 = vector.extract_strided_slice %1 {offsets = [0, 1, 0], sizes = [16, 16, 4], strides = [1, 1, 1]} : vector<18x18x4xbf16> to vector<16x16x4xbf16>
    %5 = vector.shape_cast %4 : vector<16x16x4xbf16> to vector<256x4xbf16>
    %6 = vector.extract_strided_slice %1 {offsets = [0, 2, 0], sizes = [16, 16, 4], strides = [1, 1, 1]} : vector<18x18x4xbf16> to vector<16x16x4xbf16>
    %7 = vector.shape_cast %6 : vector<16x16x4xbf16> to vector<256x4xbf16>
    %8 = vector.extract_strided_slice %1 {offsets = [1, 0, 0], sizes = [16, 16, 4], strides = [1, 1, 1]} : vector<18x18x4xbf16> to vector<16x16x4xbf16>
    %9 = vector.shape_cast %8 : vector<16x16x4xbf16> to vector<256x4xbf16>
    %10 = vector.extract_strided_slice %1 {offsets = [1, 1, 0], sizes = [16, 16, 4], strides = [1, 1, 1]} : vector<18x18x4xbf16> to vector<16x16x4xbf16>
    %11 = vector.shape_cast %10 : vector<16x16x4xbf16> to vector<256x4xbf16>
    %12 = vector.extract_strided_slice %1 {offsets = [1, 2, 0], sizes = [16, 16, 4], strides = [1, 1, 1]} : vector<18x18x4xbf16> to vector<16x16x4xbf16>
    %13 = vector.shape_cast %12 : vector<16x16x4xbf16> to vector<256x4xbf16>
    %14 = vector.extract_strided_slice %1 {offsets = [2, 0, 0], sizes = [16, 16, 4], strides = [1, 1, 1]} : vector<18x18x4xbf16> to vector<16x16x4xbf16>
    %15 = vector.shape_cast %14 : vector<16x16x4xbf16> to vector<256x4xbf16>
    %16 = vector.extract_strided_slice %1 {offsets = [2, 1, 0], sizes = [16, 16, 4], strides = [1, 1, 1]} : vector<18x18x4xbf16> to vector<16x16x4xbf16>
    %17 = vector.shape_cast %16 : vector<16x16x4xbf16> to vector<256x4xbf16>
    %18 = vector.extract_strided_slice %1 {offsets = [2, 2, 0], sizes = [16, 16, 4], strides = [1, 1, 1]} : vector<18x18x4xbf16> to vector<16x16x4xbf16>
    %19 = vector.shape_cast %18 : vector<16x16x4xbf16> to vector<256x4xbf16>
    %20 = tpu.concatenate %3, %5, %7, %9, %11, %13, %15, %17, %19 in 1 : vector<256x4xbf16>, vector<256x4xbf16>, vector<256x4xbf16>, vector<256x4xbf16>, vector<256x4xbf16>, vector<256x4xbf16>, vector<256x4xbf16>, vector<256x4xbf16>, vector<256x4xbf16> -> vector<256x36xbf16>
    %c0_3 = arith.constant 0 : index
    %c0_4 = arith.constant 0 : index
    %21 = vector.load %arg2[%c0_3, %c0_4] : memref<36x4xbf16, #tpu.memory_space<vmem>>, vector<36x4xbf16>
    %cst = arith.constant dense<0.000000e+00> : vector<256x4xf32>
    %22 = tpu.matmul %20, %21, %cst {dimension_numbers = #tpu.dot_dimension_numbers<[1], [0], [0], [1], [0, 0, 1, 1], [], []>} : vector<256x36xbf16>, vector<36x4xbf16>, vector<256x4xf32> -> vector<256x4xf32>
    %c0_5 = arith.constant 0 : index
    %c0_6 = arith.constant 0 : index
    %23 = vector.load %arg3[%c0_5, %c0_6] : memref<1x4xf32, #tpu.memory_space<vmem>>, vector<1x4xf32>
    %24 = vector.broadcast %23 : vector<1x4xf32> to vector<256x4xf32>
    %25 = arith.mulf %22, %24 : vector<256x4xf32>
    %c0_7 = arith.constant 0 : index
    %c0_8 = arith.constant 0 : index
    %26 = vector.load %arg4[%c0_7, %c0_8] : memref<1x4xf32, #tpu.memory_space<vmem>>, vector<1x4xf32>
    %27 = vector.broadcast %26 : vector<1x4xf32> to vector<256x4xf32>
    %28 = arith.addf %25, %27 : vector<256x4xf32>
    %29 = arith.negf %28 : vector<256x4xf32>
    %30 = math.exp %29 : vector<256x4xf32>
    %cst_9 = arith.constant 1.000000e+00 : f32
    %31 = vector.broadcast %cst_9 : f32 to vector<256x4xf32>
    %32 = arith.addf %31, %30 : vector<256x4xf32>
    %33 = arith.divf %31, %32 : vector<256x4xf32>
    %34 = arith.mulf %28, %33 : vector<256x4xf32>
    %c0_10 = arith.constant 0 : index
    %c0_11 = arith.constant 0 : index
    %c0_12 = arith.constant 0 : index
    %35 = vector.load %arg5[%c0_10, %c0_11, %c0_12] : memref<1x256x4xbf16, #tpu.memory_space<vmem>>, vector<1x256x4xbf16>
    %36 = vector.shape_cast %35 : vector<1x256x4xbf16> to vector<256x4xbf16>
    %37 = arith.extf %36 : vector<256x4xbf16> to vector<256x4xf32>
    %38 = arith.addf %34, %37 : vector<256x4xf32>
    %39 = arith.truncf %38 : vector<256x4xf32> to vector<256x4xbf16>
    %c0_13 = arith.constant 0 : index
    %c0_14 = arith.constant 0 : index
    %c0_15 = arith.constant 0 : index
    %40 = vector.load %arg6[%c0_13, %c0_14, %c0_15] : memref<1x256x4xbf16, #tpu.memory_space<vmem>>, vector<1x256x4xbf16>
    %41 = vector.shape_cast %40 : vector<1x256x4xbf16> to vector<256x4xbf16>
    %42 = vector.shape_cast %39 : vector<256x4xbf16> to vector<1x256x4xbf16>
    tpu.vector_store %arg6[%c0_13, %c0_14, %c0_15], %42 {strides = array<i32>} : memref<1x256x4xbf16, #tpu.memory_space<vmem>>, vector<1x256x4xbf16>,
    return
  }
  func.func @transform_0(%arg0: i32) -> (i32, i32, i32, i32) {
    %c0_i32 = arith.constant 0 : i32
    %c0_i32_0 = arith.constant 0 : i32
    %c0_i32_1 = arith.constant 0 : i32
    %c0_i32_2 = arith.constant 0 : i32
    return %arg0, %c0_i32, %c0_i32_0, %c0_i32_1 : i32, i32, i32, i32
  }
  func.func @transform_1(%arg0: i32) -> (i32, i32) {
    %c0_i32 = arith.constant 0 : i32
    %c0_i32_0 = arith.constant 0 : i32
    %c0_i32_1 = arith.constant 0 : i32
    return %c0_i32, %c0_i32_0 : i32, i32
  }
  func.func @transform_2(%arg0: i32) -> (i32, i32) {
    %c0_i32 = arith.constant 0 : i32
    %c0_i32_0 = arith.constant 0 : i32
    %c0_i32_1 = arith.constant 0 : i32
    return %c0_i32, %c0_i32_0 : i32, i32
  }
  func.func @transform_3(%arg0: i32) -> (i32, i32) {
    %c0_i32 = arith.constant 0 : i32
    %c0_i32_0 = arith.constant 0 : i32
    %c0_i32_1 = arith.constant 0 : i32
    return %c0_i32, %c0_i32_0 : i32, i32
  }
  func.func @transform_4(%arg0: i32) -> (i32, i32, i32) {
    %c0_i32 = arith.constant 0 : i32
    %c0_i32_0 = arith.constant 0 : i32
    %c0_i32_1 = arith.constant 0 : i32
    return %arg0, %c0_i32, %c0_i32_0 : i32, i32, i32
  }
  func.func @transform_5(%arg0: i32) -> (i32, i32, i32) {
    %c0_i32 = arith.constant 0 : i32
    %c0_i32_0 = arith.constant 0 : i32
    %c0_i32_1 = arith.constant 0 : i32
    return %arg0, %c0_i32, %c0_i32_0 : i32, i32, i32
  }
}

module attributes {stable_mosaic.version = 11 : i64} {
  func.func @_c3_tail_kernel(%arg0: i32, %arg1: memref<256x4xbf16, #tpu.memory_space<vmem>>, %arg2: memref<256x4xbf16, #tpu.memory_space<vmem>>, %arg3: memref<4x8xbf16, #tpu.memory_space<vmem>>, %arg4: memref<4x8xbf16, #tpu.memory_space<vmem>>, %arg5: memref<1x8xf32, #tpu.memory_space<vmem>>, %arg6: memref<1x8xf32, #tpu.memory_space<vmem>>, %arg7: memref<256x8xf32, #tpu.memory_space<vmem>>) attributes {dimension_semantics = [#tpu.dimension_semantics<parallel>], iteration_bounds = array<i64: 2>, scalar_prefetch = 0 : i64, scratch_operands = 0 : i64, tpu.core_type = #tpu.core_type<tc>, window_params = [{transform_indices = @transform_0, window_bounds = array<i64: 256, 4>}, {transform_indices = @transform_1, window_bounds = array<i64: 256, 4>}, {pipeline_mode = #tpu.pipeline_mode<synchronous>, transform_indices = @transform_2, window_bounds = array<i64: 4, 8>}, {pipeline_mode = #tpu.pipeline_mode<synchronous>, transform_indices = @transform_3, window_bounds = array<i64: 4, 8>}, {pipeline_mode = #tpu.pipeline_mode<synchronous>, transform_indices = @transform_4, window_bounds = array<i64: 1, 8>}, {pipeline_mode = #tpu.pipeline_mode<synchronous>, transform_indices = @transform_5, window_bounds = array<i64: 1, 8>}, {transform_indices = @transform_6, window_bounds = array<i64: 256, 8>}]} {
    %c0 = arith.constant 0 : index
    %c0_0 = arith.constant 0 : index
    %0 = vector.load %arg1[%c0, %c0_0] : memref<256x4xbf16, #tpu.memory_space<vmem>>, vector<256x4xbf16>
    %c0_1 = arith.constant 0 : index
    %c0_2 = arith.constant 0 : index
    %1 = vector.load %arg3[%c0_1, %c0_2] : memref<4x8xbf16, #tpu.memory_space<vmem>>, vector<4x8xbf16>
    %cst = arith.constant dense<0.000000e+00> : vector<256x8xf32>
    %2 = tpu.matmul %0, %1, %cst {dimension_numbers = #tpu.dot_dimension_numbers<[1], [0], [0], [1], [0, 0, 1, 1], [], []>} : vector<256x4xbf16>, vector<4x8xbf16>, vector<256x8xf32> -> vector<256x8xf32>
    %c0_3 = arith.constant 0 : index
    %c0_4 = arith.constant 0 : index
    %3 = vector.load %arg2[%c0_3, %c0_4] : memref<256x4xbf16, #tpu.memory_space<vmem>>, vector<256x4xbf16>
    %c0_5 = arith.constant 0 : index
    %c0_6 = arith.constant 0 : index
    %4 = vector.load %arg4[%c0_5, %c0_6] : memref<4x8xbf16, #tpu.memory_space<vmem>>, vector<4x8xbf16>
    %cst_7 = arith.constant dense<0.000000e+00> : vector<256x8xf32>
    %5 = tpu.matmul %3, %4, %cst_7 {dimension_numbers = #tpu.dot_dimension_numbers<[1], [0], [0], [1], [0, 0, 1, 1], [], []>} : vector<256x4xbf16>, vector<4x8xbf16>, vector<256x8xf32> -> vector<256x8xf32>
    %6 = arith.addf %2, %5 : vector<256x8xf32>
    %c0_8 = arith.constant 0 : index
    %c0_9 = arith.constant 0 : index
    %7 = vector.load %arg5[%c0_8, %c0_9] : memref<1x8xf32, #tpu.memory_space<vmem>>, vector<1x8xf32>
    %8 = vector.broadcast %7 : vector<1x8xf32> to vector<256x8xf32>
    %9 = arith.mulf %6, %8 : vector<256x8xf32>
    %c0_10 = arith.constant 0 : index
    %c0_11 = arith.constant 0 : index
    %10 = vector.load %arg6[%c0_10, %c0_11] : memref<1x8xf32, #tpu.memory_space<vmem>>, vector<1x8xf32>
    %11 = vector.broadcast %10 : vector<1x8xf32> to vector<256x8xf32>
    %12 = arith.addf %9, %11 : vector<256x8xf32>
    %13 = arith.negf %12 : vector<256x8xf32>
    %14 = math.exp %13 : vector<256x8xf32>
    %cst_12 = arith.constant 1.000000e+00 : f32
    %15 = vector.broadcast %cst_12 : f32 to vector<256x8xf32>
    %16 = arith.addf %15, %14 : vector<256x8xf32>
    %17 = arith.divf %15, %16 : vector<256x8xf32>
    %18 = arith.mulf %12, %17 : vector<256x8xf32>
    %c0_13 = arith.constant 0 : index
    %c0_14 = arith.constant 0 : index
    %19 = vector.load %arg7[%c0_13, %c0_14] : memref<256x8xf32, #tpu.memory_space<vmem>>, vector<256x8xf32>
    tpu.vector_store %arg7[%c0_13, %c0_14], %18 {strides = array<i32>} : memref<256x8xf32, #tpu.memory_space<vmem>>, vector<256x8xf32>,
    return
  }
  func.func @transform_0(%arg0: i32) -> (i32, i32) {
    %c0_i32 = arith.constant 0 : i32
    %c0_i32_0 = arith.constant 0 : i32
    return %arg0, %c0_i32 : i32, i32
  }
  func.func @transform_1(%arg0: i32) -> (i32, i32) {
    %c0_i32 = arith.constant 0 : i32
    %c0_i32_0 = arith.constant 0 : i32
    return %arg0, %c0_i32 : i32, i32
  }
  func.func @transform_2(%arg0: i32) -> (i32, i32) {
    %c0_i32 = arith.constant 0 : i32
    %c0_i32_0 = arith.constant 0 : i32
    %c0_i32_1 = arith.constant 0 : i32
    return %c0_i32, %c0_i32_0 : i32, i32
  }
  func.func @transform_3(%arg0: i32) -> (i32, i32) {
    %c0_i32 = arith.constant 0 : i32
    %c0_i32_0 = arith.constant 0 : i32
    %c0_i32_1 = arith.constant 0 : i32
    return %c0_i32, %c0_i32_0 : i32, i32
  }
  func.func @transform_4(%arg0: i32) -> (i32, i32) {
    %c0_i32 = arith.constant 0 : i32
    %c0_i32_0 = arith.constant 0 : i32
    %c0_i32_1 = arith.constant 0 : i32
    return %c0_i32, %c0_i32_0 : i32, i32
  }
  func.func @transform_5(%arg0: i32) -> (i32, i32) {
    %c0_i32 = arith.constant 0 : i32
    %c0_i32_0 = arith.constant 0 : i32
    %c0_i32_1 = arith.constant 0 : i32
    return %c0_i32, %c0_i32_0 : i32, i32
  }
  func.func @transform_6(%arg0: i32) -> (i32, i32) {
    %c0_i32 = arith.constant 0 : i32
    %c0_i32_0 = arith.constant 0 : i32
    return %arg0, %c0_i32 : i32, i32
  }
}

</mosaic_0001>

<bundles_post_ra>
// kernel: c3_forward.5
= control target key start
LH: loop header
LB: loop body
LE: loop exit
PB: predicated region body
PF: predicated region fallthrough
CT: control target
= control target key end

     0   :  { %s1791_s21 = smov 0   ;;  %s2157_s0 = inlined_call_operand.vmem [shape: bf16[512,4], index: 0, kind: input, shape index: {}]   ;;  %s2158_s1 = inlined_call_operand.vmem [shape: bf16[512,4], index: 1, kind: input, shape index: {}]   ;;  %s2159_s2 = inlined_call_operand.vmem [shape: bf16[4,8], index: 2, kind: input, shape index: {}]   ;;  %s2160_s3 = inlined_call_operand.vmem [shape: bf16[4,8], index: 3, kind: input, shape index: {}]   ;;  %s2161_s4 = inlined_call_operand.vmem [shape: f32[1,8], index: 4, kind: input, shape index: {}]   ;;  %s2162_s5 = inlined_call_operand.vmem [shape: f32[1,8], index: 5, kind: input, shape index: {}]   ;;  %s2163_s6 = inlined_call_operand.vmem [shape: f32[512,8], index: 6, kind: output, shape index: {}]  }
   0x1 LB: > { %s1333_s22 = sadd.s32 4294967295, %s1754_s21   ;;  %p1337_p0 = scmp.ge.s32.totalorder %s1754_s21, 1  ;;  %s1754_s21 = sphi %s1791_s21, %s16_s21  }
   0x2   : > { %p224_p1 = scmp.lt.s32.totalorder %s1754_s21, 3 }
   0x4   : > { %p225_p2 = pnand %p1337_p0, %p224_p1 }
   0x5   : > { %v343_v0 = vld [vmem:[%s2160_s3] sm:$0x3] (!%p225_p2)  ;;  %vm473_vm0 = vcmask (!%p225_p2), 1041408   ;;  %s1338_s27 = sshll.u32 (!%p225_p2), %s1333_s22, 5  ;;  %vm424_vm1 = vcmask (!%p225_p2), 31744   ;;  %vm1232_vm2 = vcmask (!%p225_p2), 64512  }
   0x6   : > { %228 = sbr.rel (%p225_p2) target bundleno = 330 (0x14a), region = 44  ;;  %v310_v1 = vld [vmem:[%s2159_s2] sm:$0x3] (!%p225_p2)  ;;  %1578 = vmatprep.subr.msk.bf16.mxu1 (!%p225_p2), %vm473_vm0, %v343_v0  ;;  %v475_v2 = vsel (!%p225_p2), %vm473_vm0, %v343_v0, 0  ;;  %p260_p3 = scmp.lt.s32.totalorder (!%p225_p2), %s1338_s27, 63 }
   0x7   : > { %1579 = vmatprep.subr.msk.bf16.mxu0 (!%p225_p2), %vm473_vm0, %v310_v1  ;;  %v767_v3 = vsel (!%p225_p2), %vm473_vm0, %v310_v1, 0  ;;  %1479 = vmatpush3.bf16.msra.mxu1 (!%p225_p2), %v475_v2  ;;  %v1885_v38 = vld [vmem:[%s2161_s4] ss:$0 sm:$0xff] (!%p225_p2) }
   0x8   : > { %1513 = vmatpush3.bf16.msra.mxu0 (!%p225_p2), %v767_v3  ;;  %v1890_v43 = vld [vmem:[%s2162_s5] ss:$0 sm:$0xff] (!%p225_p2) }
   0xd   : > { %s2165_s27 = smov (!%p260_p3, %s1338_s27), 63 }
   0xe   : > { %s1339_s28 = sshll.u32 %s2165_s27, 2  ;;  %s1343_s15 = sshll.u32 %s2165_s27, 3 }
   0xf   : > { %s1811_s7 = scalar_lea.vmem %s2158_s1, %s1339_s28  ;;  %s1817_s10 = scalar_lea.vmem %s2157_s0, %s1339_s28 }
  0x10   : > { %v1588_v4 = vld [vmem:[%s1811_s7] sm:$0xff]   ;;  %v1590_v6 = vld [vmem:[%s1811_s7 + $0x8] sm:$0xff]   ;;  %v1592_v8 = vld [vmem:[%s1811_s7 + $0x10] sm:$0xff]   ;;  %s1970_s18 = scalar_lea.vmem %s2163_s6, %s1343_s15 }
  0x11   : > { %v1589_v5 = vld [vmem:[%s1817_s10] sm:$0xff]   ;;  %1480 = vmatprep.mubr.msk.bf16.mxu1 %vm424_vm1, %v1588_v4  ;;  %v1591_v7 = vld [vmem:[%s1817_s10 + $0x8] sm:$0xff]   ;;  %v1593_v9 = vld [vmem:[%s1817_s10 + $0x10] sm:$0xff]  }
  0x12   : > { %1514 = vmatprep.mubr.msk.bf16.mxu0 %vm424_vm1, %v1589_v5  ;;  %1481 = vmatmul.mubr.msk.bf16.vlgmr.msra.gmra.mrb[0].mxu1 %vm424_vm1, %v1590_v6  ;;  %v1594_v10 = vld [vmem:[%s1811_s7 + $0x18] sm:$0xff]   ;;  %v1596_v12 = vld [vmem:[%s1811_s7 + $0x20] sm:$0xff]   ;;  %v1598_v14 = vld [vmem:[%s1811_s7 + $0x28] sm:$0xff]  }
  0x13   : > { %1515 = vmatmul.mubr.msk.bf16.vlgmr.msra.gmra.mrb[0].mxu0 %vm424_vm1, %v1591_v7  ;;  %1484 = vmatprep.mubr.msk.bf16.mxu1 %vm424_vm1, %v1592_v8  ;;  %v1595_v11 = vld [vmem:[%s1817_s10 + $0x18] sm:$0xff]   ;;  %v1597_v13 = vld [vmem:[%s1817_s10 + $0x20] sm:$0xff]   ;;  %v1599_v15 = vld [vmem:[%s1817_s10 + $0x28] sm:$0xff]  }
  0x14   : > { %1518 = vmatprep.mubr.msk.bf16.mxu0 %vm424_vm1, %v1593_v9  ;;  %v1600_v16 = vld [vmem:[%s1811_s7 + $0x30] sm:$0xff]   ;;  %v1602_v18 = vld [vmem:[%s1811_s7 + $0x38] sm:$0xff]   ;;  %v1604_v20 = vld [vmem:[%s1811_s7 + $0x40] sm:$0xff]  }
  0x15   : > { %v1601_v17 = vld [vmem:[%s1817_s10 + $0x30] sm:$0xff]   ;;  %v1603_v19 = vld [vmem:[%s1817_s10 + $0x38] sm:$0xff]   ;;  %v1605_v21 = vld [vmem:[%s1817_s10 + $0x40] sm:$0xff]  }
  0x16   : > { %v1606_v22 = vld [vmem:[%s1811_s7 + $0x48] sm:$0xff]   ;;  %v1608_v24 = vld [vmem:[%s1811_s7 + $0x50] sm:$0xff]   ;;  %v1610_v26 = vld [vmem:[%s1811_s7 + $0x58] sm:$0xff]  }
  0x17   : > { %v1607_v23 = vld [vmem:[%s1817_s10 + $0x48] sm:$0xff]   ;;  %v1609_v25 = vld [vmem:[%s1817_s10 + $0x50] sm:$0xff]   ;;  %v1611_v27 = vld [vmem:[%s1817_s10 + $0x58] sm:$0xff]  }
  0x18   : > { %v1612_v28 = vld [vmem:[%s1811_s7 + $0x60] sm:$0xff]   ;;  %v1614_v30 = vld [vmem:[%s1811_s7 + $0x68] sm:$0xff]   ;;  %v1616_v32 = vld [vmem:[%s1811_s7 + $0x70] sm:$0xff]  }
  0x19   : > { %v1613_v29 = vld [vmem:[%s1817_s10 + $0x60] sm:$0xff]   ;;  %v1615_v31 = vld [vmem:[%s1817_s10 + $0x68] sm:$0xff]   ;;  %v1617_v33 = vld [vmem:[%s1817_s10 + $0x70] sm:$0xff]  }
  0x1a   : > { %1485 = vmatmul.mubr.msk.bf16.gmra.mrb[4].mxu1 %vm424_vm1, %v1594_v10  ;;  %v1618_v34 = vld [vmem:[%s1811_s7 + $0x78] sm:$0xff]  }
  0x1b   : > { %1519 = vmatmul.mubr.msk.bf16.gmra.mrb[4].mxu0 %vm424_vm1, %v1595_v11  ;;  %1488 = vmatprep.mubr.msk.bf16.mxu1 %vm424_vm1, %v1596_v12  ;;  %v1619_v35 = vld [vmem:[%s1817_s10 + $0x78] sm:$0xff]  }
  0x1c   : > { %1522 = vmatprep.mubr.msk.bf16.mxu0 %vm424_vm1, %v1597_v13 }
  0x22   : > { %1489 = vmatmul.mubr.msk.bf16.gmra.mrb[8].mxu1 %vm424_vm1, %v1598_v14 }
  0x23   : > { %1523 = vmatmul.mubr.msk.bf16.gmra.mrb[8].mxu0 %vm424_vm1, %v1599_v15  ;;  %1492 = vmatprep.mubr.msk.bf16.mxu1 %vm424_vm1, %v1600_v16 }
  0x24   : > { %1526 = vmatprep.mubr.msk.bf16.mxu0 %vm424_vm1, %v1601_v17 }
  0x2a   : > { %1493 = vmatmul.mubr.msk.bf16.gmra.mrb[12].mxu1 %vm424_vm1, %v1602_v18 }
  0x2b   : > { %1527 = vmatmul.mubr.msk.bf16.gmra.mrb[12].mxu0 %vm424_vm1, %v1603_v19  ;;  %1496 = vmatprep.mubr.msk.bf16.mxu1 %vm424_vm1, %v1604_v20 }
  0x2c   : > { %1530 = vmatprep.mubr.msk.bf16.mxu0 %vm424_vm1, %v1605_v21 }
  0x32   : > { %1497 = vmatmul.mubr.msk.bf16.gmra.mrb[16].mxu1 %vm424_vm1, %v1606_v22 }
  0x33   : > { %1531 = vmatmul.mubr.msk.bf16.gmra.mrb[16].mxu0 %vm424_vm1, %v1607_v23  ;;  %1500 = vmatprep.mubr.msk.bf16.mxu1 %vm424_vm1, %v1608_v24 }
  0x34   : > { %1534 = vmatprep.mubr.msk.bf16.mxu0 %vm424_vm1, %v1609_v25 }
  0x3a   : > { %1501 = vmatmul.mubr.msk.bf16.gmra.mrb[20].mxu1 %vm424_vm1, %v1610_v26 }
  0x3b   : > { %1535 = vmatmul.mubr.msk.bf16.gmra.mrb[20].mxu0 %vm424_vm1, %v1611_v27  ;;  %1504 = vmatprep.mubr.msk.bf16.mxu1 %vm424_vm1, %v1612_v28 }
  0x3c   : > { %1538 = vmatprep.mubr.msk.bf16.mxu0 %vm424_vm1, %v1613_v29 }
  0x42   : > { %1505 = vmatmul.mubr.msk.bf16.gmra.mrb[24].mxu1 %vm424_vm1, %v1614_v30 }
  0x43   : > { %1539 = vmatmul.mubr.msk.bf16.gmra.mrb[24].mxu0 %vm424_vm1, %v1615_v31  ;;  %1508 = vmatprep.mubr.msk.bf16.mxu1 %vm424_vm1, %v1616_v32 }
  0x44   : > { %1542 = vmatprep.mubr.msk.bf16.mxu0 %vm424_vm1, %v1617_v33 }
  0x4a   : > { %1509 = vmatmul.mubr.msk.bf16.gmra.mrb[28].mxu1 %vm424_vm1, %v1618_v34 }
  0x4b   : > { %1543 = vmatmul.mubr.msk.bf16.gmra.mrb[28].mxu0 %vm424_vm1, %v1619_v35 }
  0xe5   : > { %v1482_v36 = vpop.f32.mrb[0].mxu1 }
  0xe6   : > { %v1516_v37 = vpop.f32.mrb[0].mxu0  ;;  %v511_v39 = vpop.f32.mrb[1].mxu1 }
  0xe7   : > { %v812_v40 = vadd.f32 %v1516_v37, %v1482_v36  ;;  %v803_v41 = vpop.f32.mrb[1].mxu0  ;;  %v1483_v42 = vpop.f32.mrb[2].mxu1 }
  0xe8   : > { %v804_v44 = vadd.f32 %v803_v41, %v511_v39  ;;  %v1517_v45 = vpop.f32.mrb[2].mxu0  ;;  %v514_v46 = vpop.f32.mrb[3].mxu1 }
  0xe9   : > { %v939_v47 = vmul.f32 %v1885_v38, %v812_v40  ;;  %v815_v48 = vadd.f32 %v1517_v45, %v1483_v42  ;;  %v806_v49 = vpop.f32.mrb[3].mxu0 }
  0xea   : > { %v937_v50 = vmul.f32 %v1885_v38, %v804_v44  ;;  %v807_v51 = vadd.f32 %v806_v49, %v514_v46 }
  0xeb   : > { %v1895_v52 = vadd.f32 %v1890_v43, %v939_v47  ;;  %v940_v53 = vmul.f32 %v1885_v38, %v815_v48 }
  0xec   : > { %v1899_v54 = vadd.f32 %v1890_v43, %v937_v50  ;;  %v938_v55 = vmul.f32 %v1885_v38, %v807_v51 }
  0xed   : > { %v1412_v56 = vmul.f32 -1.442695, %v1895_v52  ;;  %v1904_v57 = vadd.f32 %v1890_v43, %v940_v53  ;;  %v1486_v58 = vpop.f32.mrb[4].mxu1 }
  0xee   : > { %v1410_v59 = vmul.f32 -1.442695, %v1899_v54  ;;  %v1908_v60 = vadd.f32 %v1890_v43, %v938_v55  ;;  %v1520_v61 = vpop.f32.mrb[4].mxu0  ;;  %v527_v62 = vpop.f32.mrb[5].mxu1 }
  0xef   : > { %1620 = vpow2.f32 %v1412_v56  ;;  %v1413_v63 = vmul.f32 -1.442695, %v1904_v57  ;;  %v828_v0 = vadd.f32 %v1520_v61, %v1486_v58  ;;  %v819_v1 = vpop.f32.mrb[5].mxu0  ;;  %v1487_v2 = vpop.f32.mrb[6].mxu1 }
  0xf0   : > { %1622 = vpow2.f32 %v1410_v59  ;;  %v1411_v3 = vmul.f32 -1.442695, %v1908_v60  ;;  %v820_v4 = vadd.f32 %v819_v1, %v527_v62  ;;  %v1521_v5 = vpop.f32.mrb[6].mxu0  ;;  %v530_v6 = vpop.f32.mrb[7].mxu1 }
  0xf1   : > { %1624 = vpow2.f32 %v1413_v63  ;;  %v943_v7 = vmul.f32 %v1885_v38, %v828_v0  ;;  %v831_v8 = vadd.f32 %v1521_v5, %v1487_v2  ;;  %v822_v9 = vpop.f32.mrb[7].mxu0 }
  0xf2   : > { %1626 = vpow2.f32 %v1411_v3  ;;  %v941_v10 = vmul.f32 %v1885_v38, %v820_v4  ;;  %v823_v11 = vadd.f32 %v822_v9, %v530_v6 }
  0xf3   : > { %v1915_v12 = vadd.f32 %v1890_v43, %v943_v7  ;;  %v944_v13 = vmul.f32 %v1885_v38, %v831_v8 }
  0xf4   : > { %v1919_v14 = vadd.f32 %v1890_v43, %v941_v10  ;;  %v942_v15 = vmul.f32 %v1885_v38, %v823_v11 }
  0xf5   : > { %v1416_v16 = vmul.f32 -1.442695, %v1915_v12  ;;  %v1924_v17 = vadd.f32 %v1890_v43, %v944_v13  ;;  %v1490_v18 = vpop.f32.mrb[8].mxu1 }
  0xf6   : > { %v1414_v19 = vmul.f32 -1.442695, %v1919_v14  ;;  %v1928_v20 = vadd.f32 %v1890_v43, %v942_v15  ;;  %v1524_v21 = vpop.f32.mrb[8].mxu0  ;;  %v543_v22 = vpop.f32.mrb[9].mxu1 }
  0xf7   : > { %1628 = vpow2.f32 %v1416_v16  ;;  %v1417_v23 = vmul.f32 -1.442695, %v1924_v17  ;;  %v844_v24 = vadd.f32 %v1524_v21, %v1490_v18  ;;  %v835_v25 = vpop.f32.mrb[9].mxu0  ;;  %v1491_v26 = vpop.f32.mrb[10].mxu1 }
  0xf8   : > { %1630 = vpow2.f32 %v1414_v19  ;;  %v1415_v27 = vmul.f32 -1.442695, %v1928_v20  ;;  %v836_v28 = vadd.f32 %v835_v25, %v543_v22  ;;  %v1525_v29 = vpop.f32.mrb[10].mxu0  ;;  %v546_v30 = vpop.f32.mrb[11].mxu1 }
  0xf9   : > { %v1621_v31 = vpop.eup %1620  ;;  %1632 = vpow2.f32 %v1417_v23  ;;  %v947_v32 = vmul.f32 %v1885_v38, %v844_v24  ;;  %v847_v33 = vadd.f32 %v1525_v29, %v1491_v26  ;;  %v838_v34 = vpop.f32.mrb[11].mxu0 }
  0xfa   : > { %v1623_v35 = vpop.eup %1622  ;;  %v1106_v36 = vadd.f32 1.0, %v1621_v31  ;;  %1634 = vpow2.f32 %v1415_v27  ;;  %v945_v37 = vmul.f32 %v1885_v38, %v836_v28  ;;  %v839_v39 = vadd.f32 %v838_v34, %v546_v30 }
  0xfb   : > { %v1625_v40 = vpop.eup %1624  ;;  %v1104_v41 = vadd.f32 1.0, %v1623_v35  ;;  %v1935_v42 = vadd.f32 %v1890_v43, %v947_v32  ;;  %v948_v44 = vmul.f32 %v1885_v38, %v847_v33 }
  0xfc   : > { %v1627_v45 = vpop.eup %1626  ;;  %1636 = vrcp.f32 %v1106_v36  ;;  %v1107_v46 = vadd.f32 1.0, %v1625_v40  ;;  %v1939_v47 = vadd.f32 %v1890_v43, %v945_v37  ;;  %v946_v48 = vmul.f32 %v1885_v38, %v839_v39 }
  0xfd   : > { %1638 = vrcp.f32 %v1104_v41  ;;  %v1105_v49 = vadd.f32 1.0, %v1627_v45  ;;  %v1420_v50 = vmul.f32 -1.442695, %v1935_v42  ;;  %v1944_v51 = vadd.f32 %v1890_v43, %v948_v44  ;;  %v1494_v53 = vpop.f32.mrb[12].mxu1 }
  0xfe   : > { %1640 = vrcp.f32 %v1107_v46  ;;  %v1418_v55 = vmul.f32 -1.442695, %v1939_v47  ;;  %v1948_v56 = vadd.f32 %v1890_v43, %v946_v48  ;;  %v1528_v58 = vpop.f32.mrb[12].mxu0  ;;  %v559_v59 = vpop.f32.mrb[13].mxu1 }
  0xff   : > { %1642 = vrcp.f32 %v1105_v49  ;;  %v1421_v61 = vmul.f32 -1.442695, %v1944_v51  ;;  %v860_v62 = vadd.f32 %v1528_v58, %v1494_v53  ;;  %v851_v63 = vpop.f32.mrb[13].mxu0  ;;  %v1495_v0 = vpop.f32.mrb[14].mxu1 }
 0x100   : > { %1644 = vpow2.f32 %v1420_v50  ;;  %v1419_v1 = vmul.f32 -1.442695, %v1948_v56  ;;  %v852_v2 = vadd.f32 %v851_v63, %v559_v59  ;;  %v1529_v3 = vpop.f32.mrb[14].mxu0  ;;  %v562_v4 = vpop.f32.mrb[15].mxu1 }
 0x101   : > { %v1629_v5 = vpop.eup %1628  ;;  %1646 = vpow2.f32 %v1418_v55  ;;  %v951_v6 = vmul.f32 %v1885_v38, %v860_v62  ;;  %v863_v7 = vadd.f32 %v1529_v3, %v1495_v0  ;;  %v854_v8 = vpop.f32.mrb[15].mxu0 }
 0x102   : > { %v1631_v9 = vpop.eup %1630  ;;  %v1110_v10 = vadd.f32 1.0, %v1629_v5  ;;  %1648 = vpow2.f32 %v1421_v61  ;;  %v949_v11 = vmul.f32 %v1885_v38, %v852_v2  ;;  %v855_v13 = vadd.f32 %v854_v8, %v562_v4 }
 0x103   : > { %v1633_v15 = vpop.eup %1632  ;;  %v1108_v16 = vadd.f32 1.0, %v1631_v9  ;;  %1650 = vpow2.f32 %v1419_v1  ;;  %v1956_v18 = vadd.f32 %v1890_v43, %v951_v6  ;;  %v952_v19 = vmul.f32 %v1885_v38, %v863_v7 }
 0x104   : > { %v1635_v21 = vpop.eup %1634  ;;  %1652 = vrcp.f32 %v1110_v10  ;;  %v1111_v22 = vadd.f32 1.0, %v1633_v15  ;;  %v1960_v23 = vadd.f32 %v1890_v43, %v949_v11  ;;  %v950_v24 = vmul.f32 %v1885_v38, %v855_v13 }
 0x105   : > { %1654 = vrcp.f32 %v1108_v16  ;;  %v1109_v25 = vadd.f32 1.0, %v1635_v21  ;;  %v1424_v26 = vmul.f32 -1.442695, %v1956_v18  ;;  %v1965_v27 = vadd.f32 %v1890_v43, %v952_v19  ;;  %v1498_v28 = vpop.f32.mrb[16].mxu1 }
 0x106   : > { %v1637_v29 = vpop.eup %1636  ;;  %1656 = vrcp.f32 %v1111_v22  ;;  %v1422_v30 = vmul.f32 -1.442695, %v1960_v23  ;;  %v1974_v31 = vadd.f32 %v1890_v43, %v950_v24  ;;  %v1532_v32 = vpop.f32.mrb[16].mxu0 }
 0x107   : > { %v575_v33 = vpop.f32.mrb[17].mxu1  ;;  %v1639_v34 = vpop.eup %1638  ;;  %v1202_v35 = vmul.f32 %v1637_v29, %v1895_v52  ;;  %1658 = vrcp.f32 %v1109_v25  ;;  %v1425_v36 = vmul.f32 -1.442695, %v1965_v27  ;;  %v876_v37 = vadd.f32 %v1532_v32, %v1498_v28 }
 0x108   : > { %v867_v39 = vpop.f32.mrb[17].mxu0  ;;  %v1499_v40 = vpop.f32.mrb[18].mxu1  ;;  %v1200_v44 = vmul.f32 %v1639_v34, %v1899_v54  ;;  %1660 = vpow2.f32 %v1424_v26  ;;  %v1423_v45 = vmul.f32 -1.442695, %v1974_v31 }
 0x109   : > { %v1641_v41 = vpop.eup %1640  ;;  %v868_v46 = vadd.f32 %v867_v39, %v575_v33  ;;  %v1533_v48 = vpop.f32.mrb[18].mxu0  ;;  %1235 = vst.msk [vmem:[%s1970_s18 + $0x10] sm:$0xff] %vm1232_vm2, %v1202_v35  ;;  %1662 = vpow2.f32 %v1422_v30  ;;  %v955_v53 = vmul.f32 %v1885_v38, %v876_v37 }
 0x10a   : > { %v578_v49 = vpop.f32.mrb[19].mxu1  ;;  %v1643_v50 = vpop.eup %1642  ;;  %v1203_v52 = vmul.f32 %v1641_v41, %v1904_v57  ;;  %v879_v55 = vadd.f32 %v1533_v48, %v1499_v40  ;;  %1233 = vst.msk [vmem:[%s1970_s18] sm:$0xff] %vm1232_vm2, %v1200_v44  ;;  %1664 = vpow2.f32 %v1425_v36 }
 0x10b   : > { %v870_v58 = vpop.f32.mrb[19].mxu0  ;;  %v1645_v59 = vpop.eup %1644  ;;  %v1201_v54 = vmul.f32 %v1643_v50, %v1908_v60  ;;  %v953_v61 = vmul.f32 %v1885_v38, %v868_v46  ;;  %1666 = vpow2.f32 %v1423_v45  ;;  %v1991_v57 = vadd.f32 %v1890_v43, %v955_v53 }
 0x10c   : > { %v871_v62 = vadd.f32 %v870_v58, %v578_v49  ;;  %v1647_v63 = vpop.eup %1646  ;;  %1236 = vst.msk [vmem:[%s1970_s18 + $0x18] sm:$0xff] %vm1232_vm2, %v1203_v52  ;;  %v1114_v0 = vadd.f32 1.0, %v1645_v59  ;;  %v956_v1 = vmul.f32 %v1885_v38, %v879_v55 }
 0x10d   : > { %v1649_v2 = vpop.eup %1648  ;;  %1234 = vst.msk [vmem:[%s1970_s18 + $0x8] sm:$0xff] %vm1232_vm2, %v1201_v54  ;;  %v1112_v3 = vadd.f32 1.0, %v1647_v63  ;;  %v1997_v60 = vadd.f32 %v1890_v43, %v953_v61  ;;  %v1428_v7 = vmul.f32 -1.442695, %v1991_v57  ;;  %v1502_v9 = vpop.f32.mrb[20].mxu1 }
 0x10e   : > { %v954_v4 = vmul.f32 %v1885_v38, %v871_v62  ;;  %v1651_v5 = vpop.eup %1650  ;;  %1668 = vrcp.f32 %v1114_v0  ;;  %v1115_v6 = vadd.f32 1.0, %v1649_v2  ;;  %v2002_v8 = vadd.f32 %v1890_v43, %v956_v1  ;;  %v1536_v16 = vpop.f32.mrb[20].mxu0 }
 0x10f   : > { %v1653_v10 = vpop.eup %1652  ;;  %1670 = vrcp.f32 %v1112_v3  ;;  %v1113_v11 = vadd.f32 1.0, %v1651_v5  ;;  %v1426_v13 = vmul.f32 -1.442695, %v1997_v60  ;;  %v591_v19 = vpop.f32.mrb[21].mxu1  ;;  %v892_v25 = vadd.f32 %v1536_v16, %v1502_v9 }
 0x110   : > { %v2006_v15 = vadd.f32 %v1890_v43, %v954_v4  ;;  %v1655_v21 = vpop.eup %1654  ;;  %v1206_v22 = vmul.f32 %v1653_v10, %v1915_v12  ;;  %1672 = vrcp.f32 %v1115_v6  ;;  %v1429_v24 = vmul.f32 -1.442695, %v2002_v8  ;;  %v883_v26 = vpop.f32.mrb[21].mxu0 }
 0x111   : > { %v1503_v28 = vpop.f32.mrb[22].mxu1  ;;  %v1657_v29 = vpop.eup %1656  ;;  %v1204_v30 = vmul.f32 %v1655_v21, %v1919_v14  ;;  %1674 = vrcp.f32 %v1113_v11  ;;  %v884_v33 = vadd.f32 %v883_v26, %v591_v19  ;;  %v959_v37 = vmul.f32 %v1885_v38, %v892_v25 }
 0x112   : > { %v1427_v32 = vmul.f32 -1.442695, %v2006_v15  ;;  %v1537_v34 = vpop.f32.mrb[22].mxu0  ;;  %v594_v35 = vpop.f32.mrb[23].mxu1  ;;  %1239 = vst.msk [vmem:[%s1970_s18 + $0x30] sm:$0xff] %vm1232_vm2, %v1206_v22  ;;  %v1207_v12 = vmul.f32 %v1657_v29, %v1924_v17  ;;  %1676 = vpow2.f32 %v1428_v7 }
 0x113   : > { %v1659_v36 = vpop.eup %1658  ;;  %v895_v39 = vadd.f32 %v1537_v34, %v1503_v28  ;;  %v886_v40 = vpop.f32.mrb[23].mxu0  ;;  %1237 = vst.msk [vmem:[%s1970_s18 + $0x20] sm:$0xff] %vm1232_vm2, %v1204_v30  ;;  %1678 = vpow2.f32 %v1426_v13  ;;  %v957_v44 = vmul.f32 %v1885_v38, %v884_v33  ;;  %v2023_v17 = vadd.f32 %v1890_v43, %v959_v37 }
 0x114   : > { %v1661_v41 = vpop.eup %1660  ;;  %v1205_v14 = vmul.f32 %v1659_v36, %v1928_v20  ;;  %v887_v45 = vadd.f32 %v886_v40, %v594_v35  ;;  %1240 = vst.msk [vmem:[%s1970_s18 + $0x38] sm:$0xff] %vm1232_vm2, %v1207_v12  ;;  %1680 = vpow2.f32 %v1429_v24 }
 0x115   : > { %v1663_v46 = vpop.eup %1662  ;;  %v1118_v48 = vadd.f32 1.0, %v1661_v41  ;;  %v960_v49 = vmul.f32 %v1885_v38, %v895_v39  ;;  %1682 = vpow2.f32 %v1427_v32  ;;  %v2029_v20 = vadd.f32 %v1890_v43, %v957_v44  ;;  %v1506_v61 = vpop.f32.mrb[24].mxu1 }
 0x116   : > { %v1665_v50 = vpop.eup %1664  ;;  %1238 = vst.msk [vmem:[%s1970_s18 + $0x28] sm:$0xff] %vm1232_vm2, %v1205_v14  ;;  %v1116_v52 = vadd.f32 1.0, %v1663_v46  ;;  %v958_v53 = vmul.f32 %v1885_v38, %v887_v45  ;;  %v1432_v59 = vmul.f32 -1.442695, %v2023_v17  ;;  %v1540_v1 = vpop.f32.mrb[24].mxu0 }
 0x117   : > { %v1667_v55 = vpop.eup %1666  ;;  %1684 = vrcp.f32 %v1118_v48  ;;  %v1119_v58 = vadd.f32 1.0, %v1665_v50  ;;  %v2034_v54 = vadd.f32 %v1890_v43, %v960_v49  ;;  %v1430_v63 = vmul.f32 -1.442695, %v2029_v20  ;;  %v607_v2 = vpop.f32.mrb[25].mxu1 }
 0x118   : > { %1686 = vrcp.f32 %v1116_v52  ;;  %v1117_v62 = vadd.f32 1.0, %v1667_v55  ;;  %v2038_v0 = vadd.f32 %v1890_v43, %v958_v53  ;;  %v1669_v3 = vpop.eup %1668  ;;  %v908_v5 = vadd.f32 %v1540_v1, %v1506_v61  ;;  %v899_v6 = vpop.f32.mrb[25].mxu0 }
 0x119   : > { %1688 = vrcp.f32 %v1119_v58  ;;  %v1433_v4 = vmul.f32 -1.442695, %v2034_v54  ;;  %v1507_v7 = vpop.f32.mrb[26].mxu1  ;;  %v1671_v9 = vpop.eup %1670  ;;  %v1210_v10 = vmul.f32 %v1669_v3, %v1935_v42  ;;  %v900_v13 = vadd.f32 %v899_v6, %v607_v2 }
 0x11a   : > { %1690 = vrcp.f32 %v1117_v62  ;;  %v1431_v11 = vmul.f32 -1.442695, %v2038_v0  ;;  %v1541_v16 = vpop.f32.mrb[26].mxu0  ;;  %v610_v19 = vpop.f32.mrb[27].mxu1  ;;  %v1208_v22 = vmul.f32 %v1671_v9, %v1939_v47  ;;  %v963_v24 = vmul.f32 %v1885_v38, %v908_v5 }
 0x11b   : > { %v1673_v21 = vpop.eup %1672  ;;  %1692 = vpow2.f32 %v1432_v59  ;;  %v911_v25 = vadd.f32 %v1541_v16, %v1507_v7  ;;  %v902_v26 = vpop.f32.mrb[27].mxu0  ;;  %1243 = vst.msk [vmem:[%s1970_s18 + $0x50] sm:$0xff] %vm1232_vm2, %v1210_v10  ;;  %v961_v29 = vmul.f32 %v1885_v38, %v900_v13 }
 0x11c   : > { %v1675_v28 = vpop.eup %1674  ;;  %v1211_v42 = vmul.f32 %v1673_v21, %v1944_v51  ;;  %1694 = vpow2.f32 %v1430_v63  ;;  %v903_v30 = vadd.f32 %v902_v26, %v610_v19  ;;  %1241 = vst.msk [vmem:[%s1970_s18 + $0x40] sm:$0xff] %vm1232_vm2, %v1208_v22  ;;  %v2053_v33 = vadd.f32 %v1890_v43, %v963_v24 }
 0x11d   : > { %v1677_v32 = vpop.eup %1676  ;;  %v1209_v47 = vmul.f32 %v1675_v28, %v1948_v56  ;;  %1696 = vpow2.f32 %v1433_v4  ;;  %v964_v34 = vmul.f32 %v1885_v38, %v911_v25  ;;  %v2059_v36 = vadd.f32 %v1890_v43, %v961_v29  ;;  %v1510_v41 = vpop.f32.mrb[28].mxu1 }
 0x11e   : > { %v1679_v35 = vpop.eup %1678  ;;  %1244 = vst.msk [vmem:[%s1970_s18 + $0x58] sm:$0xff] %vm1232_vm2, %v1211_v42  ;;  %v1122_v51 = vadd.f32 1.0, %v1677_v32  ;;  %1698 = vpow2.f32 %v1431_v11  ;;  %v962_v12 = vmul.f32 %v1885_v38, %v903_v30  ;;  %v1436_v39 = vmul.f32 -1.442695, %v2053_v33  ;;  %v1544_v48 = vpop.f32.mrb[28].mxu0 }
 0x11f   : > { %v1681_v37 = vpop.eup %1680  ;;  %1242 = vst.msk [vmem:[%s1970_s18 + $0x48] sm:$0xff] %vm1232_vm2, %v1209_v47  ;;  %v1120_v56 = vadd.f32 1.0, %v1679_v35  ;;  %v2066_v40 = vadd.f32 %v1890_v43, %v964_v34  ;;  %v1434_v45 = vmul.f32 -1.442695, %v2059_v36  ;;  %v623_v49 = vpop.f32.mrb[29].mxu1  ;;  %v924_v55 = vadd.f32 %v1544_v48, %v1510_v41 }
 0x120   : > { %v1683_v14 = vpop.eup %1682  ;;  %1700 = vrcp.f32 %v1122_v51  ;;  %v1123_v44 = vadd.f32 1.0, %v1681_v37  ;;  %v2070_v46 = vadd.f32 %v1890_v43, %v962_v12  ;;  %v915_v58 = vpop.f32.mrb[29].mxu0 }
 0x121   : > { %v1685_v50 = vpop.eup %1684  ;;  %1702 = vrcp.f32 %v1120_v56  ;;  %v1121_v52 = vadd.f32 1.0, %v1683_v14  ;;  %v1437_v53 = vmul.f32 -1.442695, %v2066_v40  ;;  %v1511_v59 = vpop.f32.mrb[30].mxu1  ;;  %v916_v1 = vadd.f32 %v915_v58, %v623_v49 }
 0x122   : > { %v1687_v61 = vpop.eup %1686  ;;  %v1214_v62 = vmul.f32 %v1685_v50, %v1956_v18  ;;  %1704 = vrcp.f32 %v1123_v44  ;;  %v1435_v63 = vmul.f32 -1.442695, %v2070_v46  ;;  %v1545_v2 = vpop.f32.mrb[30].mxu0  ;;  %v967_v6 = vmul.f32 %v1885_v38, %v924_v55 }
 0x123   : > { %v626_v3 = vpop.f32.mrb[31].mxu1  ;;  %v1689_v4 = vpop.eup %1688  ;;  %v1212_v5 = vmul.f32 %v1687_v61, %v1960_v23  ;;  %1706 = vrcp.f32 %v1121_v52  ;;  %v927_v7 = vadd.f32 %v1545_v2, %v1511_v59  ;;  %v965_v11 = vmul.f32 %v1885_v38, %v916_v1 }
 0x124   : > { %v918_v9 = vpop.f32.mrb[31].mxu0  ;;  %v1691_v10 = vpop.eup %1690  ;;  %1247 = vst.msk [vmem:[%s1970_s18 + $0x70] sm:$0xff] %vm1232_vm2, %v1214_v62  ;;  %v1215_v18 = vmul.f32 %v1689_v4, %v1965_v27  ;;  %1708 = vpow2.f32 %v1436_v39  ;;  %v2085_v19 = vadd.f32 %v1890_v43, %v967_v6 }
 0x125   : > { %v919_v13 = vadd.f32 %v918_v9, %v626_v3  ;;  %v1693_v16 = vpop.eup %1692  ;;  %1245 = vst.msk [vmem:[%s1970_s18 + $0x60] sm:$0xff] %vm1232_vm2, %v1212_v5  ;;  %v1213_v23 = vmul.f32 %v1691_v10, %v1974_v31  ;;  %1710 = vpow2.f32 %v1434_v45  ;;  %v968_v21 = vmul.f32 %v1885_v38, %v927_v7 }
 0x126   : > { %v1695_v22 = vpop.eup %1694  ;;  %1248 = vst.msk [vmem:[%s1970_s18 + $0x78] sm:$0xff] %vm1232_vm2, %v1215_v18  ;;  %v1126_v27 = vadd.f32 1.0, %v1693_v16  ;;  %1712 = vpow2.f32 %v1437_v53  ;;  %v2091_v24 = vadd.f32 %v1890_v43, %v965_v11  ;;  %v1440_v30 = vmul.f32 -1.442695, %v2085_v19 }
 0x127   : > { %v966_v25 = vmul.f32 %v1885_v38, %v919_v13  ;;  %v1697_v26 = vpop.eup %1696  ;;  %1246 = vst.msk [vmem:[%s1970_s18 + $0x68] sm:$0xff] %vm1232_vm2, %v1213_v23  ;;  %v1124_v31 = vadd.f32 1.0, %v1695_v22  ;;  %1714 = vpow2.f32 %v1435_v63  ;;  %v2097_v28 = vadd.f32 %v1890_v43, %v968_v21 }
 0x128   : > { %v1699_v42 = vpop.eup %1698  ;;  %1716 = vrcp.f32 %v1126_v27  ;;  %v1127_v29 = vadd.f32 1.0, %v1697_v26  ;;  %v1438_v38 = vmul.f32 -1.442695, %v2091_v24 }
 0x129   : > { %v2101_v32 = vadd.f32 %v1890_v43, %v966_v25  ;;  %1718 = vrcp.f32 %v1124_v31  ;;  %v1125_v47 = vadd.f32 1.0, %v1699_v42  ;;  %v1441_v35 = vmul.f32 -1.442695, %v2097_v28 }
 0x12a   : > { %v1701_v34 = vpop.eup %1700  ;;  %1720 = vrcp.f32 %v1127_v29 }
 0x12b   : > { %v1703_v51 = vpop.eup %1702  ;;  %v1218_v12 = vmul.f32 %v1701_v34, %v1991_v57  ;;  %1722 = vrcp.f32 %v1125_v47  ;;  %v1439_v37 = vmul.f32 -1.442695, %v2101_v32 }
 0x12c   : > { %v1705_v56 = vpop.eup %1704  ;;  %v1216_v43 = vmul.f32 %v1703_v51, %v1997_v60  ;;  %1724 = vpow2.f32 %v1440_v30 }
 0x12d   : > { %v1707_v39 = vpop.eup %1706  ;;  %1251 = vst.msk [vmem:[%s1970_s18 + $0x90] sm:$0xff] %vm1232_vm2, %v1218_v12  ;;  %v1219_v41 = vmul.f32 %v1705_v56, %v2002_v8  ;;  %1726 = vpow2.f32 %v1438_v38 }
 0x12e   : > { %v1709_v14 = vpop.eup %1708  ;;  %1249 = vst.msk [vmem:[%s1970_s18 + $0x80] sm:$0xff] %vm1232_vm2, %v1216_v43  ;;  %v1217_v44 = vmul.f32 %v1707_v39, %v2006_v15  ;;  %1728 = vpow2.f32 %v1441_v35 }
 0x12f   : > { %v1711_v57 = vpop.eup %1710  ;;  %1252 = vst.msk [vmem:[%s1970_s18 + $0x98] sm:$0xff] %vm1232_vm2, %v1219_v41  ;;  %v1130_v45 = vadd.f32 1.0, %v1709_v14  ;;  %1730 = vpow2.f32 %v1439_v37 }
 0x130   : > { %v1713_v48 = vpop.eup %1712  ;;  %1250 = vst.msk [vmem:[%s1970_s18 + $0x88] sm:$0xff] %vm1232_vm2, %v1217_v44  ;;  %v1128_v60 = vadd.f32 1.0, %v1711_v57 }
 0x131   : > { %v1715_v49 = vpop.eup %1714  ;;  %1732 = vrcp.f32 %v1130_v45  ;;  %v1131_v8 = vadd.f32 1.0, %v1713_v48 }
 0x132   : > { %v1717_v50 = vpop.eup %1716  ;;  %1734 = vrcp.f32 %v1128_v60  ;;  %v1129_v52 = vadd.f32 1.0, %v1715_v49 }
 0x133   : > { %v1719_v15 = vpop.eup %1718  ;;  %v1222_v53 = vmul.f32 %v1717_v50, %v2023_v17  ;;  %1736 = vrcp.f32 %v1131_v8 }
 0x134   : > { %v1721_v55 = vpop.eup %1720  ;;  %v1220_v58 = vmul.f32 %v1719_v15, %v2029_v20  ;;  %1738 = vrcp.f32 %v1129_v52 }
 0x135   : > { %v1723_v59 = vpop.eup %1722  ;;  %1255 = vst.msk [vmem:[%s1970_s18 + $0xb0] sm:$0xff] %vm1232_vm2, %v1222_v53  ;;  %v1223_v61 = vmul.f32 %v1721_v55, %v2034_v54 }
 0x136   : > { %v1725_v62 = vpop.eup %1724  ;;  %1253 = vst.msk [vmem:[%s1970_s18 + $0xa0] sm:$0xff] %vm1232_vm2, %v1220_v58  ;;  %v1221_v63 = vmul.f32 %v1723_v59, %v2038_v0 }
 0x137   : > { %v1727_v1 = vpop.eup %1726  ;;  %1256 = vst.msk [vmem:[%s1970_s18 + $0xb8] sm:$0xff] %vm1232_vm2, %v1223_v61  ;;  %v1134_v2 = vadd.f32 1.0, %v1725_v62 }
 0x138   : > { %v1729_v17 = vpop.eup %1728  ;;  %1254 = vst.msk [vmem:[%s1970_s18 + $0xa8] sm:$0xff] %vm1232_vm2, %v1221_v63  ;;  %v1132_v20 = vadd.f32 1.0, %v1727_v1 }
 0x139   : > { %v1731_v3 = vpop.eup %1730  ;;  %1740 = vrcp.f32 %v1134_v2  ;;  %v1135_v4 = vadd.f32 1.0, %v1729_v17 }
 0x13a   : > { %1742 = vrcp.f32 %v1132_v20  ;;  %v1133_v54 = vadd.f32 1.0, %v1731_v3 }
 0x13b   : > { %v1733_v5 = vpop.eup %1732  ;;  %1744 = vrcp.f32 %v1135_v4 }
 0x13c   : > { %v1735_v0 = vpop.eup %1734  ;;  %v1226_v6 = vmul.f32 %v1733_v5, %v2053_v33  ;;  %1746 = vrcp.f32 %v1133_v54 }
 0x13d   : > { %v1737_v7 = vpop.eup %1736  ;;  %v1224_v9 = vmul.f32 %v1735_v0, %v2059_v36 }
 0x13e   : > { %v1739_v10 = vpop.eup %1738  ;;  %1259 = vst.msk [vmem:[%s1970_s18 + $0xd0] sm:$0xff] %vm1232_vm2, %v1226_v6  ;;  %v1227_v18 = vmul.f32 %v1737_v7, %v2066_v40 }
 0x13f   : > { %1257 = vst.msk [vmem:[%s1970_s18 + $0xc0] sm:$0xff] %vm1232_vm2, %v1224_v9  ;;  %v1225_v11 = vmul.f32 %v1739_v10, %v2070_v46 }
 0x140   : > { %1260 = vst.msk [vmem:[%s1970_s18 + $0xd8] sm:$0xff] %vm1232_vm2, %v1227_v18 }
 0x141   : > { %1258 = vst.msk [vmem:[%s1970_s18 + $0xc8] sm:$0xff] %vm1232_vm2, %v1225_v11 }
 0x143   : > { %v1741_v33 = vpop.eup %1740 }
 0x144   : > { %v1743_v13 = vpop.eup %1742  ;;  %v1230_v36 = vmul.f32 %v1741_v33, %v2085_v19 }
 0x145   : > { %v1745_v16 = vpop.eup %1744  ;;  %v1228_v23 = vmul.f32 %v1743_v13, %v2091_v24 }
 0x146   : > { %v1747_v21 = vpop.eup %1746  ;;  %1263 = vst.msk [vmem:[%s1970_s18 + $0xf0] sm:$0xff] %vm1232_vm2, %v1230_v36  ;;  %v1231_v40 = vmul.f32 %v1745_v16, %v2097_v28 }
 0x147   : > { %1261 = vst.msk [vmem:[%s1970_s18 + $0xe0] sm:$0xff] %vm1232_vm2, %v1228_v23  ;;  %v1229_v46 = vmul.f32 %v1747_v21, %v2101_v32 }
 0x148   : > { %1264 = vst.msk [vmem:[%s1970_s18 + $0xf8] sm:$0xff] %vm1232_vm2, %v1231_v40 }
 0x149   : > { %1262 = vst.msk [vmem:[%s1970_s18 + $0xe8] sm:$0xff] %vm1232_vm2, %v1229_v46 }
 0x14a PF: > { %s16_s21 = sadd.s32 1, %s1754_s21  }
 0x14b   : > { %p13_p4 = scmp.ge.s32.totalorder %s16_s21, 4  }
 0x14d   :  { %15 = sbr.rel (!%p13_p4) target bundleno = 1 (0x1), region = 77 }

// kernel: c3_forward.3
= control target key start
LH: loop header
LB: loop body
LE: loop exit
PB: predicated region body
PF: predicated region fallthrough
CT: control target
= control target key end

     0   :  { %s3674_s21 = smov 0   ;;  %s4726_s0 = inlined_call_operand.vmem [shape: bf16[512,4], index: 0, kind: input, shape index: {}]   ;;  %s4727_s1 = inlined_call_operand.vmem [shape: bf16[4,4], index: 1, kind: input, shape index: {}]   ;;  %s4728_s2 = inlined_call_operand.vmem [shape: bf16[4,4], index: 2, kind: input, shape index: {}]   ;;  %s4729_s3 = inlined_call_operand.vmem [shape: bf16[4,4], index: 3, kind: input, shape index: {}]   ;;  %s4730_s4 = inlined_call_operand.vmem [shape: f32[1,4], index: 4, kind: input, shape index: {}]   ;;  %s4731_s5 = inlined_call_operand.vmem [shape: f32[1,4], index: 5, kind: input, shape index: {}]   ;;  %s4732_s6 = inlined_call_operand.vmem [shape: f32[1,4], index: 6, kind: input, shape index: {}]   ;;  %s4733_s7 = inlined_call_operand.vmem [shape: f32[1,4], index: 7, kind: input, shape index: {}]   ;;  %s4734_s8 = inlined_call_operand.vmem [shape: f32[1,4], index: 8, kind: input, shape index: {}]   ;;  %s4735_s9 = inlined_call_operand.vmem [shape: f32[1,4], index: 9, kind: input, shape index: {}]   ;;  %s4736_s10 = inlined_call_operand.vmem [shape: bf16[512,4], index: 10, kind: output, shape index: {0}]   ;;  %s4737_s11 = inlined_call_operand.vmem [shape: bf16[512,4], index: 11, kind: output, shape index: {1}]   ;;  %s4738_s12 = inlined_call_operand.vmem [shape: bf16[512,4], index: 12, kind: output, shape index: {2}]  }
   0x1 LB: > { %s2661_s22 = sadd.s32 4294967295, %s3607_s21   ;;  %p2665_p0 = scmp.ge.s32.totalorder %s3607_s21, 1  ;;  %s3607_s21 = sphi %s3674_s21, %s23_s21  }
   0x2   : > { %p368_p1 = scmp.lt.s32.totalorder %s3607_s21, 3 }
   0x4   : > { %p369_p2 = pnand %p2665_p0, %p368_p1 }
   0x5   : > { %v477_v0 = vld [vmem:[%s4727_s1] sm:$0x3] (!%p369_p2)  ;;  %vm607_vm0 = vcmask (!%p369_p2), 1041408   ;;  %s2666_s25 = sshll.u32 (!%p369_p2), %s2661_s22, 5  ;;  %vm558_vm1 = vcmask (!%p369_p2), 31744   ;;  %vm2184_vm2 = vcmask (!%p369_p2), 27648  }
   0x6   : > { %372 = sbr.rel (%p369_p2) target bundleno = 603 (0x25b), region = 60  ;;  %3189 = vmatprep.subr.msk.bf16.mxu0 (!%p369_p2), %vm607_vm0, %v477_v0  ;;  %v609_v1 = vsel (!%p369_p2), %vm607_vm0, %v477_v0, 0  ;;  %3190 = vmatprep.subr.msk.bf16.mxu1 (!%p369_p2), %vm607_vm0, %v477_v0  ;;  %p421_p3 = scmp.lt.s32.totalorder (!%p369_p2), %s2666_s25, 63  ;;  %v1074_v18 = vld [vmem:[%s4728_s2] sm:$0x3] (!%p369_p2) }
   0x7   : > { %3086 = vmatpush3.bf16.msra.mxu0 (!%p369_p2), %v609_v1  ;;  %3188 = vmatpush3.bf16.msra.mxu1 (!%p369_p2), %v609_v1  ;;  %v1076_v19 = vsel (!%p369_p2), %vm607_vm0, %v1074_v18, 0  ;;  %v1557_v20 = vld [vmem:[%s4729_s3] sm:$0x3] (!%p369_p2) }
   0x8   : > { %3191 = vmatprep.subr.msk.bf16.mxu1 (!%p369_p2), %vm607_vm0, %v1074_v18  ;;  %3192 = vmatprep.subr.msk.bf16.mxu0 (!%p369_p2), %vm607_vm0, %v1557_v20  ;;  %v1607_v21 = vsel (!%p369_p2), %vm607_vm0, %v1557_v20, 0  ;;  %v3757_v22 = vld [vmem:[%s4730_s4] ss:$0 sm:$0xff] (!%p369_p2) }
   0x9   : > { %v3762_v24 = vld [vmem:[%s4731_s5] ss:$0 sm:$0xff] (!%p369_p2) }
   0xd   : > { %s4740_s25 = smov (!%p421_p3, %s2666_s25), 63 }
   0xe   : > { %s3688_s26 = sshll.u32 %s4740_s25, 2 }
   0xf   : > { %s3694_s29 = scalar_lea.vmem %s4726_s0, %s3688_s26  ;;  %s3910_s23 = scalar_lea.vmem %s4736_s10, %s3688_s26 }
  0x10   : > { %v3201_v2 = vld [vmem:[%s3694_s29] sm:$0xff]   ;;  %v3202_v3 = vld [vmem:[%s3694_s29 + $0x8] sm:$0xff]   ;;  %v3205_v6 = vld [vmem:[%s3694_s29 + $0x10] sm:$0xff]   ;;  %s4273_s13 = scalar_lea.vmem %s4737_s11, %s3688_s26  ;;  %s4508_s20 = scalar_lea.vmem %s4738_s12, %s3688_s26 }
  0x11   : > { %3087 = vmatprep.mubr.msk.bf16.mxu0 %vm558_vm1, %v3201_v2  ;;  %v3203_v4 = vld [vmem:[%s3694_s29 + $0x40] sm:$0xff]   ;;  %v3204_v5 = vld [vmem:[%s3694_s29 + $0x48] sm:$0xff]   ;;  %v3207_v7 = vld [vmem:[%s3694_s29 + $0x50] sm:$0xff]  }
  0x12   : > { %3088 = vmatmul.mubr.msk.bf16.vlgmr.msra.gmra.mrb[0].mxu0 %vm558_vm1, %v3202_v3  ;;  %3103 = vmatprep.mubr.msk.bf16.mxu1 %vm558_vm1, %v3203_v4  ;;  %v3206_v8 = vld [vmem:[%s3694_s29 + $0x18] sm:$0xff]   ;;  %v3209_v9 = vld [vmem:[%s3694_s29 + $0x20] sm:$0xff]   ;;  %v3210_v12 = vld [vmem:[%s3694_s29 + $0x28] sm:$0xff]  }
  0x13   : > { %3104 = vmatmul.mubr.msk.bf16.vlgmr.msra.gmra.mrb[0].mxu1 %vm558_vm1, %v3204_v5  ;;  %3091 = vmatprep.mubr.msk.bf16.mxu0 %vm558_vm1, %v3205_v6  ;;  %v3208_v10 = vld [vmem:[%s3694_s29 + $0x58] sm:$0xff]   ;;  %v3211_v11 = vld [vmem:[%s3694_s29 + $0x60] sm:$0xff]   ;;  %v3213_v13 = vld [vmem:[%s3694_s29 + $0x30] sm:$0xff]  }
  0x14   : > { %3107 = vmatprep.mubr.msk.bf16.mxu1 %vm558_vm1, %v3207_v7  ;;  %v3212_v14 = vld [vmem:[%s3694_s29 + $0x68] sm:$0xff]   ;;  %v3215_v15 = vld [vmem:[%s3694_s29 + $0x70] sm:$0xff]   ;;  %v3214_v16 = vld [vmem:[%s3694_s29 + $0x38] sm:$0xff]   ;;  %3120 = vmatpush3.bf16.msra.mxu1 %v1076_v19 }
  0x15   : > { %v3216_v17 = vld [vmem:[%s3694_s29 + $0x78] sm:$0xff]   ;;  %3154 = vmatpush3.bf16.msra.mxu0 %v1607_v21 }
  0x1a   : > { %3092 = vmatmul.mubr.msk.bf16.gmra.mrb[4].mxu0 %vm558_vm1, %v3206_v8 }
  0x1b   : > { %3095 = vmatprep.mubr.msk.bf16.mxu0 %vm558_vm1, %v3209_v9  ;;  %3108 = vmatmul.mubr.msk.bf16.gmra.mrb[4].mxu1 %vm558_vm1, %v3208_v10 }
  0x1c   : > { %3111 = vmatprep.mubr.msk.bf16.mxu1 %vm558_vm1, %v3211_v11 }
  0x22   : > { %3096 = vmatmul.mubr.msk.bf16.gmra.mrb[8].mxu0 %vm558_vm1, %v3210_v12 }
  0x23   : > { %3099 = vmatprep.mubr.msk.bf16.mxu0 %vm558_vm1, %v3213_v13  ;;  %3112 = vmatmul.mubr.msk.bf16.gmra.mrb[8].mxu1 %vm558_vm1, %v3212_v14 }
  0x24   : > { %3115 = vmatprep.mubr.msk.bf16.mxu1 %vm558_vm1, %v3215_v15 }
  0x2a   : > { %3100 = vmatmul.mubr.msk.bf16.gmra.mrb[12].mxu0 %vm558_vm1, %v3214_v16 }
  0x2b   : > { %3116 = vmatmul.mubr.msk.bf16.gmra.mrb[12].mxu1 %vm558_vm1, %v3216_v17 }
  0x2c   : > { %3121 = vmatprep.mubr.msk.bf16.mxu1 %vm558_vm1, %v3201_v2 }
  0x33   : > { %3122 = vmatmul.mubr.msk.bf16.vlgmr.msra.gmra.mrb[16].mxu1 %vm558_vm1, %v3202_v3 }
  0x34   : > { %3125 = vmatprep.mubr.msk.bf16.mxu1 %vm558_vm1, %v3205_v6 }
  0x3b   : > { %3126 = vmatmul.mubr.msk.bf16.gmra.mrb[20].mxu1 %vm558_vm1, %v3206_v8 }
  0x3c   : > { %3129 = vmatprep.mubr.msk.bf16.mxu1 %vm558_vm1, %v3209_v9 }
  0x43   : > { %3130 = vmatmul.mubr.msk.bf16.gmra.mrb[24].mxu1 %vm558_vm1, %v3210_v12 }
  0x44   : > { %3133 = vmatprep.mubr.msk.bf16.mxu1 %vm558_vm1, %v3213_v13 }
  0x4b   : > { %3134 = vmatmul.mubr.msk.bf16.gmra.mrb[28].mxu1 %vm558_vm1, %v3214_v16 }
  0x4c   : > { %3137 = vmatprep.mubr.msk.bf16.mxu1 %vm558_vm1, %v3203_v4 }
  0x53   : > { %3138 = vmatmul.mubr.msk.bf16.gmra.mrb[32].mxu1 %vm558_vm1, %v3204_v5 }
  0x54   : > { %3141 = vmatprep.mubr.msk.bf16.mxu1 %vm558_vm1, %v3207_v7 }
  0x5b   : > { %3142 = vmatmul.mubr.msk.bf16.gmra.mrb[36].mxu1 %vm558_vm1, %v3208_v10 }
  0x5c   : > { %3145 = vmatprep.mubr.msk.bf16.mxu1 %vm558_vm1, %v3211_v11 }
  0x63   : > { %3146 = vmatmul.mubr.msk.bf16.gmra.mrb[40].mxu1 %vm558_vm1, %v3212_v14 }
  0x64   : > { %3149 = vmatprep.mubr.msk.bf16.mxu1 %vm558_vm1, %v3215_v15 }
  0x6b   : > { %3150 = vmatmul.mubr.msk.bf16.gmra.mrb[44].mxu1 %vm558_vm1, %v3216_v17 }
  0xe5   : > { %v3089_v23 = vpop.f32.mrb[0].mxu0 }
  0xe6   : > { %v781_v25 = vmul.f32 %v3089_v23, %v3757_v22  ;;  %v645_v26 = vpop.f32.mrb[1].mxu0  ;;  %v3105_v29 = vpop.f32.mrb[0].mxu1 }
  0xe7   : > { %v779_v27 = vmul.f32 %v3757_v22, %v645_v26  ;;  %v3090_v28 = vpop.f32.mrb[2].mxu0  ;;  %v797_v33 = vmul.f32 %v3105_v29, %v3757_v22  ;;  %v709_v34 = vpop.f32.mrb[1].mxu1 }
  0xe8   : > { %v3767_v30 = vadd.f32 %v3762_v24, %v781_v25  ;;  %v782_v31 = vmul.f32 %v3090_v28, %v3757_v22  ;;  %v648_v32 = vpop.f32.mrb[3].mxu0  ;;  %v795_v37 = vmul.f32 %v3757_v22, %v709_v34  ;;  %v3106_v38 = vpop.f32.mrb[2].mxu1 }
  0xe9   : > { %v3772_v35 = vadd.f32 %v3762_v24, %v779_v27  ;;  %v780_v36 = vmul.f32 %v3757_v22, %v648_v32  ;;  %v3781_v41 = vadd.f32 %v3762_v24, %v797_v33  ;;  %v798_v42 = vmul.f32 %v3106_v38, %v3757_v22  ;;  %v712_v43 = vpop.f32.mrb[3].mxu1 }
  0xea   : > { %v2710_v39 = vmul.f32 -1.442695, %v3767_v30  ;;  %v3778_v40 = vadd.f32 %v3762_v24, %v782_v31  ;;  %v3789_v46 = vadd.f32 %v3762_v24, %v795_v37  ;;  %v796_v47 = vmul.f32 %v3757_v22, %v712_v43 }
  0xeb   : > { %v2708_v44 = vmul.f32 -1.442695, %v3772_v35  ;;  %v3786_v45 = vadd.f32 %v3762_v24, %v780_v36  ;;  %v2726_v49 = vmul.f32 -1.442695, %v3781_v41  ;;  %v3795_v50 = vadd.f32 %v3762_v24, %v798_v42 }
  0xec   : > { %3217 = vpow2.f32 %v2710_v39  ;;  %v2711_v48 = vmul.f32 -1.442695, %v3778_v40  ;;  %v2724_v52 = vmul.f32 -1.442695, %v3789_v46  ;;  %v3800_v53 = vadd.f32 %v3762_v24, %v796_v47 }
  0xed   : > { %3219 = vpow2.f32 %v2708_v44  ;;  %v2709_v51 = vmul.f32 -1.442695, %v3786_v45  ;;  %v3093_v54 = vpop.f32.mrb[4].mxu0  ;;  %v2727_v55 = vmul.f32 -1.442695, %v3795_v50 }
  0xee   : > { %3221 = vpow2.f32 %v2711_v48  ;;  %v785_v56 = vmul.f32 %v3093_v54, %v3757_v22  ;;  %v661_v57 = vpop.f32.mrb[5].mxu0  ;;  %v2725_v58 = vmul.f32 -1.442695, %v3800_v53  ;;  %v3109_v61 = vpop.f32.mrb[4].mxu1 }
  0xef   : > { %3223 = vpow2.f32 %v2709_v51  ;;  %v783_v59 = vmul.f32 %v3757_v22, %v661_v57  ;;  %v3094_v60 = vpop.f32.mrb[6].mxu0  ;;  %v801_v1 = vmul.f32 %v3109_v61, %v3757_v22  ;;  %v725_v2 = vpop.f32.mrb[5].mxu1 }
  0xf0   : > { %3225 = vpow2.f32 %v2726_v49  ;;  %v3807_v62 = vadd.f32 %v3762_v24, %v785_v56  ;;  %v786_v63 = vmul.f32 %v3094_v60, %v3757_v22  ;;  %v664_v0 = vpop.f32.mrb[7].mxu0  ;;  %v799_v5 = vmul.f32 %v3757_v22, %v725_v2  ;;  %v3110_v6 = vpop.f32.mrb[6].mxu1 }
  0xf1   : > { %3227 = vpow2.f32 %v2724_v52  ;;  %v3812_v3 = vadd.f32 %v3762_v24, %v783_v59  ;;  %v784_v4 = vmul.f32 %v3757_v22, %v664_v0  ;;  %v3821_v9 = vadd.f32 %v3762_v24, %v801_v1  ;;  %v728_v10 = vpop.f32.mrb[7].mxu1 }
  0xf2   : > { %3229 = vpow2.f32 %v2727_v55  ;;  %v2714_v7 = vmul.f32 -1.442695, %v3807_v62  ;;  %v3818_v8 = vadd.f32 %v3762_v24, %v786_v63  ;;  %v802_v15 = vmul.f32 %v3110_v6, %v3757_v22 }
  0xf3   : > { %3231 = vpow2.f32 %v2725_v58  ;;  %v2712_v11 = vmul.f32 -1.442695, %v3812_v3  ;;  %v3825_v12 = vadd.f32 %v3762_v24, %v784_v4  ;;  %v2730_v14 = vmul.f32 -1.442695, %v3821_v9 }
  0xf4   : > { %3233 = vpow2.f32 %v2714_v7  ;;  %v2715_v13 = vmul.f32 -1.442695, %v3818_v8  ;;  %v3832_v17 = vadd.f32 %v3762_v24, %v799_v5  ;;  %v800_v18 = vmul.f32 %v3757_v22, %v728_v10 }
  0xf5   : > { %3235 = vpow2.f32 %v2712_v11  ;;  %v2713_v16 = vmul.f32 -1.442695, %v3825_v12  ;;  %v3097_v19 = vpop.f32.mrb[8].mxu0  ;;  %v3837_v27 = vadd.f32 %v3762_v24, %v802_v15 }
  0xf6   : > { %v3218_v20 = vpop.eup %3217  ;;  %3237 = vpow2.f32 %v2715_v13  ;;  %v789_v21 = vmul.f32 %v3097_v19, %v3757_v22  ;;  %v677_v23 = vpop.f32.mrb[9].mxu0  ;;  %v3841_v34 = vadd.f32 %v3762_v24, %v800_v18  ;;  %v3844_v42 = vmul.f32 -1.442695, %v3832_v17 }
  0xf7   : > { %v3220_v25 = vpop.eup %3219  ;;  %v948_v26 = vadd.f32 1.0, %v3218_v20  ;;  %3239 = vpow2.f32 %v2713_v16  ;;  %v787_v28 = vmul.f32 %v3757_v22, %v677_v23  ;;  %v3098_v29 = vpop.f32.mrb[10].mxu0  ;;  %v3854_v56 = vmul.f32 -1.442695, %v3837_v27 }
  0xf8   : > { %v3113_v31 = vpop.f32.mrb[8].mxu1  ;;  %v3222_v32 = vpop.eup %3221  ;;  %v946_v33 = vadd.f32 1.0, %v3220_v25  ;;  %3241 = vpow2.f32 %v2730_v14  ;;  %v3847_v43 = vadd.f32 %v3762_v24, %v789_v21  ;;  %v790_v51 = vmul.f32 %v3098_v29, %v3757_v22 }
  0xf9   : > { %v680_v36 = vpop.f32.mrb[11].mxu0  ;;  %v741_v37 = vpop.f32.mrb[9].mxu1  ;;  %3243 = vrcp.f32 %v948_v26  ;;  %v949_v39 = vadd.f32 1.0, %v3222_v32  ;;  %v3850_v49 = vadd.f32 %v3762_v24, %v787_v28  ;;  %v3858_v60 = vmul.f32 -1.442695, %v3841_v34 }
  0xfa   : > { %v3224_v38 = vpop.eup %3223  ;;  %v3114_v44 = vpop.f32.mrb[10].mxu1  ;;  %3245 = vrcp.f32 %v946_v33  ;;  %v788_v57 = vmul.f32 %v3757_v22, %v680_v36  ;;  %v805_v61 = vmul.f32 %v3113_v31, %v3757_v22  ;;  %v3862_v1 = vadd.f32 %v3762_v24, %v790_v51 }
  0xfb   : > { %v3226_v47 = vpop.eup %3225  ;;  %v947_v48 = vadd.f32 1.0, %v3224_v38  ;;  %v744_v52 = vpop.f32.mrb[11].mxu1  ;;  %3247 = vrcp.f32 %v949_v39  ;;  %v803_v2 = vmul.f32 %v3757_v22, %v741_v37  ;;  %v3866_v7 = vmul.f32 -1.442695, %v3847_v43 }
  0xfc   : > { %v3228_v54 = vpop.eup %3227  ;;  %v964_v55 = vadd.f32 1.0, %v3226_v47  ;;  %v3869_v10 = vmul.f32 -1.442695, %v3850_v49  ;;  %v3872_v15 = vadd.f32 %v3762_v24, %v788_v57  ;;  %v3875_v16 = vadd.f32 %v3762_v24, %v805_v61 }
  0xfd   : > { %v3230_v58 = vpop.eup %3229  ;;  %3249 = vrcp.f32 %v947_v48  ;;  %v962_v59 = vadd.f32 1.0, %v3228_v54  ;;  %v3101_v4 = vpop.f32.mrb[12].mxu0  ;;  %v3882_v23 = vadd.f32 %v3762_v24, %v803_v2  ;;  %v806_v25 = vmul.f32 %v3114_v44, %v3757_v22 }
  0xfe   : > { %v3232_v63 = vpop.eup %3231  ;;  %3251 = vrcp.f32 %v964_v55  ;;  %v965_v0 = vadd.f32 1.0, %v3230_v58  ;;  %v693_v11 = vpop.f32.mrb[13].mxu0  ;;  %v2719_v32 = vmul.f32 -1.442695, %v3862_v1  ;;  %v804_v33 = vmul.f32 %v3757_v22, %v744_v52 }
  0xff   : > { %v3234_v5 = vpop.eup %3233  ;;  %3253 = vrcp.f32 %v962_v59  ;;  %v963_v6 = vadd.f32 1.0, %v3232_v63  ;;  %v3877_v18 = vpop.f32.mrb[14].mxu0  ;;  %v3894_v39 = vadd.f32 %v3762_v24, %v806_v25  ;;  %v793_v44 = vmul.f32 %v3101_v4, %v3757_v22 }
 0x100   : > { %v3236_v13 = vpop.eup %3235  ;;  %3255 = vrcp.f32 %v965_v0  ;;  %v952_v14 = vadd.f32 1.0, %v3234_v5  ;;  %v3879_v19 = vpop.f32.mrb[12].mxu1  ;;  %v2717_v54 = vmul.f32 -1.442695, %v3872_v15  ;;  %v3901_v52 = vadd.f32 %v3762_v24, %v804_v33 }
 0x101   : > { %v3238_v20 = vpop.eup %3237  ;;  %3257 = vrcp.f32 %v963_v6  ;;  %v950_v21 = vadd.f32 1.0, %v3236_v13  ;;  %v3885_v26 = vpop.f32.mrb[15].mxu0  ;;  %v2734_v58 = vmul.f32 -1.442695, %v3875_v16  ;;  %v2732_v59 = vmul.f32 -1.442695, %v3882_v23 }
 0x102   : > { %v3887_v28 = vpop.f32.mrb[13].mxu1  ;;  %v3240_v29 = vpop.eup %3239  ;;  %3259 = vrcp.f32 %v952_v14  ;;  %v953_v31 = vadd.f32 1.0, %v3238_v20  ;;  %v2735_v0 = vmul.f32 -1.442695, %v3894_v39  ;;  %v791_v2 = vmul.f32 %v3757_v22, %v693_v11 }
 0x103   : > { %v3891_v36 = vpop.f32.mrb[14].mxu1  ;;  %v3242_v37 = vpop.eup %3241  ;;  %3261 = vrcp.f32 %v950_v21  ;;  %v951_v38 = vadd.f32 1.0, %v3240_v29  ;;  %v3918_v6 = vadd.f32 %v3762_v24, %v793_v44 }
 0x104   : > { %v3897_v47 = vpop.f32.mrb[15].mxu1  ;;  %v3244_v48 = vpop.eup %3243  ;;  %3263 = vrcp.f32 %v953_v31  ;;  %v968_v51 = vadd.f32 1.0, %v3242_v37 }
 0x105   : > { %v3246_v55 = vpop.eup %3245  ;;  %v1044_v57 = vmul.f32 %v3244_v48, %v3767_v30  ;;  %3265 = vrcp.f32 %v951_v38  ;;  %v2722_v38 = vmul.f32 -1.442695, %v3918_v6 }
 0x106   : > { %v3248_v61 = vpop.eup %3247  ;;  %v1042_v63 = vmul.f32 %v3246_v55, %v3772_v35  ;;  %3267 = vrcp.f32 %v968_v51  ;;  %v2733_v35 = vmul.f32 -1.442695, %v3901_v52 }
 0x107   : > { %v3250_v30 = vpop.eup %3249  ;;  %v2940_v4 = vpack.c.bf16 %v1044_v57, %v1044_v57  ;;  %v1045_v5 = vmul.f32 %v3248_v61, %v3778_v40  ;;  %3269 = vpow2.f32 %v3844_v42 }
 0x108   : > { %v3252_v13 = vpop.eup %3251  ;;  %v2938_v14 = vpack.c.bf16 %v1042_v63, %v1042_v63  ;;  %v1043_v20 = vmul.f32 %v3250_v30, %v3786_v45  ;;  %3271 = vpow2.f32 %v3854_v56 }
 0x109   : > { %v3254_v11 = vpop.eup %3253  ;;  %2187 = vst.msk [vmem:[%s3910_s23 + $0x8] sm:$0xf] %vm2184_vm2, %v2940_v4  ;;  %v1542_v21 = vpack.c.bf16 %v1045_v5, %v1044_v57  ;;  %v2941_v25 = vpack.c.bf16 %v1045_v5, %v1045_v5  ;;  %v3926_v40 = vmul.f32 %v3252_v13, %v3781_v41  ;;  %3273 = vpow2.f32 %v3858_v60 }
 0x10a   : > { %v3256_v42 = vpop.eup %3255  ;;  %2185 = vst.msk [vmem:[%s3910_s23] sm:$0xf] %vm2184_vm2, %v2938_v14  ;;  %v1541_v45 = vpack.c.bf16 %v1043_v20, %v1042_v63  ;;  %v2939_v29 = vpack.c.bf16 %v1043_v20, %v1043_v20  ;;  %v3932_v56 = vmul.f32 %v3254_v11, %v3789_v46  ;;  %3275 = vpow2.f32 %v3866_v7 }
 0x10b   : > { %v3258_v31 = vpop.eup %3257  ;;  %2188 = vst.msk [vmem:[%s3910_s23 + $0xc] sm:$0xf] %vm2184_vm2, %v2941_v25  ;;  %v2956_v41 = vpack.c.bf16 %v3926_v40, %v3926_v40  ;;  %v3940_v33 = vmul.f32 %v3256_v42, %v3795_v50  ;;  %3277 = vpow2.f32 %v3869_v10  ;;  %v3944_v60 = vadd.f32 %v3762_v24, %v791_v2 }
 0x10c   : > { %v3260_v46 = vpop.eup %3259  ;;  %2186 = vst.msk [vmem:[%s3910_s23 + $0x4] sm:$0xf] %vm2184_vm2, %v2939_v29  ;;  %v2954_v7 = vpack.c.bf16 %v3932_v56, %v3932_v56  ;;  %v3951_v37 = vmul.f32 %v3258_v31, %v3800_v53  ;;  %3279 = vpow2.f32 %v2719_v32  ;;  %3155 = vmatprep.mubr.msk.bf16.mxu0 %vm558_vm1, %v1541_v45  ;;  %v794_v25 = vmul.f32 %v3877_v18, %v3757_v22 }
 0x10d   : > { %v3262_v50 = vpop.eup %3261  ;;  %2203 = vst.msk [vmem:[%s3910_s23 + $0x48] sm:$0xf] %vm2184_vm2, %v2956_v41  ;;  %v1550_v10 = vpack.c.bf16 %v3940_v33, %v3926_v40  ;;  %v2957_v44 = vpack.c.bf16 %v3940_v33, %v3940_v33  ;;  %v1048_v48 = vmul.f32 %v3260_v46, %v3807_v62  ;;  %3281 = vpow2.f32 %v2717_v54  ;;  %3156 = vmatmul.mubr.msk.bf16.vlgmr.msra.gmra.mrb[16].mxu0 %vm558_vm1, %v1542_v21 }
 0x10e   : > { %v3264_v53 = vpop.eup %3263  ;;  %2201 = vst.msk [vmem:[%s3910_s23 + $0x40] sm:$0xf] %vm2184_vm2, %v2954_v7  ;;  %v1549_v32 = vpack.c.bf16 %v3951_v37, %v3932_v56  ;;  %v2955_v51 = vpack.c.bf16 %v3951_v37, %v3951_v37  ;;  %v1046_v55 = vmul.f32 %v3262_v50, %v3812_v3  ;;  %3283 = vpow2.f32 %v2734_v58 }
 0x10f   : > { %v3266_v57 = vpop.eup %3265  ;;  %2204 = vst.msk [vmem:[%s3910_s23 + $0x4c] sm:$0xf] %vm2184_vm2, %v2957_v44  ;;  %v2944_v62 = vpack.c.bf16 %v1048_v48, %v1048_v48  ;;  %v1049_v54 = vmul.f32 %v3264_v53, %v3818_v8  ;;  %3285 = vpow2.f32 %v2732_v59  ;;  %v2720_v61 = vmul.f32 -1.442695, %v3944_v60 }
 0x110   : > { %v3268_v63 = vpop.eup %3267  ;;  %2202 = vst.msk [vmem:[%s3910_s23 + $0x44] sm:$0xf] %vm2184_vm2, %v2955_v51  ;;  %v2942_v2 = vpack.c.bf16 %v1046_v55, %v1046_v55  ;;  %v1047_v30 = vmul.f32 %v3266_v57, %v3825_v12  ;;  %3287 = vpow2.f32 %v2735_v0  ;;  %v792_v29 = vmul.f32 %v3757_v22, %v3885_v26 }
 0x111   : > { %v3270_v3 = vpop.eup %3269  ;;  %2191 = vst.msk [vmem:[%s3910_s23 + $0x18] sm:$0xf] %vm2184_vm2, %v2944_v62  ;;  %v1544_v58 = vpack.c.bf16 %v1049_v54, %v1048_v48  ;;  %v2945_v4 = vpack.c.bf16 %v1049_v54, %v1049_v54  ;;  %v3980_v5 = vmul.f32 %v3268_v63, %v3821_v9  ;;  %3289 = vpow2.f32 %v2733_v35 }
 0x112   : > { %v3272_v8 = vpop.eup %3271  ;;  %2189 = vst.msk [vmem:[%s3910_s23 + $0x10] sm:$0xf] %vm2184_vm2, %v2942_v2  ;;  %v1543_v59 = vpack.c.bf16 %v1047_v30, %v1046_v55  ;;  %v2943_v13 = vpack.c.bf16 %v1047_v30, %v1047_v30  ;;  %v966_v14 = vadd.f32 1.0, %v3270_v3  ;;  %3291 = vpow2.f32 %v2722_v38 }
 0x113   : > { %v3274_v12 = vpop.eup %3273  ;;  %2192 = vst.msk [vmem:[%s3910_s23 + $0x1c] sm:$0xf] %vm2184_vm2, %v2945_v4  ;;  %v2960_v0 = vpack.c.bf16 %v3980_v5, %v3980_v5  ;;  %v969_v20 = vadd.f32 1.0, %v3272_v8  ;;  %3293 = vpow2.f32 %v2720_v61  ;;  %v809_v46 = vmul.f32 %v3879_v19, %v3757_v22 }
 0x114   : > { %v3276_v11 = vpop.eup %3275  ;;  %2190 = vst.msk [vmem:[%s3910_s23 + $0x14] sm:$0xf] %vm2184_vm2, %v2943_v13  ;;  %3295 = vrcp.f32 %v966_v14  ;;  %v967_v9 = vadd.f32 1.0, %v3274_v12  ;;  %3159 = vmatprep.mubr.msk.bf16.mxu0 %vm558_vm1, %v1543_v59  ;;  %v807_v18 = vmul.f32 %v3757_v22, %v3887_v28  ;;  %v810_v50 = vmul.f32 %v3891_v36, %v3757_v22 }
 0x115   : > { %v3278_v35 = vpop.eup %3277  ;;  %2207 = vst.msk [vmem:[%s3910_s23 + $0x58] sm:$0xf] %vm2184_vm2, %v2960_v0  ;;  %3297 = vrcp.f32 %v969_v20  ;;  %v956_v21 = vadd.f32 1.0, %v3276_v11  ;;  %3160 = vmatmul.mubr.msk.bf16.gmra.mrb[20].mxu0 %vm558_vm1, %v1544_v58  ;;  %v4005_v26 = vadd.f32 %v3762_v24, %v794_v25  ;;  %v808_v53 = vmul.f32 %v3757_v22, %v3897_v47 }
 0x116   : > { %v3280_v42 = vpop.eup %3279  ;;  %3299 = vrcp.f32 %v967_v9  ;;  %v954_v45 = vadd.f32 1.0, %v3278_v35  ;;  %v4010_v55 = vadd.f32 %v3762_v24, %v792_v29  ;;  %v4013_v36 = vadd.f32 %v3762_v24, %v809_v46 }
 0x117   : > { %v3282_v31 = vpop.eup %3281  ;;  %3301 = vrcp.f32 %v956_v21  ;;  %v957_v41 = vadd.f32 1.0, %v3280_v42  ;;  %v4016_v61 = vadd.f32 %v3762_v24, %v807_v18  ;;  %v4019_v22 = vadd.f32 %v3762_v24, %v810_v50 }
 0x118   : > { %v3284_v7 = vpop.eup %3283  ;;  %3303 = vrcp.f32 %v954_v45  ;;  %v955_v38 = vadd.f32 1.0, %v3282_v31  ;;  %v2723_v2 = vmul.f32 -1.442695, %v4005_v26  ;;  %v4023_v30 = vadd.f32 %v3762_v24, %v808_v53 }
 0x119   : > { %v3286_v44 = vpop.eup %3285  ;;  %3305 = vrcp.f32 %v957_v41  ;;  %v972_v48 = vadd.f32 1.0, %v3284_v7  ;;  %v2721_v4 = vmul.f32 -1.442695, %v4010_v55  ;;  %v2738_v13 = vmul.f32 -1.442695, %v4013_v36 }
 0x11a   : > { %v3288_v51 = vpop.eup %3287  ;;  %3307 = vrcp.f32 %v955_v38  ;;  %v970_v19 = vadd.f32 1.0, %v3286_v44  ;;  %v2736_v24 = vmul.f32 -1.442695, %v4016_v61  ;;  %v2739_v0 = vmul.f32 -1.442695, %v4019_v22 }
 0x11b   : > { %v3290_v57 = vpop.eup %3289  ;;  %3309 = vrcp.f32 %v972_v48  ;;  %v973_v28 = vadd.f32 1.0, %v3288_v51  ;;  %v2737_v9 = vmul.f32 -1.442695, %v4023_v30 }
 0x11c   : > { %v3292_v62 = vpop.eup %3291  ;;  %3311 = vrcp.f32 %v970_v19  ;;  %v971_v54 = vadd.f32 1.0, %v3290_v57 }
 0x11d   : > { %v3294_v47 = vpop.eup %3293  ;;  %3313 = vrcp.f32 %v973_v28  ;;  %v960_v63 = vadd.f32 1.0, %v3292_v62 }
 0x11e   : > { %v3296_v3 = vpop.eup %3295  ;;  %3315 = vrcp.f32 %v971_v54  ;;  %v958_v58 = vadd.f32 1.0, %v3294_v47 }
 0x11f   : > { %v3298_v8 = vpop.eup %3297  ;;  %v4027_v59 = vmul.f32 %v3296_v3, %v3832_v17  ;;  %3317 = vrcp.f32 %v960_v63 }
 0x120   : > { %v3300_v14 = vpop.eup %3299  ;;  %v4031_v12 = vmul.f32 %v3298_v8, %v3837_v27  ;;  %3319 = vrcp.f32 %v958_v58 }
 0x121   : > { %v3302_v20 = vpop.eup %3301  ;;  %v2958_v11 = vpack.c.bf16 %v4027_v59, %v4027_v59  ;;  %v4038_v17 = vmul.f32 %v3300_v14, %v3841_v34  ;;  %3321 = vpow2.f32 %v2723_v2 }
 0x122   : > { %v3304_v35 = vpop.eup %3303  ;;  %v1552_v27 = vpack.c.bf16 %v4031_v12, %v3980_v5  ;;  %v2961_v21 = vpack.c.bf16 %v4031_v12, %v4031_v12  ;;  %v1052_v25 = vmul.f32 %v3302_v20, %v3847_v43  ;;  %3323 = vpow2.f32 %v2721_v4 }
 0x123   : > { %v3306_v42 = vpop.eup %3305  ;;  %2205 = vst.msk [vmem:[%s3910_s23 + $0x50] sm:$0xf] %vm2184_vm2, %v2958_v11  ;;  %v1551_v34 = vpack.c.bf16 %v4038_v17, %v4027_v59  ;;  %v2959_v45 = vpack.c.bf16 %v4038_v17, %v4038_v17  ;;  %v1050_v29 = vmul.f32 %v3304_v35, %v3850_v49  ;;  %3325 = vpow2.f32 %v2738_v13 }
 0x124   : > { %v3308_v31 = vpop.eup %3307  ;;  %2208 = vst.msk [vmem:[%s3910_s23 + $0x5c] sm:$0xf] %vm2184_vm2, %v2961_v21  ;;  %v2948_v41 = vpack.c.bf16 %v1052_v25, %v1052_v25  ;;  %v1053_v43 = vmul.f32 %v3306_v42, %v3862_v1  ;;  %3327 = vpow2.f32 %v2736_v24 }
 0x125   : > { %v3310_v46 = vpop.eup %3309  ;;  %2206 = vst.msk [vmem:[%s3910_s23 + $0x54] sm:$0xf] %vm2184_vm2, %v2959_v45  ;;  %v2946_v7 = vpack.c.bf16 %v1050_v29, %v1050_v29  ;;  %v1051_v38 = vmul.f32 %v3308_v31, %v3872_v15  ;;  %3329 = vpow2.f32 %v2739_v0 }
 0x126   : > { %v3312_v18 = vpop.eup %3311  ;;  %2195 = vst.msk [vmem:[%s3910_s23 + $0x28] sm:$0xf] %vm2184_vm2, %v2948_v41  ;;  %v1546_v49 = vpack.c.bf16 %v1053_v43, %v1052_v25  ;;  %v2949_v50 = vpack.c.bf16 %v1053_v43, %v1053_v43  ;;  %v4062_v44 = vmul.f32 %v3310_v46, %v3875_v16  ;;  %3331 = vpow2.f32 %v2737_v9 }
 0x127   : > { %v3314_v1 = vpop.eup %3313  ;;  %2193 = vst.msk [vmem:[%s3910_s23 + $0x20] sm:$0xf] %vm2184_vm2, %v2946_v7  ;;  %v1545_v48 = vpack.c.bf16 %v1051_v38, %v1050_v29  ;;  %v2947_v53 = vpack.c.bf16 %v1051_v38, %v1051_v38  ;;  %v4067_v51 = vmul.f32 %v3312_v18, %v3882_v23 }
 0x128   : > { %v3316_v15 = vpop.eup %3315  ;;  %2196 = vst.msk [vmem:[%s3910_s23 + $0x2c] sm:$0xf] %vm2184_vm2, %v2949_v50  ;;  %v2964_v19 = vpack.c.bf16 %v4062_v44, %v4062_v44  ;;  %v4074_v16 = vmul.f32 %v3314_v1, %v3894_v39 }
 0x129   : > { %v3318_v57 = vpop.eup %3317  ;;  %2194 = vst.msk [vmem:[%s3910_s23 + $0x24] sm:$0xf] %vm2184_vm2, %v2947_v53  ;;  %v2962_v28 = vpack.c.bf16 %v4067_v51, %v4067_v51  ;;  %v4081_v23 = vmul.f32 %v3316_v15, %v3901_v52  ;;  %3163 = vmatprep.mubr.msk.bf16.mxu0 %vm558_vm1, %v1545_v48  ;;  %v4154_v53 = vld [vmem:[%s4732_s6] ss:$0 sm:$0xff]  ;;  %v3123_v15 = vpop.f32.mrb[16].mxu1 }
 0x12a   : > { %v3320_v62 = vpop.eup %3319  ;;  %2211 = vst.msk [vmem:[%s3910_s23 + $0x68] sm:$0xf] %vm2184_vm2, %v2964_v19  ;;  %v1554_v39 = vpack.c.bf16 %v4074_v16, %v4062_v44  ;;  %v2965_v54 = vpack.c.bf16 %v4074_v16, %v4074_v16  ;;  %v1056_v47 = vmul.f32 %v3318_v57, %v3918_v6  ;;  %3164 = vmatmul.mubr.msk.bf16.gmra.mrb[24].mxu0 %vm558_vm1, %v1546_v49  ;;  %v4159_v19 = vld [vmem:[%s4733_s7] ss:$0 sm:$0xff]  ;;  %v1112_v56 = vpop.f32.mrb[17].mxu1 }
 0x12b   : > { %v3322_v63 = vpop.eup %3321  ;;  %2209 = vst.msk [vmem:[%s3910_s23 + $0x60] sm:$0xf] %vm2184_vm2, %v2962_v28  ;;  %v1553_v52 = vpack.c.bf16 %v4081_v23, %v4067_v51  ;;  %v2963_v2 = vpack.c.bf16 %v4081_v23, %v4081_v23  ;;  %v1054_v3 = vmul.f32 %v3320_v62, %v3944_v60  ;;  %v1248_v57 = vmul.f32 %v3123_v15, %v4154_v53 }
 0x12c   : > { %v3324_v58 = vpop.eup %3323  ;;  %2212 = vst.msk [vmem:[%s3910_s23 + $0x6c] sm:$0xf] %vm2184_vm2, %v2965_v54  ;;  %v2952_v4 = vpack.c.bf16 %v1056_v47, %v1056_v47  ;;  %v961_v6 = vadd.f32 1.0, %v3322_v63  ;;  %v1246_v37 = vmul.f32 %v4154_v53, %v1112_v56 }
 0x12d   : > { %v3326_v8 = vpop.eup %3325  ;;  %2210 = vst.msk [vmem:[%s3910_s23 + $0x64] sm:$0xf] %vm2184_vm2, %v2963_v2  ;;  %v2950_v13 = vpack.c.bf16 %v1054_v3, %v1054_v3  ;;  %v959_v14 = vadd.f32 1.0, %v3324_v58  ;;  %v4168_v28 = vadd.f32 %v4159_v19, %v1248_v57 }
 0x12e   : > { %v3328_v24 = vpop.eup %3327  ;;  %2199 = vst.msk [vmem:[%s3910_s23 + $0x38] sm:$0xf] %vm2184_vm2, %v2952_v4  ;;  %3333 = vrcp.f32 %v961_v6  ;;  %v976_v0 = vadd.f32 1.0, %v3326_v8 }
 0x12f   : > { %v3330_v20 = vpop.eup %3329  ;;  %2197 = vst.msk [vmem:[%s3910_s23 + $0x30] sm:$0xf] %vm2184_vm2, %v2950_v13  ;;  %3335 = vrcp.f32 %v959_v14  ;;  %v974_v60 = vadd.f32 1.0, %v3328_v24  ;;  %v2760_v40 = vmul.f32 -1.442695, %v4168_v28 }
 0x130   : > { %v3332_v11 = vpop.eup %3331  ;;  %3337 = vrcp.f32 %v976_v0  ;;  %v977_v9 = vadd.f32 1.0, %v3330_v20 }
 0x131   : > { %3339 = vrcp.f32 %v974_v60  ;;  %v975_v35 = vadd.f32 1.0, %v3332_v11 }
 0x132   : > { %3341 = vrcp.f32 %v977_v9 }
 0x133   : > { %3343 = vrcp.f32 %v975_v35 }
 0x134   : > { %3345 = vpow2.f32 %v2760_v40 }
 0x138   : > { %v3334_v21 = vpop.eup %3333 }
 0x139   : > { %v3336_v25 = vpop.eup %3335  ;;  %v1057_v42 = vmul.f32 %v3334_v21, %v4005_v26 }
 0x13a   : > { %v3338_v45 = vpop.eup %3337  ;;  %v1055_v29 = vmul.f32 %v3336_v25, %v4010_v55 }
 0x13b   : > { %v3340_v31 = vpop.eup %3339  ;;  %v1548_v41 = vpack.c.bf16 %v1057_v42, %v1056_v47  ;;  %v2953_v43 = vpack.c.bf16 %v1057_v42, %v1057_v42  ;;  %v4110_v46 = vmul.f32 %v3338_v45, %v4013_v36  ;;  %v4176_v47 = vadd.f32 %v4159_v19, %v1246_v37 }
 0x13c   : > { %v3342_v7 = vpop.eup %3341  ;;  %v1547_v38 = vpack.c.bf16 %v1055_v29, %v1054_v3  ;;  %v2951_v18 = vpack.c.bf16 %v1055_v29, %v1055_v29  ;;  %v4113_v49 = vmul.f32 %v3340_v31, %v4016_v61 }
 0x13d   : > { %v3344_v50 = vpop.eup %3343  ;;  %2200 = vst.msk [vmem:[%s3910_s23 + $0x3c] sm:$0xf] %vm2184_vm2, %v2953_v43  ;;  %v2968_v26 = vpack.c.bf16 %v4110_v46, %v4110_v46  ;;  %v4120_v55 = vmul.f32 %v3342_v7, %v4019_v22 }
 0x13e   : > { %2198 = vst.msk [vmem:[%s3910_s23 + $0x34] sm:$0xf] %vm2184_vm2, %v2951_v18  ;;  %v2966_v36 = vpack.c.bf16 %v4113_v49, %v4113_v49  ;;  %v4127_v1 = vmul.f32 %v3344_v50, %v4023_v30  ;;  %3167 = vmatprep.mubr.msk.bf16.mxu0 %vm558_vm1, %v1547_v38  ;;  %v3346_v60 = vpop.eup %3345 }
 0x13f   : > { %2215 = vst.msk [vmem:[%s3910_s23 + $0x78] sm:$0xf] %vm2184_vm2, %v2968_v26  ;;  %v1556_v61 = vpack.c.bf16 %v4120_v55, %v4110_v46  ;;  %v2969_v48 = vpack.c.bf16 %v4120_v55, %v4120_v55  ;;  %3168 = vmatmul.mubr.msk.bf16.gmra.mrb[28].mxu0 %vm558_vm1, %v1548_v41  ;;  %v1415_v21 = vadd.f32 1.0, %v3346_v60 }
 0x140   : > { %2213 = vst.msk [vmem:[%s3910_s23 + $0x70] sm:$0xf] %vm2184_vm2, %v2966_v36  ;;  %v1555_v22 = vpack.c.bf16 %v4127_v1, %v4113_v49  ;;  %v2967_v30 = vpack.c.bf16 %v4127_v1, %v4127_v1  ;;  %3171 = vmatprep.mubr.msk.bf16.mxu0 %vm558_vm1, %v1549_v32  ;;  %v3124_v32 = vpop.f32.mrb[18].mxu1 }
 0x141   : > { %2216 = vst.msk [vmem:[%s3910_s23 + $0x7c] sm:$0xf] %vm2184_vm2, %v2969_v48  ;;  %v1249_v62 = vmul.f32 %v3124_v32, %v4154_v53  ;;  %v1115_v54 = vpop.f32.mrb[19].mxu1 }
 0x142   : > { %2214 = vst.msk [vmem:[%s3910_s23 + $0x74] sm:$0xf] %vm2184_vm2, %v2967_v30  ;;  %v1247_v63 = vmul.f32 %v4154_v53, %v1115_v54 }
 0x143   : > { %v4181_v33 = vadd.f32 %v4159_v19, %v1249_v62 }
 0x144   : > { %v4185_v2 = vadd.f32 %v4159_v19, %v1247_v63 }
 0x145   : > { %v2761_v59 = vmul.f32 -1.442695, %v4181_v33 }
 0x146   : > { %v2759_v17 = vmul.f32 -1.442695, %v4185_v2 }
 0x147   : > { %3172 = vmatmul.mubr.msk.bf16.gmra.mrb[32].mxu0 %vm558_vm1, %v1550_v10  ;;  %v2758_v10 = vmul.f32 -1.442695, %v4176_v47 }
 0x148   : > { %3175 = vmatprep.mubr.msk.bf16.mxu0 %vm558_vm1, %v1551_v34  ;;  %v3127_v34 = vpop.f32.mrb[20].mxu1 }
 0x149   : > { %3347 = vpow2.f32 %v2758_v10  ;;  %v1252_v3 = vmul.f32 %v3127_v34, %v4154_v53  ;;  %v1128_v58 = vpop.f32.mrb[21].mxu1 }
 0x14a   : > { %3349 = vpow2.f32 %v2761_v59  ;;  %v1250_v4 = vmul.f32 %v4154_v53, %v1128_v58  ;;  %v3128_v6 = vpop.f32.mrb[22].mxu1 }
 0x14b   : > { %3351 = vpow2.f32 %v2759_v17  ;;  %v4196_v8 = vadd.f32 %v4159_v19, %v1252_v3  ;;  %v1253_v13 = vmul.f32 %v3128_v6, %v4154_v53  ;;  %v1131_v14 = vpop.f32.mrb[23].mxu1 }
 0x14c   : > { %v4204_v24 = vadd.f32 %v4159_v19, %v1250_v4  ;;  %v1251_v0 = vmul.f32 %v4154_v53, %v1131_v14 }
 0x14d   : > { %v2764_v5 = vmul.f32 -1.442695, %v4196_v8  ;;  %v4209_v12 = vadd.f32 %v4159_v19, %v1253_v13 }
 0x14e   : > { %v4213_v20 = vadd.f32 %v4159_v19, %v1251_v0 }
 0x14f   : > { %3176 = vmatmul.mubr.msk.bf16.gmra.mrb[36].mxu0 %vm558_vm1, %v1552_v27  ;;  %v2762_v27 = vmul.f32 -1.442695, %v4204_v24  ;;  %3353 = vpow2.f32 %v2764_v5  ;;  %v2765_v51 = vmul.f32 -1.442695, %v4209_v12 }
 0x150   : > { %3179 = vmatprep.mubr.msk.bf16.mxu0 %vm558_vm1, %v1553_v52  ;;  %v2763_v23 = vmul.f32 -1.442695, %v4213_v20  ;;  %v3131_v52 = vpop.f32.mrb[24].mxu1 }
 0x151   : > { %3355 = vpow2.f32 %v2762_v27  ;;  %v1256_v11 = vmul.f32 %v3131_v52, %v4154_v53  ;;  %v1144_v9 = vpop.f32.mrb[25].mxu1 }
 0x152   : > { %3357 = vpow2.f32 %v2765_v51  ;;  %v1254_v25 = vmul.f32 %v4154_v53, %v1144_v9  ;;  %v3132_v42 = vpop.f32.mrb[26].mxu1 }
 0x153   : > { %v3348_v35 = vpop.eup %3347  ;;  %3359 = vpow2.f32 %v2763_v23  ;;  %v4224_v31 = vadd.f32 %v4159_v19, %v1256_v11  ;;  %v1257_v41 = vmul.f32 %v3132_v42, %v4154_v53  ;;  %v1147_v43 = vpop.f32.mrb[27].mxu1 }
 0x154   : > { %v3350_v45 = vpop.eup %3349  ;;  %v1413_v29 = vadd.f32 1.0, %v3348_v35  ;;  %3361 = vrcp.f32 %v1415_v21  ;;  %v4232_v18 = vadd.f32 %v4159_v19, %v1254_v25  ;;  %v1255_v44 = vmul.f32 %v4154_v53, %v1147_v43  ;;  %v3135_v48 = vpop.f32.mrb[28].mxu1 }
 0x155   : > { %v3352_v7 = vpop.eup %3351  ;;  %v1416_v38 = vadd.f32 1.0, %v3350_v45  ;;  %v4237_v50 = vadd.f32 %v4159_v19, %v1257_v41  ;;  %v1260_v30 = vmul.f32 %v3135_v48, %v4154_v53  ;;  %v1160_v15 = vpop.f32.mrb[29].mxu1 }
 0x156   : > { %3363 = vrcp.f32 %v1413_v29  ;;  %v1414_v16 = vadd.f32 1.0, %v3352_v7  ;;  %v2766_v26 = vmul.f32 -1.442695, %v4232_v18  ;;  %v4241_v49 = vadd.f32 %v4159_v19, %v1255_v44  ;;  %v3136_v32 = vpop.f32.mrb[30].mxu1 }
 0x157   : > { %3180 = vmatmul.mubr.msk.bf16.gmra.mrb[40].mxu0 %vm558_vm1, %v1554_v39  ;;  %v2768_v39 = vmul.f32 -1.442695, %v4224_v31  ;;  %3365 = vrcp.f32 %v1416_v38  ;;  %v2769_v36 = vmul.f32 -1.442695, %v4237_v50  ;;  %v1258_v37 = vmul.f32 %v4154_v53, %v1160_v15  ;;  %v1163_v10 = vpop.f32.mrb[31].mxu1 }
 0x158   : > { %3183 = vmatprep.mubr.msk.bf16.mxu0 %vm558_vm1, %v1555_v22  ;;  %3367 = vrcp.f32 %v1414_v16  ;;  %v2767_v1 = vmul.f32 -1.442695, %v4241_v49  ;;  %v4252_v63 = vadd.f32 %v4159_v19, %v1260_v30  ;;  %v1261_v40 = vmul.f32 %v3136_v32, %v4154_v53 }
 0x159   : > { %3369 = vpow2.f32 %v2768_v39  ;;  %v3354_v22 = vpop.eup %3353  ;;  %v4256_v34 = vadd.f32 %v4159_v19, %v1258_v37  ;;  %v1259_v3 = vmul.f32 %v4154_v53, %v1163_v10 }
 0x15a   : > { %3371 = vpow2.f32 %v2766_v26  ;;  %v1419_v56 = vadd.f32 1.0, %v3354_v22  ;;  %v2772_v55 = vmul.f32 -1.442695, %v4252_v63 }
 0x15b   : > { %v3356_v57 = vpop.eup %3355  ;;  %3373 = vpow2.f32 %v2769_v36  ;;  %v2770_v4 = vmul.f32 -1.442695, %v4256_v34  ;;  %v4265_v6 = vadd.f32 %v4159_v19, %v1259_v3 }
 0x15c   : > { %v3358_v62 = vpop.eup %3357  ;;  %v1417_v54 = vadd.f32 1.0, %v3356_v57  ;;  %3375 = vpow2.f32 %v2767_v1 }
 0x15d   : > { %v3360_v59 = vpop.eup %3359  ;;  %3377 = vrcp.f32 %v1419_v56  ;;  %v1420_v17 = vadd.f32 1.0, %v3358_v62  ;;  %v2771_v51 = vmul.f32 -1.442695, %v4265_v6 }
 0x15e   : > { %3379 = vrcp.f32 %v1417_v54  ;;  %v1418_v46 = vadd.f32 1.0, %v3360_v59  ;;  %v3362_v58 = vpop.eup %3361 }
 0x15f   : > { %3184 = vmatmul.mubr.msk.bf16.gmra.mrb[44].mxu0 %vm558_vm1, %v1556_v61  ;;  %v4261_v61 = vadd.f32 %v4159_v19, %v1261_v40  ;;  %3381 = vrcp.f32 %v1420_v17  ;;  %v1511_v14 = vmul.f32 %v3362_v58, %v4168_v28 }
 0x160   : > { %v3364_v13 = vpop.eup %3363  ;;  %3383 = vrcp.f32 %v1418_v46 }
 0x161   : > { %v2773_v0 = vmul.f32 -1.442695, %v4261_v61  ;;  %v3366_v5 = vpop.eup %3365  ;;  %v1509_v27 = vmul.f32 %v3364_v13, %v4176_v47  ;;  %3385 = vpow2.f32 %v2772_v55  ;;  %v2972_v52 = vpack.c.bf16 %v1511_v14, %v1511_v14 }
 0x162   : > { %v3368_v23 = vpop.eup %3367  ;;  %v1512_v28 = vmul.f32 %v3366_v5, %v4181_v33  ;;  %3387 = vpow2.f32 %v2770_v4  ;;  %v3139_v5 = vpop.f32.mrb[32].mxu1 }
 0x163   : > { %v3370_v60 = vpop.eup %3369  ;;  %v2970_v11 = vpack.c.bf16 %v1509_v27, %v1509_v27  ;;  %v1510_v9 = vmul.f32 %v3368_v23, %v4185_v2  ;;  %3389 = vpow2.f32 %v2773_v0  ;;  %2347 = vst.msk [vmem:[%s4273_s13 + $0x8] sm:$0xf] %vm2184_vm2, %v2972_v52  ;;  %v1176_v23 = vpop.f32.mrb[33].mxu1 }
 0x164   : > { %v3372_v35 = vpop.eup %3371  ;;  %v2973_v47 = vpack.c.bf16 %v1512_v28, %v1512_v28  ;;  %v1423_v21 = vadd.f32 1.0, %v3370_v60  ;;  %3391 = vpow2.f32 %v2771_v51  ;;  %v3140_v28 = vpop.f32.mrb[34].mxu1 }
 0x165   : > { %v3374_v25 = vpop.eup %3373  ;;  %2345 = vst.msk [vmem:[%s4273_s13] sm:$0xf] %vm2184_vm2, %v2970_v11  ;;  %v2971_v42 = vpack.c.bf16 %v1510_v9, %v1510_v9  ;;  %v1421_v45 = vadd.f32 1.0, %v3372_v35  ;;  %v1179_v60 = vpop.f32.mrb[35].mxu1  ;;  %v1265_v11 = vmul.f32 %v3140_v28, %v4154_v53 }
 0x166   : > { %v3376_v33 = vpop.eup %3375  ;;  %2348 = vst.msk [vmem:[%s4273_s13 + $0xc] sm:$0xf] %vm2184_vm2, %v2973_v47  ;;  %3393 = vrcp.f32 %v1423_v21  ;;  %v1424_v29 = vadd.f32 1.0, %v3374_v25  ;;  %v1263_v9 = vmul.f32 %v4154_v53, %v1179_v60 }
 0x167   : > { %v3378_v41 = vpop.eup %3377  ;;  %2346 = vst.msk [vmem:[%s4273_s13 + $0x4] sm:$0xf] %vm2184_vm2, %v2971_v42  ;;  %3395 = vrcp.f32 %v1421_v45  ;;  %v1422_v2 = vadd.f32 1.0, %v3376_v33  ;;  %v4334_v47 = vadd.f32 %v4159_v19, %v1265_v11 }
 0x168   : > { %v3380_v43 = vpop.eup %3379  ;;  %v1515_v7 = vmul.f32 %v3378_v41, %v4196_v8  ;;  %3397 = vrcp.f32 %v1424_v29  ;;  %v4337_v21 = vadd.f32 %v4159_v19, %v1263_v9  ;;  %v3143_v29 = vpop.f32.mrb[36].mxu1 }
 0x169   : > { %v3382_v38 = vpop.eup %3381  ;;  %v1513_v44 = vmul.f32 %v3380_v43, %v4204_v24  ;;  %3399 = vrcp.f32 %v1422_v2  ;;  %v2777_v45 = vmul.f32 -1.442695, %v4334_v47  ;;  %v1192_v41 = vpop.f32.mrb[37].mxu1  ;;  %v1268_v43 = vmul.f32 %v3143_v29, %v4154_v53 }
 0x16a   : > { %v3384_v16 = vpop.eup %3383  ;;  %v2976_v39 = vpack.c.bf16 %v1515_v7, %v1515_v7  ;;  %v1516_v26 = vmul.f32 %v3382_v38, %v4209_v12  ;;  %v2775_v33 = vmul.f32 -1.442695, %v4337_v21  ;;  %v3144_v2 = vpop.f32.mrb[38].mxu1  ;;  %v1266_v7 = vmul.f32 %v4154_v53, %v1192_v41 }
 0x16b   : > { %v3386_v36 = vpop.eup %3385  ;;  %v2974_v1 = vpack.c.bf16 %v1513_v44, %v1513_v44  ;;  %v1514_v48 = vmul.f32 %v3384_v16, %v4213_v20  ;;  %v1269_v38 = vmul.f32 %v3144_v2, %v4154_v53  ;;  %v1195_v44 = vpop.f32.mrb[39].mxu1 }
 0x16c   : > { %v3388_v22 = vpop.eup %3387  ;;  %2351 = vst.msk [vmem:[%s4273_s13 + $0x18] sm:$0xf] %vm2184_vm2, %v2976_v39  ;;  %v2977_v8 = vpack.c.bf16 %v1516_v26, %v1516_v26  ;;  %v1427_v30 = vadd.f32 1.0, %v3386_v36  ;;  %v1267_v16 = vmul.f32 %v4154_v53, %v1195_v44  ;;  %v4348_v39 = vadd.f32 %v4159_v19, %v1268_v43 }
 0x16d   : > { %v3390_v15 = vpop.eup %3389  ;;  %2349 = vst.msk [vmem:[%s4273_s13 + $0x10] sm:$0xf] %vm2184_vm2, %v2974_v1  ;;  %v2975_v24 = vpack.c.bf16 %v1514_v48, %v1514_v48  ;;  %v1425_v57 = vadd.f32 1.0, %v3388_v22  ;;  %v4351_v26 = vadd.f32 %v4159_v19, %v1266_v7  ;;  %v4354_v36 = vadd.f32 %v4159_v19, %v1269_v38 }
 0x16e   : > { %v3392_v56 = vpop.eup %3391  ;;  %2352 = vst.msk [vmem:[%s4273_s13 + $0x1c] sm:$0xf] %vm2184_vm2, %v2977_v8  ;;  %3401 = vrcp.f32 %v1427_v30  ;;  %v1428_v12 = vadd.f32 1.0, %v3390_v15  ;;  %v4357_v1 = vadd.f32 %v4159_v19, %v1267_v16  ;;  %v2780_v48 = vmul.f32 -1.442695, %v4348_v39  ;;  %v3147_v15 = vpop.f32.mrb[40].mxu1 }
 0x16f   : > { %2350 = vst.msk [vmem:[%s4273_s13 + $0x14] sm:$0xf] %vm2184_vm2, %v2975_v24  ;;  %3403 = vrcp.f32 %v1425_v57  ;;  %v1426_v20 = vadd.f32 1.0, %v3392_v56  ;;  %v2778_v22 = vmul.f32 -1.442695, %v4351_v26  ;;  %v1208_v24 = vpop.f32.mrb[41].mxu1 }
 0x170   : > { %v3394_v37 = vpop.eup %3393  ;;  %3405 = vrcp.f32 %v1428_v12  ;;  %v2781_v8 = vmul.f32 -1.442695, %v4354_v36  ;;  %v2779_v30 = vmul.f32 -1.442695, %v4357_v1  ;;  %v3148_v57 = vpop.f32.mrb[42].mxu1  ;;  %v1272_v12 = vmul.f32 %v3147_v15, %v4154_v53 }
 0x171   : > { %v3396_v32 = vpop.eup %3395  ;;  %v1519_v62 = vmul.f32 %v3394_v37, %v4224_v31  ;;  %3407 = vrcp.f32 %v1426_v20  ;;  %v1270_v20 = vmul.f32 %v4154_v53, %v1208_v24  ;;  %v1273_v37 = vmul.f32 %v3148_v57, %v4154_v53 }
 0x172   : > { %v3398_v54 = vpop.eup %3397  ;;  %v1517_v40 = vmul.f32 %v3396_v32, %v4232_v18  ;;  %v1211_v32 = vpop.f32.mrb[43].mxu1 }
 0x173   : > { %v3400_v10 = vpop.eup %3399  ;;  %v2980_v59 = vpack.c.bf16 %v1519_v62, %v1519_v62  ;;  %v1520_v17 = vmul.f32 %v3398_v54, %v4237_v50 }
 0x174   : > { %v2978_v3 = vpack.c.bf16 %v1517_v40, %v1517_v40  ;;  %v1518_v46 = vmul.f32 %v3400_v10, %v4241_v49  ;;  %v1271_v40 = vmul.f32 %v4154_v53, %v1211_v32 }
 0x175   : > { %2355 = vst.msk [vmem:[%s4273_s13 + $0x28] sm:$0xf] %vm2184_vm2, %v2980_v59  ;;  %v2981_v55 = vpack.c.bf16 %v1520_v17, %v1520_v17  ;;  %v4368_v17 = vadd.f32 %v4159_v19, %v1272_v12 }
 0x176   : > { %2353 = vst.msk [vmem:[%s4273_s13 + $0x20] sm:$0xf] %vm2184_vm2, %v2978_v3  ;;  %v2979_v58 = vpack.c.bf16 %v1518_v46, %v1518_v46  ;;  %v4371_v3 = vadd.f32 %v4159_v19, %v1270_v20  ;;  %v4374_v46 = vadd.f32 %v4159_v19, %v1273_v37 }
 0x177   : > { %2356 = vst.msk [vmem:[%s4273_s13 + $0x2c] sm:$0xf] %vm2184_vm2, %v2981_v55 }
 0x178   : > { %v3402_v31 = vpop.eup %3401  ;;  %2354 = vst.msk [vmem:[%s4273_s13 + $0x24] sm:$0xf] %vm2184_vm2, %v2979_v58 }
 0x179   : > { %v3404_v18 = vpop.eup %3403  ;;  %v1523_v4 = vmul.f32 %v3402_v31, %v4252_v63  ;;  %v4377_v31 = vadd.f32 %v4159_v19, %v1271_v40 }
 0x17a   : > { %v3406_v50 = vpop.eup %3405  ;;  %v1521_v49 = vmul.f32 %v3404_v18, %v4256_v34  ;;  %v1264_v34 = vmul.f32 %v3139_v5, %v4154_v53 }
 0x17b   : > { %v3408_v13 = vpop.eup %3407  ;;  %v2984_v14 = vpack.c.bf16 %v1523_v4, %v1523_v4  ;;  %v1524_v0 = vmul.f32 %v3406_v50, %v4261_v61  ;;  %v1262_v61 = vmul.f32 %v4154_v53, %v1176_v23  ;;  %v2784_v4 = vmul.f32 -1.442695, %v4368_v17 }
 0x17c   : > { %v2982_v27 = vpack.c.bf16 %v1521_v49, %v1521_v49  ;;  %v1522_v51 = vmul.f32 %v3408_v13, %v4265_v6  ;;  %v4328_v6 = vadd.f32 %v4159_v19, %v1264_v34  ;;  %v2782_v50 = vmul.f32 -1.442695, %v4371_v3  ;;  %v3151_v49 = vpop.f32.mrb[44].mxu1 }
 0x17d   : > { %2359 = vst.msk [vmem:[%s4273_s13 + $0x38] sm:$0xf] %vm2184_vm2, %v2984_v14  ;;  %v2985_v52 = vpack.c.bf16 %v1524_v0, %v1524_v0  ;;  %v4331_v35 = vadd.f32 %v4159_v19, %v1262_v61  ;;  %v2785_v13 = vmul.f32 -1.442695, %v4374_v46  ;;  %v1224_v14 = vpop.f32.mrb[45].mxu1  ;;  %v1276_v23 = vmul.f32 %v3151_v49, %v4154_v53 }
 0x17e   : > { %2357 = vst.msk [vmem:[%s4273_s13 + $0x30] sm:$0xf] %vm2184_vm2, %v2982_v27  ;;  %v2983_v63 = vpack.c.bf16 %v1522_v51, %v1522_v51  ;;  %v2776_v25 = vmul.f32 -1.442695, %v4328_v6  ;;  %v2783_v0 = vmul.f32 -1.442695, %v4377_v31 }
 0x17f   : > { %2360 = vst.msk [vmem:[%s4273_s13 + $0x3c] sm:$0xf] %vm2184_vm2, %v2985_v52  ;;  %v2774_v42 = vmul.f32 -1.442695, %v4331_v35  ;;  %v3152_v5 = vpop.f32.mrb[46].mxu1  ;;  %v1274_v52 = vmul.f32 %v4154_v53, %v1224_v14  ;;  %v4388_v9 = vadd.f32 %v4159_v19, %v1276_v23 }
 0x180   : > { %2358 = vst.msk [vmem:[%s4273_s13 + $0x34] sm:$0xf] %vm2184_vm2, %v2983_v63  ;;  %3409 = vpow2.f32 %v2776_v25  ;;  %v1227_v27 = vpop.f32.mrb[47].mxu1  ;;  %v1277_v28 = vmul.f32 %v3152_v5, %v4154_v53 }
 0x181   : > { %3411 = vpow2.f32 %v2774_v42  ;;  %v1275_v34 = vmul.f32 %v4154_v53, %v1227_v27  ;;  %v4391_v25 = vadd.f32 %v4159_v19, %v1274_v52  ;;  %v2788_v41 = vmul.f32 -1.442695, %v4388_v9 }
 0x182   : > { %3413 = vpow2.f32 %v2777_v45 }
 0x183   : > { %3415 = vpow2.f32 %v2775_v33  ;;  %v4394_v33 = vadd.f32 %v4159_v19, %v1277_v28  ;;  %v4397_v29 = vadd.f32 %v4159_v19, %v1275_v34  ;;  %v2786_v2 = vmul.f32 -1.442695, %v4391_v25 }
 0x184   : > { %3417 = vpow2.f32 %v2780_v48 }
 0x185   : > { %3419 = vpow2.f32 %v2778_v22  ;;  %v2789_v7 = vmul.f32 -1.442695, %v4394_v33  ;;  %v2787_v16 = vmul.f32 -1.442695, %v4397_v29 }
 0x186   : > { %3421 = vpow2.f32 %v2781_v8 }
 0x187   : > { %3423 = vpow2.f32 %v2779_v30 }
 0x18a   : > { %v3410_v56 = vpop.eup %3409 }
 0x18b   : > { %v3412_v62 = vpop.eup %3411  ;;  %v1431_v54 = vadd.f32 1.0, %v3410_v56 }
 0x18c   : > { %v3414_v10 = vpop.eup %3413  ;;  %v1429_v59 = vadd.f32 1.0, %v3412_v62 }
 0x18d   : > { %v3416_v55 = vpop.eup %3415  ;;  %3425 = vrcp.f32 %v1431_v54  ;;  %v1432_v58 = vadd.f32 1.0, %v3414_v10 }
 0x18e   : > { %3427 = vrcp.f32 %v1429_v59  ;;  %v1430_v18 = vadd.f32 1.0, %v3416_v55  ;;  %v3418_v51 = vpop.eup %3417 }
 0x18f   : > { %3429 = vrcp.f32 %v1432_v58  ;;  %v3420_v63 = vpop.eup %3419  ;;  %v1435_v60 = vadd.f32 1.0, %v3418_v51 }
 0x190   : > { %3431 = vrcp.f32 %v1430_v18  ;;  %v3422_v61 = vpop.eup %3421  ;;  %v1433_v11 = vadd.f32 1.0, %v3420_v63 }
 0x191   : > { %3433 = vpow2.f32 %v2784_v4  ;;  %v3424_v42 = vpop.eup %3423  ;;  %v1436_v45 = vadd.f32 1.0, %v3422_v61 }
 0x192   : > { %3435 = vpow2.f32 %v2782_v50  ;;  %v1434_v53 = vadd.f32 1.0, %v3424_v42 }
 0x193   : > { %3437 = vpow2.f32 %v2785_v13 }
 0x194   : > { %3439 = vpow2.f32 %v2783_v0 }
 0x195   : > { %3441 = vrcp.f32 %v1435_v60 }
 0x196   : > { %3443 = vrcp.f32 %v1433_v11 }
 0x197   : > { %v3426_v43 = vpop.eup %3425  ;;  %3445 = vrcp.f32 %v1436_v45 }
 0x198   : > { %v3428_v38 = vpop.eup %3427  ;;  %v1527_v44 = vmul.f32 %v3426_v43, %v4328_v6  ;;  %3447 = vrcp.f32 %v1434_v53 }
 0x199   : > { %v3430_v48 = vpop.eup %3429  ;;  %v1525_v19 = vmul.f32 %v3428_v38, %v4331_v35  ;;  %3449 = vpow2.f32 %v2788_v41 }
 0x19a   : > { %v3432_v22 = vpop.eup %3431  ;;  %v2988_v8 = vpack.c.bf16 %v1527_v44, %v1527_v44  ;;  %v1528_v30 = vmul.f32 %v3430_v48, %v4334_v47  ;;  %3451 = vpow2.f32 %v2786_v2 }
 0x19b   : > { %v3434_v15 = vpop.eup %3433  ;;  %v2986_v24 = vpack.c.bf16 %v1525_v19, %v1525_v19  ;;  %v1526_v57 = vmul.f32 %v3432_v22, %v4337_v21  ;;  %3453 = vpow2.f32 %v2789_v7 }
 0x19c   : > { %v3436_v6 = vpop.eup %3435  ;;  %2363 = vst.msk [vmem:[%s4273_s13 + $0x48] sm:$0xf] %vm2184_vm2, %v2988_v8  ;;  %v2989_v56 = vpack.c.bf16 %v1528_v30, %v1528_v30  ;;  %v1439_v12 = vadd.f32 1.0, %v3434_v15  ;;  %3455 = vpow2.f32 %v2787_v16 }
 0x19d   : > { %v3438_v35 = vpop.eup %3437  ;;  %2361 = vst.msk [vmem:[%s4273_s13 + $0x40] sm:$0xf] %vm2184_vm2, %v2986_v24  ;;  %v2987_v20 = vpack.c.bf16 %v1526_v57, %v1526_v57  ;;  %v1437_v37 = vadd.f32 1.0, %v3436_v6 }
 0x19e   : > { %v3440_v47 = vpop.eup %3439  ;;  %2364 = vst.msk [vmem:[%s4273_s13 + $0x4c] sm:$0xf] %vm2184_vm2, %v2989_v56  ;;  %3457 = vrcp.f32 %v1439_v12  ;;  %v1440_v32 = vadd.f32 1.0, %v3438_v35 }
 0x19f   : > { %v3442_v62 = vpop.eup %3441  ;;  %2362 = vst.msk [vmem:[%s4273_s13 + $0x44] sm:$0xf] %vm2184_vm2, %v2987_v20  ;;  %3459 = vrcp.f32 %v1437_v37  ;;  %v1438_v21 = vadd.f32 1.0, %v3440_v47 }
 0x1a0   : > { %v3444_v54 = vpop.eup %3443  ;;  %v1531_v40 = vmul.f32 %v3442_v62, %v4348_v39  ;;  %3461 = vrcp.f32 %v1440_v32 }
 0x1a1   : > { %v3446_v10 = vpop.eup %3445  ;;  %v1529_v59 = vmul.f32 %v3444_v54, %v4351_v26  ;;  %3463 = vrcp.f32 %v1438_v21 }
 0x1a2   : > { %v3448_v55 = vpop.eup %3447  ;;  %v2992_v58 = vpack.c.bf16 %v1531_v40, %v1531_v40  ;;  %v1532_v18 = vmul.f32 %v3446_v10, %v4354_v36 }
 0x1a3   : > { %v3450_v4 = vpop.eup %3449  ;;  %v2990_v50 = vpack.c.bf16 %v1529_v59, %v1529_v59  ;;  %v1530_v49 = vmul.f32 %v3448_v55, %v4357_v1 }
 0x1a4   : > { %v3452_v13 = vpop.eup %3451  ;;  %2367 = vst.msk [vmem:[%s4273_s13 + $0x58] sm:$0xf] %vm2184_vm2, %v2992_v58  ;;  %v2993_v39 = vpack.c.bf16 %v1532_v18, %v1532_v18  ;;  %v1443_v14 = vadd.f32 1.0, %v3450_v4 }
 0x1a5   : > { %v3454_v0 = vpop.eup %3453  ;;  %2365 = vst.msk [vmem:[%s4273_s13 + $0x50] sm:$0xf] %vm2184_vm2, %v2990_v50  ;;  %v2991_v26 = vpack.c.bf16 %v1530_v49, %v1530_v49  ;;  %v1441_v5 = vadd.f32 1.0, %v3452_v13 }
 0x1a6   : > { %v3456_v27 = vpop.eup %3455  ;;  %2368 = vst.msk [vmem:[%s4273_s13 + $0x5c] sm:$0xf] %vm2184_vm2, %v2993_v39  ;;  %3465 = vrcp.f32 %v1443_v14  ;;  %v1444_v36 = vadd.f32 1.0, %v3454_v0 }
 0x1a7   : > { %2366 = vst.msk [vmem:[%s4273_s13 + $0x54] sm:$0xf] %vm2184_vm2, %v2991_v26  ;;  %3467 = vrcp.f32 %v1441_v5  ;;  %v1442_v1 = vadd.f32 1.0, %v3456_v27 }
 0x1a8   : > { %v3458_v51 = vpop.eup %3457  ;;  %3469 = vrcp.f32 %v1444_v36 }
 0x1a9   : > { %v3460_v23 = vpop.eup %3459  ;;  %v1535_v52 = vmul.f32 %v3458_v51, %v4368_v17  ;;  %3471 = vrcp.f32 %v1442_v1 }
 0x1aa   : > { %v3462_v28 = vpop.eup %3461  ;;  %v1533_v63 = vmul.f32 %v3460_v23, %v4371_v3 }
 0x1ab   : > { %v3464_v60 = vpop.eup %3463  ;;  %v2996_v34 = vpack.c.bf16 %v1535_v52, %v1535_v52  ;;  %v1536_v61 = vmul.f32 %v3462_v28, %v4374_v46 }
 0x1ac   : > { %v2994_v11 = vpack.c.bf16 %v1533_v63, %v1533_v63  ;;  %v1534_v42 = vmul.f32 %v3464_v60, %v4377_v31 }
 0x1ad   : > { %2371 = vst.msk [vmem:[%s4273_s13 + $0x68] sm:$0xf] %vm2184_vm2, %v2996_v34  ;;  %v2997_v45 = vpack.c.bf16 %v1536_v61, %v1536_v61 }
 0x1ae   : > { %2369 = vst.msk [vmem:[%s4273_s13 + $0x60] sm:$0xf] %vm2184_vm2, %v2994_v11  ;;  %v2995_v53 = vpack.c.bf16 %v1534_v42, %v1534_v42 }
 0x1af   : > { %2372 = vst.msk [vmem:[%s4273_s13 + $0x6c] sm:$0xf] %vm2184_vm2, %v2997_v45 }
 0x1b0   : > { %v3466_v17 = vpop.eup %3465  ;;  %2370 = vst.msk [vmem:[%s4273_s13 + $0x64] sm:$0xf] %vm2184_vm2, %v2995_v53 }
 0x1b1   : > { %v3468_v3 = vpop.eup %3467  ;;  %v1539_v46 = vmul.f32 %v3466_v17, %v4388_v9  ;;  %v4454_v9 = vld [vmem:[%s4734_s8] ss:$0 sm:$0xff] }
 0x1b2   : > { %v3470_v41 = vpop.eup %3469  ;;  %v1537_v31 = vmul.f32 %v3468_v3, %v4391_v25 }
 0x1b3   : > { %v3472_v2 = vpop.eup %3471  ;;  %v3000_v43 = vpack.c.bf16 %v1539_v46, %v1539_v46  ;;  %v1540_v7 = vmul.f32 %v3470_v41, %v4394_v33  ;;  %v4459_v33 = vld [vmem:[%s4735_s9] ss:$0 sm:$0xff] }
 0x1b4   : > { %v2998_v38 = vpack.c.bf16 %v1537_v31, %v1537_v31  ;;  %v1538_v44 = vmul.f32 %v3472_v2, %v4397_v29 }
 0x1b5   : > { %2375 = vst.msk [vmem:[%s4273_s13 + $0x78] sm:$0xf] %vm2184_vm2, %v3000_v43  ;;  %v3001_v16 = vpack.c.bf16 %v1540_v7, %v1540_v7 }
 0x1b6   : > { %2373 = vst.msk [vmem:[%s4273_s13 + $0x70] sm:$0xf] %vm2184_vm2, %v2998_v38  ;;  %v2999_v48 = vpack.c.bf16 %v1538_v44, %v1538_v44 }
 0x1b7   : > { %2376 = vst.msk [vmem:[%s4273_s13 + $0x7c] sm:$0xf] %vm2184_vm2, %v3001_v16 }
 0x1b8   : > { %2374 = vst.msk [vmem:[%s4273_s13 + $0x74] sm:$0xf] %vm2184_vm2, %v2999_v48 }
 0x1e0   : > { %v3157_v25 = vpop.f32.mrb[16].mxu0 }
 0x1e1   : > { %v1779_v29 = vmul.f32 %v3157_v25, %v4454_v9  ;;  %v1643_v19 = vpop.f32.mrb[17].mxu0 }
 0x1e2   : > { %v1777_v22 = vmul.f32 %v4454_v9, %v1643_v19  ;;  %v3158_v8 = vpop.f32.mrb[18].mxu0 }
 0x1e3   : > { %v4464_v30 = vadd.f32 %v4459_v33, %v1779_v29  ;;  %v1780_v15 = vmul.f32 %v3158_v8, %v4454_v9  ;;  %v1646_v24 = vpop.f32.mrb[19].mxu0 }
 0x1e4   : > { %v4468_v57 = vadd.f32 %v4459_v33, %v1777_v22  ;;  %v1778_v6 = vmul.f32 %v4454_v9, %v1646_v24 }
 0x1e5   : > { %v2810_v56 = vmul.f32 -1.442695, %v4464_v30  ;;  %v4473_v12 = vadd.f32 %v4459_v33, %v1780_v15 }
 0x1e6   : > { %v2808_v35 = vmul.f32 -1.442695, %v4468_v57  ;;  %v4477_v20 = vadd.f32 %v4459_v33, %v1778_v6 }
 0x1e7   : > { %3473 = vpow2.f32 %v2810_v56  ;;  %v2811_v37 = vmul.f32 -1.442695, %v4473_v12 }
 0x1e8   : > { %3475 = vpow2.f32 %v2808_v35  ;;  %v2809_v47 = vmul.f32 -1.442695, %v4477_v20  ;;  %v3161_v32 = vpop.f32.mrb[20].mxu0 }
 0x1e9   : > { %3477 = vpow2.f32 %v2811_v37  ;;  %v1783_v62 = vmul.f32 %v3161_v32, %v4454_v9  ;;  %v1659_v21 = vpop.f32.mrb[21].mxu0 }
 0x1ea   : > { %3479 = vpow2.f32 %v2809_v47  ;;  %v1781_v54 = vmul.f32 %v4454_v9, %v1659_v21  ;;  %v3162_v40 = vpop.f32.mrb[22].mxu0 }
 0x1eb   : > { %v4484_v10 = vadd.f32 %v4459_v33, %v1783_v62  ;;  %v1784_v59 = vmul.f32 %v3162_v40, %v4454_v9  ;;  %v1662_v55 = vpop.f32.mrb[23].mxu0 }
 0x1ec   : > { %v4488_v58 = vadd.f32 %v4459_v33, %v1781_v54  ;;  %v1782_v18 = vmul.f32 %v4454_v9, %v1662_v55 }
 0x1ed   : > { %v2814_v4 = vmul.f32 -1.442695, %v4484_v10  ;;  %v4493_v50 = vadd.f32 %v4459_v33, %v1784_v59 }
 0x1ee   : > { %v2812_v49 = vmul.f32 -1.442695, %v4488_v58  ;;  %v4497_v13 = vadd.f32 %v4459_v33, %v1782_v18 }
 0x1ef   : > { %3481 = vpow2.f32 %v2814_v4  ;;  %v2815_v39 = vmul.f32 -1.442695, %v4493_v50 }
 0x1f0   : > { %3483 = vpow2.f32 %v2812_v49  ;;  %v2813_v14 = vmul.f32 -1.442695, %v4497_v13 }
 0x1f1   : > { %v3474_v0 = vpop.eup %3473  ;;  %3485 = vpow2.f32 %v2815_v39 }
 0x1f2   : > { %v3476_v26 = vpop.eup %3475  ;;  %v1946_v5 = vadd.f32 1.0, %v3474_v0  ;;  %3487 = vpow2.f32 %v2813_v14 }
 0x1f3   : > { %v3478_v27 = vpop.eup %3477  ;;  %v1944_v36 = vadd.f32 1.0, %v3476_v26 }
 0x1f4   : > { %v3480_v1 = vpop.eup %3479  ;;  %3489 = vrcp.f32 %v1946_v5  ;;  %v1947_v51 = vadd.f32 1.0, %v3478_v27 }
 0x1f5   : > { %3491 = vrcp.f32 %v1944_v36  ;;  %v1945_v23 = vadd.f32 1.0, %v3480_v1 }
 0x1f6   : > { %3493 = vrcp.f32 %v1947_v51 }
 0x1f7   : > { %3495 = vrcp.f32 %v1945_v23 }
 0x1f9   : > { %v3482_v52 = vpop.eup %3481 }
 0x1fa   : > { %v3484_v28 = vpop.eup %3483  ;;  %v1950_v63 = vadd.f32 1.0, %v3482_v52 }
 0x1fb   : > { %v3486_v60 = vpop.eup %3485  ;;  %v1948_v34 = vadd.f32 1.0, %v3484_v28 }
 0x1fc   : > { %v3488_v61 = vpop.eup %3487  ;;  %3497 = vrcp.f32 %v1950_v63  ;;  %v1951_v11 = vadd.f32 1.0, %v3486_v60 }
 0x1fd   : > { %3499 = vrcp.f32 %v1948_v34  ;;  %v1949_v42 = vadd.f32 1.0, %v3488_v61  ;;  %v3165_v45 = vpop.f32.mrb[24].mxu0 }
 0x1fe   : > { %v3490_v53 = vpop.eup %3489  ;;  %3501 = vrcp.f32 %v1951_v11  ;;  %v1787_v17 = vmul.f32 %v3165_v45, %v4454_v9  ;;  %v1675_v3 = vpop.f32.mrb[25].mxu0 }
 0x1ff   : > { %v3492_v46 = vpop.eup %3491  ;;  %v2042_v41 = vmul.f32 %v3490_v53, %v4464_v30  ;;  %3503 = vrcp.f32 %v1949_v42  ;;  %v1785_v31 = vmul.f32 %v4454_v9, %v1675_v3  ;;  %v3166_v2 = vpop.f32.mrb[26].mxu0 }
 0x200   : > { %v3494_v43 = vpop.eup %3493  ;;  %v2040_v7 = vmul.f32 %v3492_v46, %v4468_v57  ;;  %v4512_v38 = vadd.f32 %v4459_v33, %v1787_v17  ;;  %v1788_v44 = vmul.f32 %v3166_v2, %v4454_v9  ;;  %v1678_v16 = vpop.f32.mrb[27].mxu0 }
 0x201   : > { %v3496_v48 = vpop.eup %3495  ;;  %v3004_v25 = vpack.c.bf16 %v2042_v41, %v2042_v41  ;;  %v2043_v29 = vmul.f32 %v3494_v43, %v4473_v12  ;;  %v4517_v19 = vadd.f32 %v4459_v33, %v1785_v31  ;;  %v1786_v22 = vmul.f32 %v4454_v9, %v1678_v16 }
 0x202   : > { %v3002_v8 = vpack.c.bf16 %v2040_v7, %v2040_v7  ;;  %v2041_v30 = vmul.f32 %v3496_v48, %v4477_v20  ;;  %v2818_v15 = vmul.f32 -1.442695, %v4512_v38  ;;  %v4523_v24 = vadd.f32 %v4459_v33, %v1788_v44 }
 0x203   : > { %2507 = vst.msk [vmem:[%s4508_s20 + $0x8] sm:$0xf] %vm2184_vm2, %v3004_v25  ;;  %v3005_v57 = vpack.c.bf16 %v2043_v29, %v2043_v29  ;;  %v2816_v6 = vmul.f32 -1.442695, %v4517_v19  ;;  %v4529_v56 = vadd.f32 %v4459_v33, %v1786_v22 }
 0x204   : > { %2505 = vst.msk [vmem:[%s4508_s20] sm:$0xf] %vm2184_vm2, %v3002_v8  ;;  %v3003_v12 = vpack.c.bf16 %v2041_v30, %v2041_v30  ;;  %3505 = vpow2.f32 %v2818_v15  ;;  %v2819_v35 = vmul.f32 -1.442695, %v4523_v24 }
 0x205   : > { %2508 = vst.msk [vmem:[%s4508_s20 + $0xc] sm:$0xf] %vm2184_vm2, %v3005_v57  ;;  %3507 = vpow2.f32 %v2816_v6  ;;  %v2817_v20 = vmul.f32 -1.442695, %v4529_v56 }
 0x206   : > { %v3498_v37 = vpop.eup %3497  ;;  %2506 = vst.msk [vmem:[%s4508_s20 + $0x4] sm:$0xf] %vm2184_vm2, %v3003_v12  ;;  %3509 = vpow2.f32 %v2819_v35 }
 0x207   : > { %v3500_v47 = vpop.eup %3499  ;;  %v2046_v32 = vmul.f32 %v3498_v37, %v4484_v10  ;;  %3511 = vpow2.f32 %v2817_v20 }
 0x208   : > { %v3502_v62 = vpop.eup %3501  ;;  %v2044_v21 = vmul.f32 %v3500_v47, %v4488_v58 }
 0x209   : > { %v3504_v54 = vpop.eup %3503  ;;  %v3008_v40 = vpack.c.bf16 %v2046_v32, %v2046_v32  ;;  %v2047_v59 = vmul.f32 %v3502_v62, %v4493_v50 }
 0x20a   : > { %v3006_v55 = vpack.c.bf16 %v2044_v21, %v2044_v21  ;;  %v2045_v18 = vmul.f32 %v3504_v54, %v4497_v13 }
 0x20b   : > { %2511 = vst.msk [vmem:[%s4508_s20 + $0x18] sm:$0xf] %vm2184_vm2, %v3008_v40  ;;  %v3009_v4 = vpack.c.bf16 %v2047_v59, %v2047_v59 }
 0x20c   : > { %2509 = vst.msk [vmem:[%s4508_s20 + $0x10] sm:$0xf] %vm2184_vm2, %v3006_v55  ;;  %v3007_v49 = vpack.c.bf16 %v2045_v18, %v2045_v18 }
 0x20d   : > { %2512 = vst.msk [vmem:[%s4508_s20 + $0x1c] sm:$0xf] %vm2184_vm2, %v3009_v4 }
 0x20e   : > { %v3506_v10 = vpop.eup %3505  ;;  %2510 = vst.msk [vmem:[%s4508_s20 + $0x14] sm:$0xf] %vm2184_vm2, %v3007_v49 }
 0x20f   : > { %v3508_v39 = vpop.eup %3507  ;;  %v1954_v58 = vadd.f32 1.0, %v3506_v10 }
 0x210   : > { %v3510_v14 = vpop.eup %3509  ;;  %v1952_v0 = vadd.f32 1.0, %v3508_v39 }
 0x211   : > { %v3512_v26 = vpop.eup %3511  ;;  %3513 = vrcp.f32 %v1954_v58  ;;  %v1955_v50 = vadd.f32 1.0, %v3510_v14 }
 0x212   : > { %3515 = vrcp.f32 %v1952_v0  ;;  %v1953_v13 = vadd.f32 1.0, %v3512_v26  ;;  %v3169_v5 = vpop.f32.mrb[28].mxu0 }
 0x213   : > { %3517 = vrcp.f32 %v1955_v50  ;;  %v1791_v27 = vmul.f32 %v3169_v5, %v4454_v9  ;;  %v1691_v36 = vpop.f32.mrb[29].mxu0 }
 0x214   : > { %3519 = vrcp.f32 %v1953_v13  ;;  %v1789_v1 = vmul.f32 %v4454_v9, %v1691_v36  ;;  %v3170_v51 = vpop.f32.mrb[30].mxu0 }
 0x215   : > { %v4554_v23 = vadd.f32 %v4459_v33, %v1791_v27  ;;  %v1792_v52 = vmul.f32 %v3170_v51, %v4454_v9  ;;  %v1694_v28 = vpop.f32.mrb[31].mxu0 }
 0x216   : > { %v4558_v63 = vadd.f32 %v4459_v33, %v1789_v1  ;;  %v1790_v60 = vmul.f32 %v4454_v9, %v1694_v28 }
 0x217   : > { %v2822_v34 = vmul.f32 -1.442695, %v4554_v23  ;;  %v4563_v61 = vadd.f32 %v4459_v33, %v1792_v52 }
 0x218   : > { %v2820_v11 = vmul.f32 -1.442695, %v4558_v63  ;;  %v4567_v42 = vadd.f32 %v4459_v33, %v1790_v60 }
 0x219   : > { %3521 = vpow2.f32 %v2822_v34  ;;  %v2823_v45 = vmul.f32 -1.442695, %v4563_v61 }
 0x21a   : > { %3523 = vpow2.f32 %v2820_v11  ;;  %v2821_v53 = vmul.f32 -1.442695, %v4567_v42  ;;  %v3173_v17 = vpop.f32.mrb[32].mxu0 }
 0x21b   : > { %v3514_v3 = vpop.eup %3513  ;;  %3525 = vpow2.f32 %v2823_v45  ;;  %v1795_v46 = vmul.f32 %v3173_v17, %v4454_v9  ;;  %v1707_v41 = vpop.f32.mrb[33].mxu0 }
 0x21c   : > { %v3516_v31 = vpop.eup %3515  ;;  %v2050_v2 = vmul.f32 %v3514_v3, %v4512_v38  ;;  %3527 = vpow2.f32 %v2821_v53  ;;  %v1793_v43 = vmul.f32 %v4454_v9, %v1707_v41  ;;  %v3174_v7 = vpop.f32.mrb[34].mxu0 }
 0x21d   : > { %v3518_v44 = vpop.eup %3517  ;;  %v2048_v16 = vmul.f32 %v3516_v31, %v4517_v19  ;;  %v4576_v48 = vadd.f32 %v4459_v33, %v1795_v46  ;;  %v1796_v25 = vmul.f32 %v3174_v7, %v4454_v9  ;;  %v1710_v29 = vpop.f32.mrb[35].mxu0 }
 0x21e   : > { %v3520_v22 = vpop.eup %3519  ;;  %v3012_v8 = vpack.c.bf16 %v2050_v2, %v2050_v2  ;;  %v2051_v38 = vmul.f32 %v3518_v44, %v4523_v24  ;;  %v4581_v30 = vadd.f32 %v4459_v33, %v1793_v43  ;;  %v1794_v15 = vmul.f32 %v4454_v9, %v1710_v29 }
 0x21f   : > { %v3010_v57 = vpack.c.bf16 %v2048_v16, %v2048_v16  ;;  %v2049_v19 = vmul.f32 %v3520_v22, %v4529_v56  ;;  %v2826_v6 = vmul.f32 -1.442695, %v4576_v48  ;;  %v4587_v12 = vadd.f32 %v4459_v33, %v1796_v25 }
 0x220   : > { %2515 = vst.msk [vmem:[%s4508_s20 + $0x28] sm:$0xf] %vm2184_vm2, %v3012_v8  ;;  %v3013_v35 = vpack.c.bf16 %v2051_v38, %v2051_v38  ;;  %v2824_v20 = vmul.f32 -1.442695, %v4581_v30  ;;  %v4593_v24 = vadd.f32 %v4459_v33, %v1794_v15 }
 0x221   : > { %2513 = vst.msk [vmem:[%s4508_s20 + $0x20] sm:$0xf] %vm2184_vm2, %v3010_v57  ;;  %v3011_v37 = vpack.c.bf16 %v2049_v19, %v2049_v19  ;;  %3529 = vpow2.f32 %v2826_v6  ;;  %v2827_v56 = vmul.f32 -1.442695, %v4587_v12 }
 0x222   : > { %2516 = vst.msk [vmem:[%s4508_s20 + $0x2c] sm:$0xf] %vm2184_vm2, %v3013_v35  ;;  %3531 = vpow2.f32 %v2824_v20  ;;  %v2825_v47 = vmul.f32 -1.442695, %v4593_v24  ;;  %v3177_v32 = vpop.f32.mrb[36].mxu0 }
 0x223   : > { %v3522_v62 = vpop.eup %3521  ;;  %2514 = vst.msk [vmem:[%s4508_s20 + $0x24] sm:$0xf] %vm2184_vm2, %v3011_v37  ;;  %3533 = vpow2.f32 %v2827_v56  ;;  %v1799_v21 = vmul.f32 %v3177_v32, %v4454_v9  ;;  %v1723_v54 = vpop.f32.mrb[37].mxu0 }
 0x224   : > { %v3524_v40 = vpop.eup %3523  ;;  %v1958_v59 = vadd.f32 1.0, %v3522_v62  ;;  %3535 = vpow2.f32 %v2825_v47  ;;  %v1797_v55 = vmul.f32 %v4454_v9, %v1723_v54  ;;  %v3178_v18 = vpop.f32.mrb[38].mxu0 }
 0x225   : > { %v3526_v4 = vpop.eup %3525  ;;  %v1956_v49 = vadd.f32 1.0, %v3524_v40  ;;  %v4606_v10 = vadd.f32 %v4459_v33, %v1799_v21  ;;  %v1800_v39 = vmul.f32 %v3178_v18, %v4454_v9  ;;  %v1726_v58 = vpop.f32.mrb[39].mxu0 }
 0x226   : > { %v3528_v14 = vpop.eup %3527  ;;  %3537 = vrcp.f32 %v1958_v59  ;;  %v1959_v0 = vadd.f32 1.0, %v3526_v4  ;;  %v4610_v26 = vadd.f32 %v4459_v33, %v1797_v55  ;;  %v1798_v50 = vmul.f32 %v4454_v9, %v1726_v58 }
 0x227   : > { %3539 = vrcp.f32 %v1956_v49  ;;  %v1957_v13 = vadd.f32 1.0, %v3528_v14  ;;  %v2830_v5 = vmul.f32 -1.442695, %v4606_v10  ;;  %v4615_v27 = vadd.f32 %v4459_v33, %v1800_v39 }
 0x228   : > { %3541 = vrcp.f32 %v1959_v0  ;;  %v2828_v36 = vmul.f32 -1.442695, %v4610_v26  ;;  %v4619_v1 = vadd.f32 %v4459_v33, %v1798_v50 }
 0x229   : > { %3543 = vrcp.f32 %v1957_v13  ;;  %v2831_v51 = vmul.f32 -1.442695, %v4615_v27 }
 0x22a   : > { %3545 = vpow2.f32 %v2830_v5  ;;  %v2829_v52 = vmul.f32 -1.442695, %v4619_v1  ;;  %v3181_v28 = vpop.f32.mrb[40].mxu0 }
 0x22b   : > { %v3530_v60 = vpop.eup %3529  ;;  %3547 = vpow2.f32 %v2828_v36  ;;  %v1803_v34 = vmul.f32 %v3181_v28, %v4454_v9  ;;  %v1739_v11 = vpop.f32.mrb[41].mxu0 }
 0x22c   : > { %v3532_v45 = vpop.eup %3531  ;;  %v1962_v53 = vadd.f32 1.0, %v3530_v60  ;;  %3549 = vpow2.f32 %v2831_v51  ;;  %v1801_v17 = vmul.f32 %v4454_v9, %v1739_v11  ;;  %v3182_v3 = vpop.f32.mrb[42].mxu0 }
 0x22d   : > { %v3534_v46 = vpop.eup %3533  ;;  %v1960_v41 = vadd.f32 1.0, %v3532_v45  ;;  %3551 = vpow2.f32 %v2829_v52  ;;  %v4626_v31 = vadd.f32 %v4459_v33, %v1803_v34  ;;  %v1804_v2 = vmul.f32 %v3182_v3, %v4454_v9  ;;  %v1742_v43 = vpop.f32.mrb[43].mxu0 }
 0x22e   : > { %v3536_v7 = vpop.eup %3535  ;;  %3553 = vrcp.f32 %v1962_v53  ;;  %v1963_v44 = vadd.f32 1.0, %v3534_v46  ;;  %v4630_v16 = vadd.f32 %v4459_v33, %v1801_v17  ;;  %v1802_v25 = vmul.f32 %v4454_v9, %v1742_v43 }
 0x22f   : > { %3555 = vrcp.f32 %v1960_v41  ;;  %v1961_v29 = vadd.f32 1.0, %v3536_v7  ;;  %v2834_v22 = vmul.f32 -1.442695, %v4626_v31  ;;  %v4635_v8 = vadd.f32 %v4459_v33, %v1804_v2 }
 0x230   : > { %v3538_v38 = vpop.eup %3537  ;;  %3557 = vrcp.f32 %v1963_v44  ;;  %v2832_v15 = vmul.f32 -1.442695, %v4630_v16  ;;  %v4639_v57 = vadd.f32 %v4459_v33, %v1802_v25 }
 0x231   : > { %v3540_v19 = vpop.eup %3539  ;;  %v2054_v6 = vmul.f32 %v3538_v38, %v4554_v23  ;;  %3559 = vrcp.f32 %v1961_v29  ;;  %v2835_v35 = vmul.f32 -1.442695, %v4635_v8 }
 0x232   : > { %v3542_v20 = vpop.eup %3541  ;;  %v2052_v37 = vmul.f32 %v3540_v19, %v4558_v63  ;;  %3561 = vpow2.f32 %v2834_v22  ;;  %v2833_v56 = vmul.f32 -1.442695, %v4639_v57  ;;  %v3185_v47 = vpop.f32.mrb[44].mxu0 }
 0x233   : > { %v3544_v32 = vpop.eup %3543  ;;  %v3016_v62 = vpack.c.bf16 %v2054_v6, %v2054_v6  ;;  %v2055_v21 = vmul.f32 %v3542_v20, %v4563_v61  ;;  %3563 = vpow2.f32 %v2832_v15  ;;  %v1807_v54 = vmul.f32 %v3185_v47, %v4454_v9  ;;  %v1755_v23 = vpop.f32.mrb[45].mxu0 }
 0x234   : > { %v3546_v40 = vpop.eup %3545  ;;  %v3014_v59 = vpack.c.bf16 %v2052_v37, %v2052_v37  ;;  %v2053_v55 = vmul.f32 %v3544_v32, %v4567_v42  ;;  %3565 = vpow2.f32 %v2835_v35  ;;  %v1805_v63 = vmul.f32 %v4454_v9, %v1755_v23  ;;  %v3186_v18 = vpop.f32.mrb[46].mxu0 }
 0x235   : > { %v3548_v4 = vpop.eup %3547  ;;  %2519 = vst.msk [vmem:[%s4508_s20 + $0x38] sm:$0xf] %vm2184_vm2, %v3016_v62  ;;  %v3017_v49 = vpack.c.bf16 %v2055_v21, %v2055_v21  ;;  %v1966_v39 = vadd.f32 1.0, %v3546_v40  ;;  %3567 = vpow2.f32 %v2833_v56  ;;  %v4652_v61 = vadd.f32 %v4459_v33, %v1807_v54  ;;  %v1758_v58 = vpop.f32.mrb[47].mxu0 }
 0x236   : > { %v3550_v14 = vpop.eup %3549  ;;  %2517 = vst.msk [vmem:[%s4508_s20 + $0x30] sm:$0xf] %vm2184_vm2, %v3014_v59  ;;  %v3015_v42 = vpack.c.bf16 %v2053_v55, %v2053_v55  ;;  %v1964_v0 = vadd.f32 1.0, %v3548_v4  ;;  %v4657_v50 = vadd.f32 %v4459_v33, %v1805_v63  ;;  %v1808_v13 = vmul.f32 %v3186_v18, %v4454_v9 }
 0x237   : > { %v3552_v5 = vpop.eup %3551  ;;  %2520 = vst.msk [vmem:[%s4508_s20 + $0x3c] sm:$0xf] %vm2184_vm2, %v3017_v49  ;;  %3569 = vrcp.f32 %v1966_v39  ;;  %v1967_v36 = vadd.f32 1.0, %v3550_v14  ;;  %v2838_v51 = vmul.f32 -1.442695, %v4652_v61  ;;  %v1806_v52 = vmul.f32 %v4454_v9, %v1758_v58 }
 0x238   : > { %v3554_v28 = vpop.eup %3553  ;;  %2518 = vst.msk [vmem:[%s4508_s20 + $0x34] sm:$0xf] %vm2184_vm2, %v3015_v42  ;;  %3571 = vrcp.f32 %v1964_v0  ;;  %v1965_v60 = vadd.f32 1.0, %v3552_v5  ;;  %v2836_v34 = vmul.f32 -1.442695, %v4657_v50  ;;  %v4668_v11 = vadd.f32 %v4459_v33, %v1808_v13 }
 0x239   : > { %v3556_v45 = vpop.eup %3555  ;;  %v2058_v53 = vmul.f32 %v3554_v28, %v4576_v48  ;;  %3573 = vrcp.f32 %v1967_v36  ;;  %v4672_v17 = vadd.f32 %v4459_v33, %v1806_v52 }
 0x23a   : > { %v3558_v3 = vpop.eup %3557  ;;  %v2056_v9 = vmul.f32 %v3556_v45, %v4581_v30  ;;  %3575 = vrcp.f32 %v1965_v60  ;;  %v2839_v46 = vmul.f32 -1.442695, %v4668_v11 }
 0x23b   : > { %v3560_v41 = vpop.eup %3559  ;;  %v3020_v2 = vpack.c.bf16 %v2058_v53, %v2058_v53  ;;  %v2059_v43 = vmul.f32 %v3558_v3, %v4587_v12  ;;  %3577 = vpow2.f32 %v2838_v51  ;;  %v2837_v7 = vmul.f32 -1.442695, %v4672_v17 }
 0x23c   : > { %v3562_v48 = vpop.eup %3561  ;;  %v3018_v44 = vpack.c.bf16 %v2056_v9, %v2056_v9  ;;  %v2057_v33 = vmul.f32 %v3560_v41, %v4593_v24  ;;  %3579 = vpow2.f32 %v2836_v34 }
 0x23d   : > { %v3564_v25 = vpop.eup %3563  ;;  %2523 = vst.msk [vmem:[%s4508_s20 + $0x48] sm:$0xf] %vm2184_vm2, %v3020_v2  ;;  %v3021_v30 = vpack.c.bf16 %v2059_v43, %v2059_v43  ;;  %v1970_v29 = vadd.f32 1.0, %v3562_v48  ;;  %3581 = vpow2.f32 %v2839_v46 }
 0x23e   : > { %v3566_v22 = vpop.eup %3565  ;;  %2521 = vst.msk [vmem:[%s4508_s20 + $0x40] sm:$0xf] %vm2184_vm2, %v3018_v44  ;;  %v3019_v12 = vpack.c.bf16 %v2057_v33, %v2057_v33  ;;  %v1968_v38 = vadd.f32 1.0, %v3564_v25  ;;  %3583 = vpow2.f32 %v2837_v7 }
 0x23f   : > { %v3568_v15 = vpop.eup %3567  ;;  %2524 = vst.msk [vmem:[%s4508_s20 + $0x4c] sm:$0xf] %vm2184_vm2, %v3021_v30  ;;  %3585 = vrcp.f32 %v1970_v29  ;;  %v1971_v19 = vadd.f32 1.0, %v3566_v22 }
 0x240   : > { %2522 = vst.msk [vmem:[%s4508_s20 + $0x44] sm:$0xf] %vm2184_vm2, %v3019_v12  ;;  %3587 = vrcp.f32 %v1968_v38  ;;  %v1969_v24 = vadd.f32 1.0, %v3568_v15 }
 0x241   : > { %v3570_v6 = vpop.eup %3569  ;;  %3589 = vrcp.f32 %v1971_v19 }
 0x242   : > { %v3572_v35 = vpop.eup %3571  ;;  %v2062_v20 = vmul.f32 %v3570_v6, %v4606_v10  ;;  %3591 = vrcp.f32 %v1969_v24 }
 0x243   : > { %v3574_v37 = vpop.eup %3573  ;;  %v2060_v56 = vmul.f32 %v3572_v35, %v4610_v26 }
 0x244   : > { %v3576_v47 = vpop.eup %3575  ;;  %v3024_v32 = vpack.c.bf16 %v2062_v20, %v2062_v20  ;;  %v2063_v62 = vmul.f32 %v3574_v37, %v4615_v27 }
 0x245   : > { %v3578_v21 = vpop.eup %3577  ;;  %v3022_v54 = vpack.c.bf16 %v2060_v56, %v2060_v56  ;;  %v2061_v23 = vmul.f32 %v3576_v47, %v4619_v1 }
 0x246   : > { %v3580_v40 = vpop.eup %3579  ;;  %2527 = vst.msk [vmem:[%s4508_s20 + $0x58] sm:$0xf] %vm2184_vm2, %v3024_v32  ;;  %v3025_v59 = vpack.c.bf16 %v2063_v62, %v2063_v62  ;;  %v1974_v55 = vadd.f32 1.0, %v3578_v21 }
 0x247   : > { %v3582_v10 = vpop.eup %3581  ;;  %2525 = vst.msk [vmem:[%s4508_s20 + $0x50] sm:$0xf] %vm2184_vm2, %v3022_v54  ;;  %v3023_v63 = vpack.c.bf16 %v2061_v23, %v2061_v23  ;;  %v1972_v26 = vadd.f32 1.0, %v3580_v40 }
 0x248   : > { %v3584_v18 = vpop.eup %3583  ;;  %2528 = vst.msk [vmem:[%s4508_s20 + $0x5c] sm:$0xf] %vm2184_vm2, %v3025_v59  ;;  %3593 = vrcp.f32 %v1974_v55  ;;  %v1975_v27 = vadd.f32 1.0, %v3582_v10 }
 0x249   : > { %v3586_v4 = vpop.eup %3585  ;;  %2526 = vst.msk [vmem:[%s4508_s20 + $0x54] sm:$0xf] %vm2184_vm2, %v3023_v63  ;;  %3595 = vrcp.f32 %v1972_v26  ;;  %v1973_v1 = vadd.f32 1.0, %v3584_v18 }
 0x24a   : > { %v3588_v49 = vpop.eup %3587  ;;  %v2066_v39 = vmul.f32 %v3586_v4, %v4626_v31  ;;  %3597 = vrcp.f32 %v1975_v27 }
 0x24b   : > { %v3590_v58 = vpop.eup %3589  ;;  %v2064_v14 = vmul.f32 %v3588_v49, %v4630_v16  ;;  %3599 = vrcp.f32 %v1973_v1 }
 0x24c   : > { %v3592_v42 = vpop.eup %3591  ;;  %v3028_v0 = vpack.c.bf16 %v2066_v39, %v2066_v39  ;;  %v2067_v13 = vmul.f32 %v3590_v58, %v4635_v8 }
 0x24d   : > { %v3026_v5 = vpack.c.bf16 %v2064_v14, %v2064_v14  ;;  %v2065_v36 = vmul.f32 %v3592_v42, %v4639_v57 }
 0x24e   : > { %2531 = vst.msk [vmem:[%s4508_s20 + $0x68] sm:$0xf] %vm2184_vm2, %v3028_v0  ;;  %v3029_v51 = vpack.c.bf16 %v2067_v13, %v2067_v13 }
 0x24f   : > { %2529 = vst.msk [vmem:[%s4508_s20 + $0x60] sm:$0xf] %vm2184_vm2, %v3026_v5  ;;  %v3027_v31 = vpack.c.bf16 %v2065_v36, %v2065_v36 }
 0x250   : > { %2532 = vst.msk [vmem:[%s4508_s20 + $0x6c] sm:$0xf] %vm2184_vm2, %v3029_v51 }
 0x251   : > { %2530 = vst.msk [vmem:[%s4508_s20 + $0x64] sm:$0xf] %vm2184_vm2, %v3027_v31 }
 0x252   : > { %v3594_v16 = vpop.eup %3593 }
 0x253   : > { %v3596_v52 = vpop.eup %3595  ;;  %v2070_v8 = vmul.f32 %v3594_v16, %v4652_v61 }
 0x254   : > { %v3598_v28 = vpop.eup %3597  ;;  %v2068_v57 = vmul.f32 %v3596_v52, %v4657_v50 }
 0x255   : > { %v3600_v60 = vpop.eup %3599  ;;  %v3032_v34 = vpack.c.bf16 %v2070_v8, %v2070_v8  ;;  %v2071_v45 = vmul.f32 %v3598_v28, %v4668_v11 }
 0x256   : > { %v3030_v53 = vpack.c.bf16 %v2068_v57, %v2068_v57  ;;  %v2069_v3 = vmul.f32 %v3600_v60, %v4672_v17 }
 0x257   : > { %2535 = vst.msk [vmem:[%s4508_s20 + $0x78] sm:$0xf] %vm2184_vm2, %v3032_v34  ;;  %v3033_v9 = vpack.c.bf16 %v2071_v45, %v2071_v45 }
 0x258   : > { %2533 = vst.msk [vmem:[%s4508_s20 + $0x70] sm:$0xf] %vm2184_vm2, %v3030_v53  ;;  %v3031_v46 = vpack.c.bf16 %v2069_v3, %v2069_v3 }
 0x259   : > { %2536 = vst.msk [vmem:[%s4508_s20 + $0x7c] sm:$0xf] %vm2184_vm2, %v3033_v9 }
 0x25a   : > { %2534 = vst.msk [vmem:[%s4508_s20 + $0x74] sm:$0xf] %vm2184_vm2, %v3031_v46 }
 0x25b PF: > { %s23_s21 = sadd.s32 1, %s3607_s21  }
 0x25c   : > { %p20_p4 = scmp.ge.s32.totalorder %s23_s21, 4  }
 0x25e   :  { %22 = sbr.rel (!%p20_p4) target bundleno = 1 (0x1), region = 114 }

// kernel: c3_forward.4
= control target key start
LH: loop header
LB: loop body
LE: loop exit
PB: predicated region body
PF: predicated region fallthrough
CT: control target
= control target key end

     0   :  { %s3019_s18 = smov 0   ;;  %s4429_s0 = inlined_call_operand.vmem [shape: bf16[2,18,18,4], index: 0, kind: input, shape index: {}]   ;;  %s4430_s1 = inlined_call_operand.vmem [shape: bf16[36,4], index: 1, kind: input, shape index: {}]   ;;  %s4431_s2 = inlined_call_operand.vmem [shape: f32[1,4], index: 2, kind: input, shape index: {}]   ;;  %s4432_s3 = inlined_call_operand.vmem [shape: f32[1,4], index: 3, kind: input, shape index: {}]   ;;  %s4433_s4 = inlined_call_operand.vmem [shape: bf16[2,256,4], index: 4, kind: input, shape index: {}]   ;;  %s4434_s5 = inlined_call_operand.vmem [shape: bf16[2,256,4], index: 5, kind: output, shape index: {}]  }
   0x1 LB: > { %s2460_s19 = sadd.s32 4294967295, %s2979_s18   ;;  %p2464_p0 = scmp.ge.s32.totalorder %s2979_s18, 1  ;;  %s2979_s18 = sphi %s3019_s18, %s15_s18  }
   0x2   : > { %p197_p1 = scmp.lt.s32.totalorder %s2979_s18, 3 }
   0x4   : > { %p198_p2 = pnand %p2464_p0, %p197_p1 }
   0x6   : > { %201 = sbr.rel (%p198_p2) target bundleno = 657 (0x291), region = 40 }
   0xd   : > { %p230_p3 = scmp.lt.s32.totalorder %s2460_s19, 1  ;;  %vm735_vm0 = vcmask 1042432   ;;  %vm736_vm1 = vcmask 1046532   ;;  %vm300_vm2 = vsmask.f32 3328  ;;  %s2981_s24 = smov 12  }
   0xe   : > { %vm301_vm3 = vsmask.f32 7440  ;;  %vm3065_vm4 = vmor %vm735_vm0, %vm736_vm1  ;;  %s2982_s25 = smov 8   ;;  %s2983_s26 = smov 4   ;;  %vm1669_vm6 = vcmask 1041408   ;;  %vm1336_vm7 = vcmask 31744  }
   0xf   : > { %s4461_s19 = smov (!%p230_p3, %s2460_s19), 1  ;;  %vm3110_vm5 = vmor %vm300_vm2, %vm301_vm3  ;;  %s2984_s27 = smov 16   ;;  %vm1385_vm8 = vcmask 64512   ;;  %vm1418_vm9 = vcmask 97280   ;;  %vm1451_vm10 = vcmask 130048   ;;  %vm1484_vm11 = vcmask 162816  }
  0x10   : > { %s2807_s20 = smul.u32 216, %s4461_s19  ;;  %s2985_s28 = smov 20   ;;  %vm1517_vm12 = vcmask 195584   ;;  %vm1550_vm13 = vcmask 228352   ;;  %vm1583_vm14 = vcmask 261120   ;;  %vm1636_vm15 = vcmask 293888  }
  0x11   : > { %s2986_s29 = smov 24   ;;  %s2987_s7 = smov 28   ;;  %vm2360_vm0 = vcmask 27648  }
  0x12   : > { %s3033_s23 = scalar_lea.vmem %s4429_s0, %s2807_s20  ;;  %s2988_s10 = smov 32  }
  0x13   : > { %v3036_v0 = vld [vmem:[%s3033_s23 + $0x6c] sm:$0xf]  ;;  %v3039_v1 = vld [vmem:[%s3033_s23 + $0x70] sm:$0xf]  ;;  %v3053_v12 = vld [vmem:[%s3033_s23 + $0x60] sm:$0xf] }
  0x14   : > { %v249_v2 = vld [vmem:[%s3033_s23 + $0xc] sm:$0xf]  ;;  %v533_v3 = vshrl.u32 %v3039_v1, 16  ;;  %v3045_v4 = vcombine.low %v3036_v0, %v3039_v1  ;;  %v520_v5 = vshrl.u32 %v3036_v0, 16  ;;  %v523_v6 = vshll.u32 %v3036_v0, 16  ;;  %s2629_s17 = sshll.u32 %s4461_s19, 7 }
  0x15   : > { %v250_v7 = vld [vmem:[%s3033_s23 + $0x10] sm:$0xf]  ;;  %v328_v11 = vshrl.u32 %v249_v2, 16  ;;  %v331_v13 = vshll.u32 %v249_v2, 16  ;;  %v3058_v14 = vld [vmem:[%s3033_s23 + $0x64] sm:$0xf]  ;;  %s4185_s22 = scalar_lea.vmem %s4433_s4, %s2629_s17 }
  0x16   : > { %v337_v8 = vshll.u32 %v250_v7, 16  ;;  %v341_v9 = vshrl.u32 %v250_v7, 16  ;;  %v3050_v10 = vcombine.low %v249_v2, %v250_v7  ;;  %1145 = vrot.lane.b32.xlu1 %v3045_v4, %s2981_s24  ;;  %v3061_v15 = vld [vmem:[%s3033_s23 + $0x68] sm:$0x1]  ;;  %v2478_v17 = vrot.slane %v3053_v12, 9 }
  0x17   : > { %v330_v19 = vrot.slane %v328_v11, 4  ;;  %v796_v20 = vrot.slane %v3058_v14, 5  ;;  %v799_v21 = vrot.slane %v3061_v15, 5  ;;  %v3075_v22 = vld [vmem:[%s3033_s23] sm:$0xf]  ;;  %v333_v23 = vrot.slane %v331_v13, 5 }
  0x18   : > { %v343_v18 = vrot.slane %v341_v9, 4  ;;  %1129 = vrot.lane.b32.xlu0 %v3050_v10, %s2981_s24  ;;  %v3078_v24 = vld [vmem:[%s3033_s23 + $0x4] sm:$0xf]  ;;  %v248_v25 = vld [vmem:[%s3033_s23 + $0x8] sm:$0x1]  ;;  %v2470_v26 = vrot.slane %v3075_v22, 9 }
  0x19   : > { %v797_v27 = vsel %vm3065_vm4, %v2478_v17, %v796_v20  ;;  %v798_v28 = vrot.slane %v796_v20, 4  ;;  %v740_v29 = vrot.slane %v3078_v24, 5  ;;  %v743_v30 = vrot.slane %v248_v25, 5  ;;  %v3086_v31 = vld [vmem:[%s3033_s23 + $0x74] sm:$0x1] }
  0x1a   : > { %v2479_v32 = vrot.slane %v3036_v0, 9  ;;  %v803_v33 = vrot.slane %v3039_v1, 5  ;;  %v806_v34 = vrot.slane %v3086_v31, 5  ;;  %v251_v35 = vld [vmem:[%s3033_s23 + $0x14] sm:$0x1]  ;;  %v2471_v36 = vrot.slane %v249_v2, 9 }
  0x1b   : > { %v800_v37 = vsel %vm3065_vm4, %v798_v28, %v799_v21  ;;  %v741_v38 = vsel %vm3065_vm4, %v2470_v26, %v740_v29  ;;  %v742_v39 = vrot.slane %v740_v29, 4  ;;  %v747_v40 = vrot.slane %v250_v7, 5 }
  0x1c   : > { %v3096_v41 = vcombine.low %v797_v27, %v800_v37  ;;  %v804_v42 = vsel %vm3065_vm4, %v2479_v32, %v803_v33  ;;  %v805_v43 = vrot.slane %v803_v33, 4  ;;  %v750_v44 = vrot.slane %v251_v35, 5 }
  0x1d   : > { %v744_v45 = vsel %vm3065_vm4, %v742_v39, %v743_v30  ;;  %v748_v46 = vsel %vm3065_vm4, %v2471_v36, %v747_v40  ;;  %v749_v47 = vrot.slane %v747_v40, 4  ;;  %v334_v48 = vor.u32 %v333_v23, %v330_v19  ;;  %v3154_v39 = vld [vmem:[%s3033_s23 + $0x7c] sm:$0xf] }
  0x1e   : > { %1110 = vrot.lane.b32.xlu1 %v3096_v41, %s2982_s25  ;;  %v2520_v49 = vcombine.low %v741_v38, %v744_v45  ;;  %v807_v50 = vsel %vm3065_vm4, %v805_v43, %v806_v34  ;;  %v339_v52 = vrot.slane %v337_v8, 5  ;;  %v347_v53 = vshll.u32 %v251_v35, 16  ;;  %v3149_v35 = vld [vmem:[%s3033_s23 + $0x78] sm:$0xf] }
  0x1f   : > { %v3114_v54 = vcombine.low %v804_v42, %v807_v50  ;;  %v751_v55 = vsel %vm3065_vm4, %v749_v47, %v750_v44  ;;  %v335_v56 = vrot.slane %v334_v48, 4  ;;  %v304_v57 = vshrl.u32 %v3075_v22, 16  ;;  %v3166_v50 = vld [vmem:[%s3033_s23 + $0x1c] sm:$0xf] }
  0x20   : > { %1094 = vrot.lane.b32.xlu0 %v2520_v49, %s2982_s25  ;;  %v3120_v58 = vcombine.low %v748_v46, %v751_v55  ;;  %v344_v59 = vor.u32 %v343_v18, %v339_v52  ;;  %v349_v60 = vrot.slane %v347_v53, 5  ;;  %v307_v61 = vshll.u32 %v3075_v22, 16  ;;  %v3163_v49 = vld [vmem:[%s3033_s23 + $0x18] sm:$0xf] }
  0x21   : > { %4446 = vst [vmem:[#allocation2_spill] sm:$0xff] %v3114_v54  ;;  %v340_v62 = vsel %vm3110_vm5, %v335_v56, %v339_v52  ;;  %v306_v63 = vrot.slane %v304_v57, 4  ;;  %v313_v2 = vshll.u32 %v3078_v24, 16  ;;  %v317_v7 = vshrl.u32 %v3078_v24, 16 }
  0x22   : > { %1112 = vrot.lane.b32.xlu1 %v3114_v54, %s2982_s25  ;;  %v345_v8 = vrot.slane %v344_v59, 4  ;;  %v309_v9 = vrot.slane %v307_v61, 5  ;;  %v323_v11 = vshll.u32 %v248_v25, 16  ;;  %v522_v13 = vrot.slane %v520_v5, 4 }
  0x23   : > { %v315_v17 = vrot.slane %v313_v2, 5  ;;  %v319_v18 = vrot.slane %v317_v7, 4  ;;  %v525_v19 = vrot.slane %v523_v6, 5  ;;  %v529_v20 = vshll.u32 %v3039_v1, 16 }
  0x24   : > { %1096 = vrot.lane.b32.xlu0 %v3120_v58, %s2982_s25  ;;  %v350_v21 = vsel %vm3110_vm5, %v345_v8, %v349_v60  ;;  %v310_v23 = vor.u32 %v309_v9, %v306_v63  ;;  %v325_v26 = vrot.slane %v323_v11, 5  ;;  %v535_v25 = vrot.slane %v533_v3, 4  ;;  %v278_v60 = vld [vmem:[%s3033_s23 + $0x80] sm:$0x1] }
  0x25   : > { %v3140_v5 = vcombine.low %v340_v62, %v350_v21  ;;  %v320_v27 = vor.u32 %v319_v18, %v315_v17  ;;  %v526_v28 = vor.u32 %v525_v19, %v522_v13  ;;  %v531_v0 = vrot.slane %v529_v20, 5  ;;  %v3190_v20 = vld [vmem:[%s3033_s23 + $0x20] sm:$0x1] }
  0x26   : > { %v311_v6 = vrot.slane %v310_v23, 4  ;;  %v539_v29 = vshll.u32 %v3086_v31, 16  ;;  %v496_v30 = vshrl.u32 %v3053_v12, 16  ;;  %v499_v32 = vshll.u32 %v3053_v12, 16 }
  0x27   : > { %1016 = vrot.lane.b32.xlu1 %v3140_v5, %s2983_s26  ;;  %v321_v1 = vrot.slane %v320_v27, 4  ;;  %v527_v33 = vrot.slane %v526_v28, 4  ;;  %v536_v3 = vor.u32 %v535_v25, %v531_v0  ;;  %v505_v34 = vshll.u32 %v3058_v14, 16 }
  0x28   : > { %v316_v31 = vsel %vm3110_vm5, %v311_v6, %v315_v17  ;;  %v541_v36 = vrot.slane %v539_v29, 5  ;;  %v498_v37 = vrot.slane %v496_v30, 4  ;;  %v501_v38 = vrot.slane %v499_v32, 5 }
  0x29   : > { %v326_v40 = vsel %vm3110_vm5, %v321_v1, %v325_v26  ;;  %v532_v42 = vsel %vm3110_vm5, %v527_v33, %v531_v0  ;;  %v537_v43 = vrot.slane %v536_v3, 4  ;;  %v507_v44 = vrot.slane %v505_v34, 5 }
  0x2a   : > { %v2504_v45 = vcombine.low %v316_v31, %v326_v40  ;;  %v502_v46 = vor.u32 %v501_v38, %v498_v37  ;;  %v509_v47 = vshrl.u32 %v3058_v14, 16  ;;  %v515_v48 = vshll.u32 %v3061_v15, 16 }
  0x2b   : > { %v542_v52 = vsel %vm3110_vm5, %v537_v43, %v541_v36  ;;  %v544_v53 = vshrl.u32 %v3149_v35, 16  ;;  %v547_v55 = vshll.u32 %v3149_v35, 16  ;;  %v557_v56 = vshrl.u32 %v3154_v39, 16 }
  0x2c   : > { %1014 = vrot.lane.b32.xlu0 %v2504_v45, %s2983_s26  ;;  %v3174_v57 = vcombine.low %v532_v42, %v542_v52  ;;  %v503_v59 = vrot.slane %v502_v46, 4  ;;  %v511_v15 = vrot.slane %v509_v47, 4  ;;  %v517_v61 = vrot.slane %v515_v48, 5  ;;  %v3217_v52 = vld [vmem:[%s3033_s23 + $0x84] sm:$0xf] }
  0x2d   : > { %v352_v62 = vshrl.u32 %v3163_v49, 16  ;;  %v355_v63 = vshll.u32 %v3163_v49, 16  ;;  %v365_v2 = vshrl.u32 %v3166_v50, 16  ;;  %v3186_v9 = vcombine.low %v3149_v35, %v3154_v39 }
  0x2e   : > { %4447 = vst [vmem:[#allocation3_spill] sm:$0xff] %v3174_v57  ;;  %1032 = vrot.lane.b32.xlu1 %v3174_v57, %s2983_s26  ;;  %v508_v7 = vsel %vm3110_vm5, %v503_v59, %v507_v44  ;;  %v512_v8 = vor.u32 %v511_v15, %v507_v44  ;;  %v546_v11 = vrot.slane %v544_v53, 4  ;;  %v549_v13 = vrot.slane %v547_v55, 5  ;;  %v3220_v53 = vld [vmem:[%s3033_s23 + $0x88] sm:$0xf] }
  0x2f   : > { %v553_v17 = vshll.u32 %v3154_v39, 16  ;;  %v559_v18 = vrot.slane %v557_v56, 4  ;;  %v563_v19 = vshll.u32 %v278_v60, 16  ;;  %v354_v23 = vrot.slane %v352_v62, 4 }
  0x30   : > { %v513_v21 = vrot.slane %v512_v8, 4  ;;  %v357_v26 = vrot.slane %v355_v63, 5  ;;  %v361_v25 = vshll.u32 %v3166_v50, 16  ;;  %v550_v27 = vor.u32 %v549_v13, %v546_v11  ;;  %v3250_v13 = vld [vmem:[%s3033_s23 + $0x24] sm:$0xf] }
  0x31   : > { %v555_v28 = vrot.slane %v553_v17, 5  ;;  %v367_v0 = vrot.slane %v365_v2, 4  ;;  %v371_v32 = vshll.u32 %v3190_v20, 16  ;;  %v565_v34 = vrot.slane %v563_v19, 5  ;;  %v3253_v17 = vld [vmem:[%s3033_s23 + $0x28] sm:$0xf] }
  0x32   : > { %v518_v6 = vsel %vm3110_vm5, %v513_v21, %v517_v61  ;;  %1147 = vrot.lane.b32.xlu1 %v3186_v9, %s2981_s24  ;;  %v358_v29 = vor.u32 %v357_v26, %v354_v23  ;;  %v363_v30 = vrot.slane %v361_v25, 5  ;;  %v551_v33 = vrot.slane %v550_v27, 4  ;;  %v3256_v23 = vld [vmem:[%s3033_s23 + $0x8c] sm:$0x1] }
  0x33   : > { %v3198_v1 = vcombine.low %v508_v7, %v518_v6  ;;  %v560_v3 = vor.u32 %v559_v18, %v555_v28  ;;  %v810_v36 = vrot.slane %v3154_v39, 5  ;;  %v3205_v37 = vcombine.low %v3163_v49, %v3166_v50 }
  0x34   : > { %v368_v31 = vor.u32 %v367_v0, %v363_v30  ;;  %v556_v38 = vsel %vm3110_vm5, %v551_v33, %v555_v28  ;;  %v359_v42 = vrot.slane %v358_v29, 4  ;;  %v373_v44 = vrot.slane %v371_v32, 5 }
  0x35   : > { %1030 = vrot.lane.b32.xlu0 %v3198_v1, %s2983_s26  ;;  %v561_v40 = vrot.slane %v560_v3, 4  ;;  %v2480_v39 = vrot.slane %v3149_v35, 9  ;;  %v812_v46 = vrot.slane %v810_v36, 4  ;;  %v813_v47 = vrot.slane %v278_v60, 5 }
  0x36   : > { %1180 = vrot.lane.b32.xlu1 %v3174_v57, %s2984_s27  ;;  %v369_v43 = vrot.slane %v368_v31, 4  ;;  %v364_v35 = vsel %vm3110_vm5, %v359_v42, %v363_v30  ;;  %v754_v59 = vrot.slane %v3166_v50, 5  ;;  %v568_v60 = vshrl.u32 %v3217_v52, 16  ;;  %v257_v42 = vld [vmem:[%s3033_s23 + $0x2c] sm:$0x1] }
  0x37   : > { %v566_v45 = vsel %vm3110_vm5, %v561_v40, %v565_v34  ;;  %v811_v56 = vsel %vm3065_vm4, %v2480_v39, %v810_v36  ;;  %v814_v15 = vsel %vm3065_vm4, %v812_v46, %v813_v47  ;;  %v571_v61 = vshll.u32 %v3217_v52, 16  ;;  %v2838_v46 = vld [vmem:[%s4430_s1] sm:$0xff]  }
  0x38   : > { %v3214_v48 = vcombine.low %v556_v38, %v566_v45  ;;  %v374_v55 = vsel %vm3110_vm5, %v369_v43, %v373_v44  ;;  %v581_v62 = vshrl.u32 %v3220_v53, 16  ;;  %v577_v63 = vshll.u32 %v3220_v53, 16  ;;  %2761 = vmatprep.subr.bf16.mxu0 %v2838_v46  ;;  %2799 = vmatprep.subr.bf16.mxu1 %v2838_v46 }
  0x39   : > { %1131 = vrot.lane.b32.xlu0 %v3205_v37, %s2981_s24  ;;  %v3241_v2 = vcombine.low %v364_v35, %v374_v55  ;;  %v2472_v7 = vrot.slane %v3163_v49, 9  ;;  %v3246_v50 = vcombine.low %v811_v56, %v814_v15  ;;  %v756_v8 = vrot.slane %v754_v59, 4  ;;  %2762 = vmatpush3.bf16.msra.mxu0 %v2838_v46 }
  0x3a   : > { %1182 = vrot.lane.b32.xlu1 %v3214_v48, %s2984_s27  ;;  %v757_v11 = vrot.slane %v3190_v20, 5  ;;  %v570_v18 = vrot.slane %v568_v60, 4  ;;  %v573_v19 = vrot.slane %v571_v61, 5  ;;  %v583_v21 = vrot.slane %v581_v62, 4  ;;  %2802 = vmatpush3.bf16.msra.mxu1 %v2838_v46  ;;  %v2839_v60 = vld [vmem:[%s4430_s1 + $0x8] sm:$0xff]  }
  0x3b   : > { %v755_v49 = vsel %vm3065_vm4, %v2472_v7, %v754_v59  ;;  %v376_v26 = vshrl.u32 %v3250_v13, 16  ;;  %v379_v25 = vshll.u32 %v3250_v13, 16  ;;  %v389_v27 = vshrl.u32 %v3253_v17, 16  ;;  %2763 = vmatprep.subr.bf16.mxu0 %v2839_v60  ;;  %2800 = vmatprep.subr.bf16.mxu1 %v2839_v60 }
  0x3c   : > { %v758_v20 = vsel %vm3065_vm4, %v756_v8, %v757_v11  ;;  %v385_v28 = vshll.u32 %v3253_v17, 16  ;;  %v574_v0 = vor.u32 %v573_v19, %v570_v18  ;;  %v587_v29 = vshll.u32 %v3256_v23, 16 }
  0x3d   : > { %1164 = vrot.lane.b32.xlu0 %v3140_v5, %s2984_s27  ;;  %v579_v5 = vrot.slane %v577_v63, 5  ;;  %v3273_v30 = vcombine.low %v755_v49, %v758_v20  ;;  %v3277_v32 = vcombine.low %v3217_v52, %v3220_v53  ;;  %v378_v33 = vrot.slane %v376_v26, 4  ;;  %2764 = vmatpush3.bf16.msra.mxu0 %v2839_v60  ;;  %v3344_v49 = vld [vmem:[%s3033_s23 + $0x90] sm:$0xf]  ;;  %v3347_v26 = vld [vmem:[%s3033_s23 + $0x94] sm:$0xf] }
  0x3e   : > { %1215 = vrot.lane.b32.xlu1 %v3114_v54, %s2985_s28  ;;  %v381_v3 = vrot.slane %v379_v25, 5  ;;  %v387_v34 = vrot.slane %v385_v28, 5  ;;  %v391_v31 = vrot.slane %v389_v27, 4  ;;  %v575_v36 = vrot.slane %v574_v0, 4  ;;  %2803 = vmatpush3.bf16.msra.mxu1 %v2839_v60  ;;  %v3367_v0 = vld [vmem:[%s3033_s23 + $0x34] sm:$0xf] }
  0x3f   : > { %v584_v6 = vor.u32 %v583_v21, %v579_v5  ;;  %v589_v40 = vrot.slane %v587_v29, 5  ;;  %v395_v44 = vshll.u32 %v257_v42, 16  ;;  %v3297_v47 = vcombine.low %v3250_v13, %v3253_v17  ;;  %v260_v60 = vld [vmem:[%s3033_s23 + $0x38] sm:$0x1] }
  0x40   : > { %v392_v43 = vor.u32 %v391_v31, %v387_v34  ;;  %v580_v39 = vsel %vm3110_vm5, %v575_v36, %v579_v5  ;;  %v817_v15 = vrot.slane %v3220_v53, 5  ;;  %v2481_v53 = vrot.slane %v3217_v52, 9 }
  0x41   : > { %1166 = vrot.lane.b32.xlu0 %v3241_v2, %s2984_s27  ;;  %v585_v38 = vrot.slane %v584_v6, 4  ;;  %4448 = vst [vmem:[#allocation4_spill] sm:$0xff] %v3297_v47  ;;  %v397_v59 = vrot.slane %v395_v44, 5  ;;  %v820_v7 = vrot.slane %v3256_v23, 5  ;;  %v761_v11 = vrot.slane %v3253_v17, 5 }
  0x42   : > { %1217 = vrot.lane.b32.xlu1 %v3246_v50, %s2985_s28  ;;  %v393_v56 = vrot.slane %v392_v43, 4  ;;  %v819_v63 = vrot.slane %v817_v15, 4  ;;  %v818_v52 = vsel %vm3065_vm4, %v2481_v53, %v817_v15  ;;  %v2473_v5 = vrot.slane %v3250_v13, 9  ;;  %v2842_v44 = vld [vmem:[%s4430_s1 + $0x10] ss:$0 sps:$4 sm:$0x33]  }
  0x43   : > { %v590_v45 = vsel %vm3110_vm5, %v585_v38, %v589_v40  ;;  %v763_v21 = vrot.slane %v761_v11, 4  ;;  %v764_v23 = vrot.slane %v257_v42, 5  ;;  %v592_v20 = vshrl.u32 %v3344_v49, 16  ;;  %2805 = vmatprep.subr.msk.bf16.mxu0 %vm1669_vm6, %v2842_v44  ;;  %2806 = vmatprep.subr.msk.bf16.mxu1 %vm1669_vm6, %v2842_v44 }
  0x44   : > { %v3301_v35 = vcombine.low %v580_v39, %v590_v45  ;;  %v398_v62 = vsel %vm3110_vm5, %v393_v56, %v397_v59  ;;  %v821_v18 = vsel %vm3065_vm4, %v819_v63, %v820_v7  ;;  %v762_v17 = vsel %vm3065_vm4, %v2473_v5, %v761_v11 }
  0x45   : > { %1199 = vrot.lane.b32.xlu0 %v3120_v58, %s2985_s28  ;;  %v382_v58 = vor.u32 %v381_v3, %v378_v33  ;;  %v3332_v19 = vcombine.low %v818_v52, %v821_v18  ;;  %v595_v25 = vshll.u32 %v3344_v49, 16  ;;  %v605_v27 = vshrl.u32 %v3347_v26, 16 }
  0x46   : > { %1250 = vrot.lane.b32.xlu1 %v3186_v9, %s2986_s29  ;;  %v601_v28 = vshll.u32 %v3347_v26, 16  ;;  %v594_v6 = vrot.slane %v592_v20, 4  ;;  %v409_v38 = vshll.u32 %v3367_v0, 16  ;;  %v3382_v43 = vcombine.low %v3344_v49, %v3347_v26  ;;  %v3411_v20 = vld [vmem:[%s3033_s23 + $0x9c] sm:$0xf] }
  0x47   : > { %v383_v55 = vrot.slane %v382_v58, 4  ;;  %v597_v29 = vrot.slane %v595_v25, 5  ;;  %v607_v3 = vrot.slane %v605_v27, 4  ;;  %v419_v53 = vshll.u32 %v260_v60, 16  ;;  %v3414_v25 = vld [vmem:[%s3033_s23 + $0xa0] sm:$0xf] }
  0x48   : > { %v603_v33 = vrot.slane %v601_v28, 5  ;;  %4449 = vst [vmem:[#allocation5_spill] sm:$0xff] %v3382_v43  ;;  %v411_v46 = vrot.slane %v409_v38, 5  ;;  %v824_v11 = vrot.slane %v3347_v26, 5  ;;  %v2482_v18 = vrot.slane %v3344_v49, 9 }
  0x49   : > { %1201 = vrot.lane.b32.xlu0 %v3273_v30, %s2985_s28  ;;  %v388_v61 = vsel %vm3110_vm5, %v383_v55, %v387_v34  ;;  %v284_v34 = vld [vmem:[%s3033_s23 + $0x98] sm:$0x1]  ;;  %v598_v40 = vor.u32 %v597_v29, %v594_v6  ;;  %v768_v27 = vrot.slane %v3367_v0, 5  ;;  %v616_v6 = vshrl.u32 %v3411_v20, 16 }
  0x4a   : > { %1252 = vrot.lane.b32.xlu1 %v3277_v32, %s2986_s29  ;;  %v3319_v8 = vcombine.low %v388_v61, %v398_v62  ;;  %v608_v42 = vor.u32 %v607_v3, %v603_v33  ;;  %v611_v58 = vshll.u32 %v284_v34, 16  ;;  %v827_v26 = vrot.slane %v284_v34, 5 }
  0x4b   : > { %v599_v56 = vrot.slane %v598_v40, 4  ;;  %v825_v28 = vsel %vm3065_vm4, %v2482_v18, %v824_v11  ;;  %v625_v3 = vshll.u32 %v3414_v25, 16  ;;  %v3443_v40 = vld [vmem:[%s3033_s23 + $0x3c] sm:$0xf] }
  0x4c   : > { %v609_v59 = vrot.slane %v608_v42, 4  ;;  %v613_v15 = vrot.slane %v611_v58, 5  ;;  %v3446_v42 = vld [vmem:[%s3033_s23 + $0x40] sm:$0xf]  ;;  %v618_v58 = vrot.slane %v616_v6, 4 }
  0x4d   : > { %1234 = vrot.lane.b32.xlu0 %v3205_v37, %s2986_s29  ;;  %v604_v63 = vsel %vm3110_vm5, %v599_v56, %v603_v33  ;;  %v629_v33 = vshrl.u32 %v3414_v25, 16  ;;  %v437_v56 = vshrl.u32 %v3446_v42, 16 }
  0x4e   : > { %1285 = vrot.lane.b32.xlu1 %v3214_v48, %s2987_s7  ;;  %v614_v7 = vsel %vm3110_vm5, %v609_v59, %v613_v15  ;;  %v433_v59 = vshll.u32 %v3446_v42, 16 }
  0x4f   : > { %v3408_v5 = vcombine.low %v604_v63, %v614_v7 }
  0x50   : > { %v435_v7 = vrot.slane %v433_v59, 5 }
  0x51   : > { %1236 = vrot.lane.b32.xlu0 %v3297_v47, %s2986_s29 }
  0x52   : > { %1287 = vrot.lane.b32.xlu1 %v3301_v35, %s2987_s7 }
  0x55   : > { %1269 = vrot.lane.b32.xlu0 %v3241_v2, %s2987_s7 }
  0x56   : > { %1320 = vrot.lane.b32.xlu1 %v3246_v50, %s2988_s10 }
  0x59   : > { %1271 = vrot.lane.b32.xlu0 %v3319_v8, %s2987_s7 }
  0x5a   : > { %1034 = vrot.lane.b32.xlu1 %v3214_v48, %s2983_s26  ;;  %v765_v48 = vsel %vm3065_vm4, %v763_v21, %v764_v23 }
  0x5b   : > { %v3351_v13 = vcombine.low %v762_v17, %v765_v48  ;;  %v421_v17 = vrot.slane %v419_v53, 5  ;;  %v826_v48 = vrot.slane %v824_v11, 4  ;;  %v439_v11 = vrot.slane %v437_v56, 4 }
  0x5d   : > { %1304 = vrot.lane.b32.xlu0 %v3273_v30, %s2988_s10  ;;  %v828_v29 = vsel %vm3065_vm4, %v826_v48, %v827_v26  ;;  %v440_v26 = vor.u32 %v439_v11, %v435_v7 }
  0x5e   : > { %1322 = vrot.lane.b32.xlu1 %v3332_v19, %s2988_s10  ;;  %v3440_v38 = vcombine.low %v825_v28, %v828_v29  ;;  %v3486_v28 = vcombine.low %v3443_v40, %v3446_v42 }
  0x60   : > { %4452 = vst [vmem:[#allocation8_spill] sm:$0xff] %v3486_v28 }
  0x61   : > { %1018 = vrot.lane.b32.xlu0 %v3241_v2, %s2983_s26  ;;  %v3364_v2 = vld [vmem:[%s3033_s23 + $0x30] sm:$0xf] }
  0x62   : > { %1036 = vrot.lane.b32.xlu1 %v3301_v35, %s2983_s26  ;;  %v400_v31 = vshrl.u32 %v3364_v2, 16  ;;  %v403_v36 = vshll.u32 %v3364_v2, 16  ;;  %v3403_v52 = vcombine.low %v3364_v2, %v3367_v0 }
  0x64   : > { %v402_v39 = vrot.slane %v400_v31, 4  ;;  %v405_v45 = vrot.slane %v403_v36, 5  ;;  %4450 = vst [vmem:[#allocation6_spill] sm:$0xff] %v3403_v52  ;;  %v2474_v31 = vrot.slane %v3364_v2, 9  ;;  %v770_v36 = vrot.slane %v768_v27, 4 }
  0x65   : > { %1306 = vrot.lane.b32.xlu0 %v3351_v13, %s2988_s10 }
  0x66   : > { %1114 = vrot.lane.b32.xlu1 %v3246_v50, %s2982_s25  ;;  %v413_v50 = vshrl.u32 %v3367_v0, 16  ;;  %v406_v61 = vor.u32 %v405_v45, %v402_v39  ;;  %v619_v0 = vshll.u32 %v3411_v20, 16  ;;  %v627_v39 = vrot.slane %v625_v3, 5 }
  0x67   : > { %v631_v45 = vrot.slane %v629_v33, 4  ;;  %v769_v2 = vsel %vm3065_vm4, %v2474_v31, %v768_v27  ;;  %v831_v31 = vrot.slane %v3414_v25, 5 }
  0x68   : > { %v415_v55 = vrot.slane %v413_v50, 4  ;;  %v407_v21 = vrot.slane %v406_v61, 4  ;;  %v771_v50 = vrot.slane %v260_v60, 5 }
  0x69   : > { %1020 = vrot.lane.b32.xlu0 %v3319_v8, %s2983_s26  ;;  %v632_v60 = vor.u32 %v631_v45, %v627_v39 }
  0x6a   : > { %1116 = vrot.lane.b32.xlu1 %v3332_v19, %s2982_s25  ;;  %v416_v62 = vor.u32 %v415_v55, %v411_v46  ;;  %v427_v55 = vshll.u32 %v3443_v40, 16 }
  0x6c   : > { %v417_v23 = vrot.slane %v416_v62, 4  ;;  %v3467_v62 = vcombine.low %v3411_v20, %v3414_v25  ;;  %v429_v63 = vrot.slane %v427_v55, 5 }
  0x6d   : > { %1098 = vrot.lane.b32.xlu0 %v3273_v30, %s2982_s25  ;;  %v1671_v30 = vsel %vm1669_vm6, %v2842_v44, 0  ;;  %v621_v44 = vrot.slane %v619_v0, 5  ;;  %v441_v0 = vrot.slane %v440_v26, 4 }
  0x6e   : > { %1149 = vrot.lane.b32.xlu1 %v3277_v32, %s2981_s24  ;;  %2766 = vmatpush3.bf16.msra.mxu0 %v1671_v30  ;;  %v422_v49 = vsel %vm3110_vm5, %v417_v23, %v421_v17  ;;  %4451 = vst [vmem:[#allocation7_spill] sm:$0xff] %v3467_v62  ;;  %v263_v17 = vld [vmem:[%s3033_s23 + $0x44] sm:$0x1] }
  0x6f   : > { %2804 = vmatpush3.bf16.msra.mxu1 %v1671_v30  ;;  %v622_v15 = vor.u32 %v621_v44, %v618_v58  ;;  %v443_v27 = vshll.u32 %v263_v17, 16  ;;  %v2483_v44 = vrot.slane %v3411_v20, 9 }
  0x71   : > { %1100 = vrot.lane.b32.xlu0 %v3351_v13, %s2982_s25  ;;  %v623_v18 = vrot.slane %v622_v15, 4  ;;  %v445_v33 = vrot.slane %v443_v27, 5  ;;  %v832_v20 = vsel %vm3065_vm4, %v2483_v44, %v831_v31  ;;  %v778_v15 = vrot.slane %v263_v17, 5  ;;  %v3572_v27 = vld [vmem:[%s3033_s23 + $0x4c] sm:$0xf] }
  0x72   : > { %1151 = vrot.lane.b32.xlu1 %v3382_v43, %s2981_s24  ;;  %v457_v44 = vshll.u32 %v3572_v27, 16 }
  0x73   : > { %v446_v58 = vsel %vm3110_vm5, %v441_v0, %v445_v33 }
  0x75   : > { %1133 = vrot.lane.b32.xlu0 %v3297_v47, %s2981_s24 }
  0x76   : > { %1184 = vrot.lane.b32.xlu1 %v3301_v35, %s2984_s27  ;;  %v412_v35 = vsel %vm3110_vm5, %v407_v21, %v411_v46  ;;  %v424_v46 = vshrl.u32 %v3443_v40, 16  ;;  %v633_v21 = vrot.slane %v632_v60, 4 }
  0x77   : > { %v3435_v34 = vcombine.low %v412_v35, %v422_v49  ;;  %v628_v35 = vsel %vm3110_vm5, %v623_v18, %v627_v39  ;;  %v833_v39 = vrot.slane %v831_v31, 4  ;;  %v290_v31 = vld [vmem:[%s3033_s23 + $0xb0] sm:$0x1] }
  0x78   : > { %v426_v53 = vrot.slane %v424_v46, 4  ;;  %v775_v46 = vrot.slane %v3446_v42, 5  ;;  %v2475_v42 = vrot.slane %v3443_v40, 9  ;;  %v3543_v40 = vld [vmem:[%s3033_s23 + $0xa8] sm:$0xf] }
  0x79   : > { %1135 = vrot.lane.b32.xlu0 %v3403_v52, %s2981_s24  ;;  %v640_v18 = vshrl.u32 %v3543_v40, 16 }
  0x7a   : > { %1186 = vrot.lane.b32.xlu1 %v3408_v5, %s2984_s27  ;;  %v430_v48 = vor.u32 %v429_v63, %v426_v53  ;;  %v777_v59 = vrot.slane %v775_v46, 4  ;;  %v3546_v63 = vld [vmem:[%s3033_s23 + $0xac] sm:$0xf] }
  0x7b   : > { %v649_v17 = vshll.u32 %v3546_v63, 16 }
  0x7c   : > { %v431_v29 = vrot.slane %v430_v48, 4 }
  0x7d   : > { %1168 = vrot.lane.b32.xlu0 %v3319_v8, %s2984_s27  ;;  %v287_v8 = vld [vmem:[%s3033_s23 + $0xa4] sm:$0x1] }
  0x7e   : > { %1219 = vrot.lane.b32.xlu1 %v3332_v19, %s2985_s28  ;;  %v772_v19 = vsel %vm3065_vm4, %v770_v36, %v771_v50  ;;  %v635_v30 = vshll.u32 %v287_v8, 16  ;;  %v436_v50 = vsel %vm3110_vm5, %v431_v29, %v435_v7  ;;  %v834_v45 = vrot.slane %v287_v8, 5 }
  0x7f   : > { %v3463_v61 = vcombine.low %v769_v2, %v772_v19  ;;  %v3510_v25 = vcombine.low %v436_v50, %v446_v58  ;;  %v651_v29 = vrot.slane %v649_v17, 5  ;;  %v461_v58 = vshrl.u32 %v3572_v27, 16 }
  0x80   : > { %v637_v23 = vrot.slane %v635_v30, 5  ;;  %v835_v8 = vsel %vm3065_vm4, %v833_v39, %v834_v45  ;;  %v776_v30 = vsel %vm3065_vm4, %v2475_v42, %v775_v46  ;;  %v3593_v42 = vcombine.low %v3543_v40, %v3546_v63 }
  0x81   : > { %1170 = vrot.lane.b32.xlu0 %v3435_v34, %s2984_s27  ;;  %v3527_v56 = vcombine.low %v832_v20, %v835_v8  ;;  %v659_v20 = vshll.u32 %v290_v31, 16 }
  0x82   : > { %1221 = vrot.lane.b32.xlu1 %v3440_v38, %s2985_s28  ;;  %v638_v49 = vsel %vm3110_vm5, %v633_v21, %v637_v23  ;;  %v643_v21 = vshll.u32 %v3543_v40, 16  ;;  %v653_v23 = vshrl.u32 %v3546_v63, 16 }
  0x83   : > { %v3490_v6 = vcombine.low %v628_v35, %v638_v49  ;;  %v642_v35 = vrot.slane %v640_v18, 4  ;;  %v661_v17 = vrot.slane %v659_v20, 5 }
  0x84   : > { %v645_v49 = vrot.slane %v643_v21, 5  ;;  %v655_v0 = vrot.slane %v653_v23, 4 }
  0x85   : > { %1203 = vrot.lane.b32.xlu0 %v3351_v13, %s2985_s28 }
  0x86   : > { %1254 = vrot.lane.b32.xlu1 %v3382_v43, %s2986_s29  ;;  %v646_v45 = vor.u32 %v645_v49, %v642_v35  ;;  %v656_v46 = vor.u32 %v655_v0, %v651_v29  ;;  %v3600_v35 = vld [vmem:[%s3033_s23 + $0x50] sm:$0x1] }
  0x88   : > { %v3476_v13 = vpop.permute.xlu1 %1145  ;;  %v647_v21 = vrot.slane %v646_v45, 4  ;;  %v657_v23 = vrot.slane %v656_v46, 4  ;;  %v838_v45 = vrot.slane %v3546_v63, 5 }
  0x89   : > { %1205 = vrot.lane.b32.xlu0 %v3463_v61, %s2985_s28 }
  0x8a   : > { %1256 = vrot.lane.b32.xlu1 %v3467_v62, %s2986_s29  ;;  %v3492_v3 = vpop.permute.xlu0 %1129 }
  0x8d   : > { %1238 = vrot.lane.b32.xlu0 %v3403_v52, %s2986_s29  ;;  %v3637_v52 = vld [vmem:[%s3033_s23 + $0xb8] sm:$0xf] }
  0x8e   : > { %1289 = vrot.lane.b32.xlu1 %v3408_v5, %s2987_s7 }
  0x90   : > { %v3495_v36 = vpop.permute.xlu1 %1110 }
  0x91   : > { %1240 = vrot.lane.b32.xlu0 %v3486_v28, %s2986_s29 }
  0x92   : > { %1291 = vrot.lane.b32.xlu1 %v3490_v6, %s2987_s7  ;;  %v3512_v19 = vpop.permute.xlu0 %1094 }
  0x94   : > { %v3506_v2 = vpop.permute.xlu1 %1112 }
  0x95   : > { %1273 = vrot.lane.b32.xlu0 %v3435_v34, %s2987_s7 }
  0x96   : > { %1324 = vrot.lane.b32.xlu1 %v3440_v38, %s2988_s10  ;;  %v3530_v60 = vpop.permute.xlu0 %1096 }
  0x99   : > { %1275 = vrot.lane.b32.xlu0 %v3510_v25, %s2987_s7  ;;  %v3525_v55 = vpop.permute.xlu1 %1016 }
  0x9a   : > { %1038 = vrot.lane.b32.xlu1 %v3408_v5, %s2983_s26  ;;  %v779_v5 = vsel %vm3065_vm4, %v777_v59, %v778_v15 }
  0x9b   : > { %v3552_v11 = vcombine.low %v776_v30, %v779_v5  ;;  %v459_v30 = vrot.slane %v457_v44, 5  ;;  %v463_v5 = vrot.slane %v461_v58, 4  ;;  %v652_v58 = vsel %vm3110_vm5, %v647_v21, %v651_v29 }
  0x9c   : > { %v662_v44 = vsel %vm3110_vm5, %v657_v23, %v661_v17  ;;  %v840_v23 = vrot.slane %v838_v45, 4  ;;  %v841_v17 = vrot.slane %v290_v31, 5 }
  0x9d   : > { %1308 = vrot.lane.b32.xlu0 %v3463_v61, %s2988_s10  ;;  %v464_v0 = vor.u32 %v463_v5, %v459_v30  ;;  %v3627_v29 = vcombine.low %v652_v58, %v662_v44  ;;  %v677_v58 = vshrl.u32 %v3637_v52, 16 }
  0x9e   : > { %1326 = vrot.lane.b32.xlu1 %v3527_v56, %s2988_s10  ;;  %v3550_v7 = vpop.permute.xlu0 %1014 }
  0x9f   : > { %v465_v5 = vrot.slane %v464_v0, 4 }
  0xa0   : > { %v3540_v53 = vpop.permute.xlu1 %1032 }
  0xa1   : > { %1022 = vrot.lane.b32.xlu0 %v3435_v34, %s2983_s26  ;;  %v3567_v34 = vld [vmem:[%s3033_s23 + $0x48] sm:$0xf] }
  0xa2   : > { %1040 = vrot.lane.b32.xlu1 %v3490_v6, %s2983_s26  ;;  %v451_v50 = vshll.u32 %v3567_v34, 16  ;;  %v3622_v20 = vcombine.low %v3567_v34, %v3572_v27 }
  0xa4   : > { %v3560_v48 = vpop.permute.xlu1 %1147  ;;  %v453_v15 = vrot.slane %v451_v50, 5 }
  0xa5   : > { %1310 = vrot.lane.b32.xlu0 %v3552_v11, %s2988_s10 }
  0xa6   : > { %1118 = vrot.lane.b32.xlu1 %v3440_v38, %s2982_s25  ;;  %v448_v38 = vshrl.u32 %v3567_v34, 16 }
  0xa7   : > { %v3569_v26 = vpop.permute.xlu0 %1030 }
  0xa8   : > { %v3574_v33 = vpop.permute.xlu1 %1180  ;;  %v450_v59 = vrot.slane %v448_v38, 4  ;;  %v467_v38 = vshll.u32 %v3600_v35, 16 }
  0xa9   : > { %1024 = vrot.lane.b32.xlu0 %v3510_v25, %s2983_s26 }
  0xaa   : > { %1120 = vrot.lane.b32.xlu1 %v3527_v56, %s2982_s25  ;;  %v469_v21 = vrot.slane %v467_v38, 5 }
  0xab   : > { %v3585_v39 = vpop.permute.xlu0 %1131 }
  0xac   : > { %v3587_v8 = vpop.permute.xlu1 %1182 }
  0xad   : > { %1102 = vrot.lane.b32.xlu0 %v3463_v61, %s2982_s25  ;;  %v454_v61 = vor.u32 %v453_v15, %v450_v59  ;;  %v2484_v59 = vrot.slane %v3543_v40, 9  ;;  %v3641_v40 = vcombine.low %v3053_v12, %v3058_v14 }
  0xae   : > { %1153 = vrot.lane.b32.xlu1 %v3467_v62, %s2981_s24  ;;  %v3632_v62 = vld [vmem:[%s3033_s23 + $0xb4] sm:$0xf] }
  0xaf   : > { %v3597_v18 = vpop.permute.xlu0 %1164  ;;  %v455_v15 = vrot.slane %v454_v61, 4  ;;  %v470_v61 = vsel %vm3110_vm5, %v465_v5, %v469_v21  ;;  %v839_v0 = vsel %vm3065_vm4, %v2484_v59, %v838_v45  ;;  %v664_v12 = vshrl.u32 %v3632_v62, 16 }
  0xb0   : > { %v3602_v49 = vpop.permute.xlu1 %1215  ;;  %v667_v38 = vshll.u32 %v3632_v62, 16  ;;  %v785_v5 = vrot.slane %v3600_v35, 5  ;;  %v2488_v21 = vcombine.low %v3075_v22, %v3078_v24  ;;  %v679_v22 = vrot.slane %v677_v58, 4 }
  0xb1   : > { %1104 = vrot.lane.b32.xlu0 %v3552_v11, %s2982_s25  ;;  %v460_v31 = vsel %vm3110_vm5, %v455_v15, %v459_v30  ;;  %v673_v30 = vshll.u32 %v3637_v52, 16  ;;  %v2476_v15 = vrot.slane %v3567_v34, 9  ;;  %v666_v35 = vrot.slane %v664_v12, 4 }
  0xb2   : > { %1155 = vrot.lane.b32.xlu1 %v3593_v42, %s2981_s24  ;;  %v3667_v45 = vcombine.low %v460_v31, %v470_v61  ;;  %v3685_v31 = vld [vmem:[%s3033_s23 + $0x58] sm:$0xf]  ;;  %v669_v61 = vrot.slane %v667_v38, 5  ;;  %v3716_v57 = vcombine.low %v3632_v62, %v3637_v52  ;;  %v1339_v47 = vsel %vm1336_vm7, %v2488_v21, %v3550_v7 }
  0xb3   : > { %v3609_v50 = vpop.permute.xlu0 %1166  ;;  %v3687_v43 = vrot.slane %v673_v30, 5  ;;  %v481_v58 = vshll.u32 %v3685_v31, 16 }
  0xb4   : > { %v3616_v46 = vpop.permute.xlu1 %1217  ;;  %v670_v30 = vor.u32 %v669_v61, %v666_v35 }
  0xb5   : > { %1137 = vrot.lane.b32.xlu0 %v3486_v28, %s2981_s24 }
  0xb6   : > { %1188 = vrot.lane.b32.xlu1 %v3490_v6, %s2984_s27  ;;  %v782_v6 = vrot.slane %v3572_v27, 5  ;;  %v842_v27 = vsel %vm3065_vm4, %v840_v23, %v841_v17  ;;  %v1363_v23 = vsel %vm1336_vm7, %v3641_v40, %v3569_v26  ;;  %v3680_v17 = vld [vmem:[%s3033_s23 + $0x54] sm:$0xf]  ;;  %v3692_v26 = vld [vmem:[%s3033_s23 + $0xbc] sm:$0x1] }
  0xb7   : > { %v3629_v63 = vpop.permute.xlu0 %1199  ;;  %v3677_v34 = vcombine.low %v839_v0, %v842_v27  ;;  %v1403_v0 = vsel %vm1385_vm8, %v1363_v23, %v3495_v36  ;;  %v472_v27 = vshrl.u32 %v3680_v17, 16  ;;  %v475_v38 = vshll.u32 %v3680_v17, 16 }
  0xb8   : > { %v3634_v28 = vpop.permute.xlu1 %1250  ;;  %v784_v59 = vrot.slane %v782_v6, 4 }
  0xb9   : > { %1139 = vrot.lane.b32.xlu0 %v3622_v20, %s2981_s24  ;;  %v474_v61 = vrot.slane %v472_v27, 4 }
  0xba   : > { %1190 = vrot.lane.b32.xlu1 %v3627_v29, %s2984_s27  ;;  %v786_v12 = vsel %vm3065_vm4, %v784_v59, %v785_v5  ;;  %v683_v59 = vshll.u32 %v3692_v26, 16  ;;  %v1436_v5 = vsel %vm1418_vm9, %v1403_v0, %v3476_v13  ;;  %v3731_v0 = vrot.slane %v481_v58, 5 }
  0xbb   : > { %v3655_v14 = vpop.permute.xlu0 %1201  ;;  %v1469_v35 = vsel %vm1451_vm10, %v1436_v5, %v3574_v33 }
  0xbc   : > { %v3662_v44 = vpop.permute.xlu1 %1252  ;;  %v1502_v13 = vsel %vm1484_vm11, %v1469_v35, %v3602_v49  ;;  %v685_v27 = vrot.slane %v683_v59, 5  ;;  %v1366_v49 = vsel %vm1336_vm7, %v3045_v4, %v3540_v53 }
  0xbd   : > { %1172 = vrot.lane.b32.xlu0 %v3510_v25, %s2984_s27  ;;  %v1535_v33 = vsel %vm1517_vm12, %v1502_v13, %v3634_v28 }
  0xbe   : > { %1223 = vrot.lane.b32.xlu1 %v3527_v56, %s2985_s28  ;;  %v783_v56 = vsel %vm3065_vm4, %v2476_v15, %v782_v6  ;;  %v485_v6 = vshrl.u32 %v3685_v31, 16  ;;  %v680_v15 = vor.u32 %v679_v22, %v3687_v43  ;;  %v477_v22 = vrot.slane %v475_v38, 5 }
  0xbf   : > { %v3682_v25 = vpop.permute.xlu0 %1234  ;;  %v3712_v23 = vcombine.low %v783_v56, %v786_v12  ;;  %v3729_v56 = vld [vmem:[%s3033_s23 + $0x5c] sm:$0x1]  ;;  %v671_v12 = vrot.slane %v670_v30, 4  ;;  %v1387_v38 = vsel %vm1385_vm8, %v1339_v47, %v3512_v19  ;;  %v1405_v19 = vsel %vm1385_vm8, %v1366_v49, %v3506_v2 }
  0xc0   : > { %v1286_v24 = vpop.permute.xlu1 %1285  ;;  %v487_v7 = vrot.slane %v485_v6, 4  ;;  %v478_v28 = vor.u32 %v477_v22, %v474_v61  ;;  %v491_v58 = vshll.u32 %v3729_v56, 16  ;;  %v1420_v53 = vsel %vm1418_vm9, %v1387_v38, %v3492_v3 }
  0xc1   : > { %1174 = vrot.lane.b32.xlu0 %v3667_v45, %s2984_s27  ;;  %v1568_v5 = vsel %vm1550_vm13, %v1535_v33, %v1286_v24  ;;  %v676_v30 = vsel %vm3110_vm5, %v671_v12, %v3687_v43  ;;  %v1438_v59 = vsel %vm1418_vm9, %v1405_v19, %v3560_v48  ;;  %v1453_v61 = vsel %vm1451_vm10, %v1420_v53, %v3597_v18 }
  0xc2   : > { %1225 = vrot.lane.b32.xlu1 %v3677_v34, %s2985_s28  ;;  %v488_v47 = vor.u32 %v487_v7, %v3731_v0  ;;  %v3764_v2 = vcombine.low %v3680_v17, %v3685_v31  ;;  %v1471_v3 = vsel %vm1451_vm10, %v1438_v59, %v3587_v8  ;;  %v1486_v43 = vsel %vm1484_vm11, %v1453_v61, %v3629_v63 }
  0xc3   : > { %v3706_v36 = vpop.permute.xlu0 %1236  ;;  %v479_v13 = vrot.slane %v478_v28, 4  ;;  %v493_v48 = vrot.slane %v491_v58, 5  ;;  %v1504_v18 = vsel %vm1484_vm11, %v1471_v3, %v3616_v46  ;;  %v1519_v7 = vsel %vm1517_vm12, %v1486_v43, %v3682_v25  ;;  %v295_v43 = vld [vmem:[%s3033_s23 + $0xc4] sm:$0xf] }
  0xc4   : > { %v1288_v54 = vpop.permute.xlu1 %1287  ;;  %v489_v8 = vrot.slane %v488_v47, 4  ;;  %v1342_v63 = vsel %vm1336_vm7, %v3050_v10, %v3525_v55  ;;  %v1537_v12 = vsel %vm1517_vm12, %v1504_v18, %v3662_v44  ;;  %v845_v46 = vrot.slane %v3637_v52, 5 }
  0xc5   : > { %1207 = vrot.lane.b32.xlu0 %v3552_v11, %s2985_s28  ;;  %v681_v11 = vrot.slane %v680_v15, 4  ;;  %v1570_v25 = vsel %vm1550_vm13, %v1537_v12, %v1288_v54  ;;  %v1389_v55 = vsel %vm1385_vm8, %v1342_v63, %v3530_v60  ;;  %v484_v54 = vsel %vm3110_vm5, %v479_v13, %v3731_v0 }
  0xc6   : > { %1258 = vrot.lane.b32.xlu1 %v3593_v42, %s2986_s29  ;;  %v494_v52 = vsel %vm3110_vm5, %v489_v8, %v493_v48  ;;  %v1422_v44 = vsel %vm1418_vm9, %v1389_v55, %v3585_v39  ;;  %v847_v60 = vrot.slane %v845_v46, 4  ;;  %v864_v8 = vshrl.u32 %v295_v43, 16 }
  0xc7   : > { %v1270_v21 = vpop.permute.xlu0 %1269  ;;  %v686_v15 = vsel %vm3110_vm5, %v681_v11, %v685_v27  ;;  %v3819_v58 = vcombine.low %v484_v54, %v494_v52  ;;  %v860_v63 = vshll.u32 %v295_v43, 16 }
  0xc8   : > { %v1321_v35 = vpop.permute.xlu1 %1320  ;;  %v3780_v33 = vcombine.low %v676_v30, %v686_v15  ;;  %v1552_v11 = vsel %vm1550_vm13, %v1519_v7, %v1270_v21  ;;  %v792_v30 = vrot.slane %v3729_v56, 5  ;;  %v294_v56 = vld [vmem:[%s3033_s23 + $0xc0] sm:$0xf] }
  0xc9   : > { %1209 = vrot.lane.b32.xlu0 %v3712_v23, %s2985_s28  ;;  %v1601_v6 = vsel %vm1583_vm14, %v1568_v5, %v1321_v35  ;;  %v2485_v5 = vrot.slane %v3632_v62, 9  ;;  %v848_v35 = vrot.slane %v3692_v26, 5  ;;  %v789_v62 = vrot.slane %v3685_v31, 5 }
  0xca   : > { %1260 = vrot.lane.b32.xlu1 %v3716_v57, %s2986_s29  ;;  %2783 = vmatprep.mubr.msk.bf16.mxu1 %vm1636_vm15, %v1601_v6  ;;  %v1455_v6 = vsel %vm1451_vm10, %v1422_v44, %v3609_v50  ;;  %v851_v18 = vshrl.u32 %v294_v56, 16  ;;  %v854_v7 = vshll.u32 %v294_v56, 16  ;;  %v2536_v44 = vcombine.low %v294_v56, %v295_v43 }
  0xcb   : > { %v1272_v24 = vpop.permute.xlu0 %1271  ;;  %v1488_v0 = vsel %vm1484_vm11, %v1455_v6, %v3655_v14  ;;  %v846_v47 = vsel %vm3065_vm4, %v2485_v5, %v845_v46  ;;  %v849_v14 = vsel %vm3065_vm4, %v847_v60, %v848_v35  ;;  %v862_v46 = vrot.slane %v860_v63, 5 }
  0xcc   : > { %v3766_v22 = vpop.permute.xlu1 %1034  ;;  %v1521_v39 = vsel %vm1517_vm12, %v1488_v0, %v3706_v36  ;;  %v3839_v31 = vcombine.low %v846_v47, %v849_v14  ;;  %v2477_v36 = vrot.slane %v3680_v17, 9 }
  0xcd   : > { %1242 = vrot.lane.b32.xlu0 %v3622_v20, %s2986_s29  ;;  %v1554_v50 = vsel %vm1550_vm13, %v1521_v39, %v1272_v24  ;;  %v791_v24 = vrot.slane %v789_v62, 4 }
  0xce   : > { %1293 = vrot.lane.b32.xlu1 %v3627_v29, %s2987_s7 }
  0xcf   : > { %v1305_v27 = vpop.permute.xlu0 %1304  ;;  %v793_v61 = vsel %vm3065_vm4, %v791_v24, %v792_v30  ;;  %v3914_v30 = vld [vmem:[%s3033_s23 + $0xcc] sm:$0xf] }
  0xd0   : > { %v1585_v38 = vsel %vm1583_vm14, %v1552_v11, %v1305_v27  ;;  %v1323_v49 = vpop.permute.xlu1 %1322  ;;  %v853_v11 = vrot.slane %v851_v18, 4  ;;  %v856_v27 = vrot.slane %v854_v7, 5 }
  0xd1   : > { %1244 = vrot.lane.b32.xlu0 %v3764_v2, %s2986_s29  ;;  %2767 = vmatprep.mubr.msk.bf16.mxu0 %vm1636_vm15, %v1585_v38  ;;  %v1603_v10 = vsel %vm1583_vm14, %v1570_v25, %v1323_v49  ;;  %v866_v25 = vrot.slane %v864_v8, 4  ;;  %v296_v49 = vld [vmem:[%s3033_s23 + $0xc8] sm:$0x1] }
  0xd2   : > { %1295 = vrot.lane.b32.xlu1 %v3780_v33, %s2987_s7  ;;  %2784 = vmatmul.mubr.msk.bf16.vlgmr.msra.gmra.mrb[0].mxu1 %vm1636_vm15, %v1603_v10  ;;  %v857_v55 = vor.u32 %v856_v27, %v853_v11  ;;  %v882_v24 = vrot.slane %v296_v49, 5 }
  0xd3   : > { %v3807_v21 = vpop.permute.xlu0 %1018  ;;  %v867_v54 = vor.u32 %v866_v25, %v862_v46 }
  0xd4   : > { %v3813_v28 = vpop.permute.xlu1 %1036  ;;  %v858_v60 = vrot.slane %v857_v55, 4 }
  0xd5   : > { %1277 = vrot.lane.b32.xlu0 %v3667_v45, %s2987_s7  ;;  %v868_v35 = vrot.slane %v867_v54, 4 }
  0xd6   : > { %1328 = vrot.lane.b32.xlu1 %v3677_v34, %s2988_s10 }
  0xd7   : > { %v1307_v26 = vpop.permute.xlu0 %1306 }
  0xd8   : > { %v1587_v19 = vsel %vm1583_vm14, %v1554_v50, %v1307_v26  ;;  %v3832_v53 = vpop.permute.xlu1 %1114  ;;  %v879_v50 = vrot.slane %v295_v43, 5  ;;  %v888_v43 = vshll.u32 %v3914_v30, 16 }
  0xd9   : > { %1279 = vrot.lane.b32.xlu0 %v3819_v58, %s2987_s7  ;;  %2768 = vmatmul.mubr.msk.bf16.vlgmr.msra.gmra.mrb[0].mxu0 %vm1636_vm15, %v1587_v19  ;;  %v2486_v19 = vrot.slane %v294_v56, 9 }
  0xda   : > { %1042 = vrot.lane.b32.xlu1 %v3627_v29, %s2983_s26  ;;  %v790_v29 = vsel %vm3065_vm4, %v2477_v36, %v789_v62  ;;  %v881_v36 = vrot.slane %v879_v50, 4  ;;  %v890_v25 = vrot.slane %v888_v43, 5 }
  0xdb   : > { %v3843_v15 = vpop.permute.xlu0 %1020  ;;  %v3863_v13 = vcombine.low %v790_v29, %v793_v61  ;;  %v3917_v61 = vld [vmem:[%s3033_s23 + $0xd0] sm:$0xf]  ;;  %v880_v56 = vsel %vm3065_vm4, %v2486_v19, %v879_v50 }
  0xdc   : > { %v3845_v59 = vpop.permute.xlu1 %1116  ;;  %v883_v7 = vsel %vm3065_vm4, %v881_v36, %v882_v24  ;;  %v898_v8 = vshrl.u32 %v3917_v61, 16  ;;  %v894_v63 = vshll.u32 %v3917_v61, 16 }
  0xdd   : > { %1312 = vrot.lane.b32.xlu0 %v3712_v23, %s2988_s10  ;;  %v3937_v27 = vcombine.low %v880_v56, %v883_v7 }
  0xde   : > { %1330 = vrot.lane.b32.xlu1 %v3839_v31, %s2988_s10  ;;  %v896_v55 = vrot.slane %v894_v63, 5  ;;  %v900_v54 = vrot.slane %v898_v8, 4 }
  0xdf   : > { %v3855_v17 = vpop.permute.xlu0 %1098 }
  0xe0   : > { %v3857_v3 = vpop.permute.xlu1 %1149 }
  0xe1   : > { %1026 = vrot.lane.b32.xlu0 %v3667_v45, %s2983_s26 }
  0xe2   : > { %1044 = vrot.lane.b32.xlu1 %v3780_v33, %s2983_s26 }
  0xe3   : > { %v3867_v48 = vpop.permute.xlu0 %1100 }
  0xe4   : > { %v3869_v12 = vpop.permute.xlu1 %1151 }
  0xe5   : > { %1314 = vrot.lane.b32.xlu0 %v3863_v13, %s2988_s10 }
  0xe6   : > { %1122 = vrot.lane.b32.xlu1 %v3677_v34, %s2982_s25  ;;  %v870_v34 = vshll.u32 %v296_v49, 16 }
  0xe7   : > { %v3875_v45 = vpop.permute.xlu0 %1133 }
  0xe8   : > { %v3877_v38 = vpop.permute.xlu1 %1184  ;;  %v872_v6 = vrot.slane %v870_v34, 5 }
  0xe9   : > { %1028 = vrot.lane.b32.xlu0 %v3819_v58, %s2983_s26 }
  0xea   : > { %1124 = vrot.lane.b32.xlu1 %v3839_v31, %s2982_s25  ;;  %v873_v62 = vsel %vm3110_vm5, %v868_v35, %v872_v6 }
  0xeb   : > { %v3884_v10 = vpop.permute.xlu0 %1135 }
  0xec   : > { %v3886_v52 = vpop.permute.xlu1 %1186 }
  0xed   : > { %1106 = vrot.lane.b32.xlu0 %v3712_v23, %s2982_s25  ;;  %v863_v23 = vsel %vm3110_vm5, %v858_v60, %v862_v46  ;;  %v3940_v60 = vld [vmem:[%s3033_s23 + $0xd4] sm:$0x1] }
  0xee   : > { %1157 = vrot.lane.b32.xlu1 %v3716_v57, %s2981_s24  ;;  %v3909_v47 = vcombine.low %v863_v23, %v873_v62  ;;  %v901_v23 = vor.u32 %v900_v54, %v896_v55  ;;  %v904_v62 = vshll.u32 %v3940_v60, 16  ;;  %v916_v54 = vrot.slane %v3940_v60, 5 }
  0xef   : > { %v3892_v5 = vpop.permute.xlu0 %1168 }
  0xf0   : > { %v1220_v0 = vpop.permute.xlu1 %1219  ;;  %v902_v43 = vrot.slane %v901_v23, 4 }
  0xf1   : > { %1108 = vrot.lane.b32.xlu0 %v3863_v13, %s2982_s25  ;;  %s4198_s25 = scalar_lea.vmem %s4434_s5, %s2629_s17 }
  0xf2   : > { %1159 = vrot.lane.b32.xlu1 %v2536_v44, %s2981_s24 }
  0xf3   : > { %v3897_v39 = vpop.permute.xlu0 %1170 }
  0xf4   : > { %v3903_v26 = vpop.permute.xlu1 %1221 }
  0xf5   : > { %1141 = vrot.lane.b32.xlu0 %v3764_v2, %s2981_s24 }
  0xf6   : > { %1192 = vrot.lane.b32.xlu1 %v3780_v33, %s2984_s27  ;;  %v885_v33 = vshrl.u32 %v3914_v30, 16 }
  0xf7   : > { %v3911_v14 = vpop.permute.xlu0 %1203 }
  0xf8   : > { %v1255_v29 = vpop.permute.xlu1 %1254  ;;  %v887_v46 = vrot.slane %v885_v33, 4 }
  0xf9   : > { %1143 = vrot.lane.b32.xlu0 %v3641_v40, %s2981_s24 }
  0xfa   : > { %1194 = vrot.lane.b32.xlu1 %v3909_v47, %s2984_s27 }
  0xfb   : > { %v3925_v18 = vpop.permute.xlu0 %1205 }
  0xfc   : > { %v1257_v11 = vpop.permute.xlu1 %1256 }
  0xfd   : > { %1176 = vrot.lane.b32.xlu0 %v3819_v58, %s2984_s27  ;;  %v1369_v58 = vsel %vm1336_vm7, %v3186_v9, %v3766_v22  ;;  %v2539_v22 = vcombine.low %v3914_v30, %v3917_v61 }
  0xfe   : > { %1227 = vrot.lane.b32.xlu1 %v3839_v31, %s2985_s28  ;;  %v891_v31 = vor.u32 %v890_v25, %v887_v46  ;;  %v1407_v35 = vsel %vm1385_vm8, %v1369_v58, %v3832_v53 }
  0xff   : > { %v1239_v49 = vpop.permute.xlu0 %1238  ;;  %v1440_v50 = vsel %vm1418_vm9, %v1407_v35, %v3857_v3  ;;  %v906_v3 = vrot.slane %v904_v62, 5 }
 0x100   : > { %v1290_v34 = vpop.permute.xlu1 %1289  ;;  %v1473_v36 = vsel %vm1451_vm10, %v1440_v50, %v3877_v38  ;;  %v892_v53 = vrot.slane %v891_v31, 4 }
 0x101   : > { %1178 = vrot.lane.b32.xlu0 %v3198_v1, %s2984_s27  ;;  %v1506_v9 = vsel %vm1484_vm11, %v1473_v36, %v1220_v0  ;;  %v4455_v36 = vld [vmem:[#allocation2_spill] sm:$0xff] }
 0x102   : > { %1229 = vrot.lane.b32.xlu1 %v3937_v27, %s2985_s28  ;;  %v1539_v24 = vsel %vm1517_vm12, %v1506_v9, %v1255_v29  ;;  %v897_v29 = vsel %vm3110_vm5, %v892_v53, %v896_v55 }
 0x103   : > { %v3951_v6 = vpop.permute.xlu0 %1240  ;;  %v1572_v56 = vsel %vm1550_vm13, %v1539_v24, %v1290_v34 }
 0x104   : > { %v1292_v19 = vpop.permute.xlu1 %1291 }
 0x105   : > { %1211 = vrot.lane.b32.xlu0 %v3863_v13, %s2985_s28  ;;  %v1345_v13 = vsel %vm1336_vm7, %v3205_v37, %v3807_v21 }
 0x106   : > { %1262 = vrot.lane.b32.xlu1 %v2536_v44, %s2986_s29  ;;  %v1372_v44 = vsel %vm1336_vm7, %v3277_v32, %v3813_v28  ;;  %v1391_v0 = vsel %vm1385_vm8, %v1345_v13, %v3855_v17  ;;  %v907_v32 = vsel %vm3110_vm5, %v902_v43, %v906_v3  ;;  %v913_v28 = vrot.slane %v3917_v61, 5 }
 0x107   : > { %v1274_v33 = vpop.permute.xlu0 %1273  ;;  %v1409_v37 = vsel %vm1385_vm8, %v1372_v44, %v3845_v59  ;;  %v1424_v21 = vsel %vm1418_vm9, %v1391_v0, %v3875_v45 }
 0x108   : > { %v1325_v7 = vpop.permute.xlu1 %1324  ;;  %v1442_v17 = vsel %vm1418_vm9, %v1409_v37, %v3869_v12  ;;  %v1457_v63 = vsel %vm1451_vm10, %v1424_v21, %v3892_v5  ;;  %v2540_v12 = vcombine.low %v897_v29, %v907_v32  ;;  %v2487_v5 = vrot.slane %v3914_v30, 9  ;;  %v4456_v21 = vld [vmem:[#allocation5_spill] sm:$0xff] }
 0x109   : > { %1213 = vrot.lane.b32.xlu0 %v3096_v41, %s2985_s28  ;;  %v1605_v38 = vsel %vm1583_vm14, %v1572_v56, %v1325_v7  ;;  %v1475_v59 = vsel %vm1451_vm10, %v1442_v17, %v3886_v52  ;;  %v1490_v45 = vsel %vm1484_vm11, %v1457_v63, %v3911_v14  ;;  %v915_v14 = vrot.slane %v913_v28, 4 }
 0x10a   : > { %1264 = vrot.lane.b32.xlu1 %v2539_v22, %s2986_s29  ;;  %2787 = vmatprep.mubr.msk.bf16.mxu1 %vm1636_vm15, %v1605_v38  ;;  %v1508_v51 = vsel %vm1484_vm11, %v1475_v59, %v3903_v26  ;;  %v1523_v61 = vsel %vm1517_vm12, %v1490_v45, %v1239_v49  ;;  %v4453_v49 = vld [vmem:[#allocation4_spill] sm:$0xff] }
 0x10b   : > { %v1276_v8 = vpop.permute.xlu0 %1275  ;;  %v1541_v25 = vsel %vm1517_vm12, %v1508_v51, %v1257_v11  ;;  %v1556_v52 = vsel %vm1550_vm13, %v1523_v61, %v1274_v33 }
 0x10c   : > { %v3992_v46 = vpop.permute.xlu1 %1038 }
 0x10d   : > { %1246 = vrot.lane.b32.xlu0 %v3641_v40, %s2986_s29  ;;  %v1574_v40 = vsel %vm1550_vm13, %v1541_v25, %v1292_v19  ;;  %v4454_v19 = vld [vmem:[#allocation3_spill] sm:$0xff]  ;;  %v4457_v25 = vld [vmem:[#allocation6_spill] sm:$0xff] }
 0x10e   : > { %1297 = vrot.lane.b32.xlu1 %v3909_v47, %s2987_s7  ;;  %v1348_v47 = vsel %vm1336_vm7, %v4453_v49, %v3843_v15  ;;  %v914_v15 = vsel %vm3065_vm4, %v2487_v5, %v913_v28 }
 0x10f   : > { %v1309_v55 = vpop.permute.xlu0 %1308  ;;  %v1393_v11 = vsel %vm1385_vm8, %v1348_v47, %v3867_v48 }
 0x110   : > { %v1589_v26 = vsel %vm1583_vm14, %v1556_v52, %v1309_v55  ;;  %v1327_v34 = vpop.permute.xlu1 %1326  ;;  %v1426_v60 = vsel %vm1418_vm9, %v1393_v11, %v3884_v10  ;;  %v4458_v55 = vld [vmem:[#allocation7_spill] sm:$0xff] }
 0x111   : > { %1248 = vrot.lane.b32.xlu0 %v3045_v4, %s2986_s29  ;;  %2771 = vmatprep.mubr.msk.bf16.mxu0 %vm1636_vm15, %v1589_v26  ;;  %v1607_v30 = vsel %vm1583_vm14, %v1574_v40, %v1327_v34  ;;  %v917_v4 = vsel %vm3065_vm4, %v915_v14, %v916_v54  ;;  %v1459_v31 = vsel %vm1451_vm10, %v1426_v60, %v3897_v39 }
 0x112   : > { %1299 = vrot.lane.b32.xlu1 %v2540_v12, %s2987_s7  ;;  %2788 = vmatmul.mubr.msk.bf16.gmra.mrb[4].mxu1 %vm1636_vm15, %v1607_v30  ;;  %v1492_v48 = vsel %vm1484_vm11, %v1459_v31, %v3925_v18  ;;  %v2541_v23 = vcombine.low %v914_v15, %v917_v4 }
 0x113   : > { %v1023_v58 = vpop.permute.xlu0 %1022  ;;  %v1525_v10 = vsel %vm1517_vm12, %v1492_v48, %v3951_v6 }
 0x114   : > { %v1041_v35 = vpop.permute.xlu1 %1040  ;;  %v1558_v16 = vsel %vm1550_vm13, %v1525_v10, %v1276_v8  ;;  %v1375_v8 = vsel %vm1336_vm7, %v4456_v21, %v3992_v46  ;;  %v1351_v52 = vsel %vm1336_vm7, %v4457_v25, %v1023_v58 }
 0x115   : > { %1281 = vrot.lane.b32.xlu0 %v3198_v1, %s2987_s7  ;;  %v1378_v14 = vsel %vm1336_vm7, %v4458_v55, %v1041_v35 }
 0x116   : > { %1332 = vrot.lane.b32.xlu1 %v3937_v27, %s2988_s10 }
 0x117   : > { %v1311_v62 = vpop.permute.xlu0 %1310 }
 0x118   : > { %v1591_v50 = vsel %vm1583_vm14, %v1558_v16, %v1311_v62  ;;  %v1119_v39 = vpop.permute.xlu1 %1118  ;;  %v4459_v16 = vld [vmem:[#allocation8_spill] sm:$0xff] }
 0x119   : > { %1283 = vrot.lane.b32.xlu0 %v4454_v19, %s2987_s7  ;;  %2772 = vmatmul.mubr.msk.bf16.gmra.mrb[4].mxu0 %vm1636_vm15, %v1591_v50  ;;  %v1411_v32 = vsel %vm1385_vm8, %v1375_v8, %v1119_v39 }
 0x11a   : > { %1334 = vrot.lane.b32.xlu1 %v2541_v23, %s2988_s10 }
 0x11b   : > { %v1025_v1 = vpop.permute.xlu0 %1024 }
 0x11c   : > { %v1121_v18 = vpop.permute.xlu1 %1120  ;;  %v1354_v62 = vsel %vm1336_vm7, %v4459_v16, %v1025_v1 }
 0x11d   : > { %1316 = vrot.lane.b32.xlu0 %v3096_v41, %s2988_s10  ;;  %v1413_v40 = vsel %vm1385_vm8, %v1378_v14, %v1121_v18 }
 0x11f   : > { %v1103_v27 = vpop.permute.xlu0 %1102 }
 0x120   : > { %v1154_v6 = vpop.permute.xlu1 %1153  ;;  %v1395_v54 = vsel %vm1385_vm8, %v1351_v52, %v1103_v27 }
 0x121   : > { %1318 = vrot.lane.b32.xlu0 %v4455_v36, %s2988_s10  ;;  %v1444_v17 = vsel %vm1418_vm9, %v1411_v32, %v1154_v6 }
 0x123   : > { %v1105_v9 = vpop.permute.xlu0 %1104 }
 0x124   : > { %v1156_v22 = vpop.permute.xlu1 %1155  ;;  %v1397_v39 = vsel %vm1385_vm8, %v1354_v62, %v1105_v9 }
 0x125   : > { %v1446_v49 = vsel %vm1418_vm9, %v1413_v40, %v1156_v22 }
 0x127   : > { %v1138_v53 = vpop.permute.xlu0 %1137 }
 0x128   : > { %v1189_v24 = vpop.permute.xlu1 %1188  ;;  %v1428_v26 = vsel %vm1418_vm9, %v1395_v54, %v1138_v53 }
 0x129   : > { %v1477_v59 = vsel %vm1451_vm10, %v1444_v17, %v1189_v24 }
 0x12b   : > { %v1140_v33 = vpop.permute.xlu0 %1139 }
 0x12c   : > { %v1191_v43 = vpop.permute.xlu1 %1190  ;;  %v1430_v19 = vsel %vm1418_vm9, %v1397_v39, %v1140_v33 }
 0x12d   : > { %v1479_v11 = vsel %vm1451_vm10, %v1446_v49, %v1191_v43 }
 0x12f   : > { %v1173_v3 = vpop.permute.xlu0 %1172 }
 0x130   : > { %v1224_v56 = vpop.permute.xlu1 %1223  ;;  %v1461_v47 = vsel %vm1451_vm10, %v1428_v26, %v1173_v3 }
 0x131   : > { %v1510_v45 = vsel %vm1484_vm11, %v1477_v59, %v1224_v56 }
 0x133   : > { %v1175_v7 = vpop.permute.xlu0 %1174 }
 0x134   : > { %v1226_v13 = vpop.permute.xlu1 %1225  ;;  %v1463_v27 = vsel %vm1451_vm10, %v1430_v19, %v1175_v7 }
 0x135   : > { %v1512_v58 = vsel %vm1484_vm11, %v1479_v11, %v1226_v13 }
 0x137   : > { %v1208_v38 = vpop.permute.xlu0 %1207 }
 0x138   : > { %v1259_v44 = vpop.permute.xlu1 %1258  ;;  %v1494_v60 = vsel %vm1484_vm11, %v1461_v47, %v1208_v38 }
 0x139   : > { %v1543_v51 = vsel %vm1517_vm12, %v1510_v45, %v1259_v44 }
 0x13b   : > { %v1210_v0 = vpop.permute.xlu0 %1209 }
 0x13c   : > { %v1261_v29 = vpop.permute.xlu1 %1260  ;;  %v1496_v36 = vsel %vm1484_vm11, %v1463_v27, %v1210_v0 }
 0x13d   : > { %v1545_v4 = vsel %vm1517_vm12, %v1512_v58, %v1261_v29 }
 0x13f   : > { %v1243_v41 = vpop.permute.xlu0 %1242 }
 0x140   : > { %v1294_v37 = vpop.permute.xlu1 %1293  ;;  %v1527_v15 = vsel %vm1517_vm12, %v1494_v60, %v1243_v41 }
 0x141   : > { %v1576_v12 = vsel %vm1550_vm13, %v1543_v51, %v1294_v37 }
 0x143   : > { %v1245_v28 = vpop.permute.xlu0 %1244 }
 0x144   : > { %v1296_v63 = vpop.permute.xlu1 %1295  ;;  %v1529_v22 = vsel %vm1517_vm12, %v1496_v36, %v1245_v28 }
 0x145   : > { %v1578_v48 = vsel %vm1550_vm13, %v1545_v4, %v1296_v63 }
 0x147   : > { %v1278_v61 = vpop.permute.xlu0 %1277 }
 0x148   : > { %v1329_v5 = vpop.permute.xlu1 %1328  ;;  %v1560_v31 = vsel %vm1550_vm13, %v1527_v15, %v1278_v61 }
 0x149   : > { %v1609_v46 = vsel %vm1583_vm14, %v1576_v12, %v1329_v5 }
 0x14a   : > { %2791 = vmatprep.mubr.msk.bf16.mxu1 %vm1636_vm15, %v1609_v46 }
 0x14b   : > { %v1280_v34 = vpop.permute.xlu0 %1279 }
 0x14c   : > { %v1043_v30 = vpop.permute.xlu1 %1042  ;;  %v1562_v1 = vsel %vm1550_vm13, %v1529_v22, %v1280_v34 }
 0x14d   : > { %v1381_v51 = vsel %vm1336_vm7, %v3593_v42, %v1043_v30 }
 0x14f   : > { %v1313_v35 = vpop.permute.xlu0 %1312 }
 0x150   : > { %v1593_v10 = vsel %vm1583_vm14, %v1560_v31, %v1313_v35  ;;  %v1331_v23 = vpop.permute.xlu1 %1330 }
 0x151   : > { %2775 = vmatprep.mubr.msk.bf16.mxu0 %vm1636_vm15, %v1593_v10  ;;  %v1611_v50 = vsel %vm1583_vm14, %v1578_v48, %v1331_v23 }
 0x152   : > { %2792 = vmatmul.mubr.msk.bf16.gmra.mrb[8].mxu1 %vm1636_vm15, %v1611_v50 }
 0x153   : > { %v1027_v18 = vpop.permute.xlu0 %1026 }
 0x154   : > { %v1045_v6 = vpop.permute.xlu1 %1044  ;;  %v1357_v49 = vsel %vm1336_vm7, %v3622_v20, %v1027_v18 }
 0x155   : > { %v1384_v46 = vsel %vm1336_vm7, %v3716_v57, %v1045_v6 }
 0x157   : > { %v1315_v53 = vpop.permute.xlu0 %1314 }
 0x158   : > { %v1595_v24 = vsel %vm1583_vm14, %v1562_v1, %v1315_v53  ;;  %v1123_v43 = vpop.permute.xlu1 %1122  ;;  %v4132_v1 = vld [vmem:[%s4431_s2] ss:$0 sm:$0xff] }
 0x159   : > { %2776 = vmatmul.mubr.msk.bf16.gmra.mrb[8].mxu0 %vm1636_vm15, %v1595_v24  ;;  %v1415_v61 = vsel %vm1385_vm8, %v1381_v51, %v1123_v43  ;;  %v4137_v53 = vld [vmem:[%s4432_s3] ss:$0 sm:$0xff] }
 0x15b   : > { %v1029_v9 = vpop.permute.xlu0 %1028 }
 0x15c   : > { %v1125_v3 = vpop.permute.xlu1 %1124  ;;  %v1360_v35 = vsel %vm1336_vm7, %v3764_v2, %v1029_v9 }
 0x15d   : > { %v1417_v14 = vsel %vm1385_vm8, %v1384_v46, %v1125_v3 }
 0x15f   : > { %v1107_v56 = vpop.permute.xlu0 %1106 }
 0x160   : > { %v1158_v33 = vpop.permute.xlu1 %1157  ;;  %v1399_v57 = vsel %vm1385_vm8, %v1357_v49, %v1107_v56 }
 0x161   : > { %v1448_v5 = vsel %vm1418_vm9, %v1415_v61, %v1158_v33 }
 0x163   : > { %v1109_v13 = vpop.permute.xlu0 %1108 }
 0x164   : > { %v1160_v38 = vpop.permute.xlu1 %1159  ;;  %v1401_v23 = vsel %vm1385_vm8, %v1360_v35, %v1109_v13  ;;  %v2734_v35 = vld [vmem:[%s4185_s22 + $0x40] sm:$0xff]  }
 0x165   : > { %v1450_v42 = vsel %vm1418_vm9, %v1417_v14, %v1160_v38 }
 0x167   : > { %v1142_v7 = vpop.permute.xlu0 %1141 }
 0x168   : > { %v1193_v44 = vpop.permute.xlu1 %1192  ;;  %v1432_v60 = vsel %vm1418_vm9, %v1399_v57, %v1142_v7 }
 0x169   : > { %v1481_v52 = vsel %vm1451_vm10, %v1448_v5, %v1193_v44 }
 0x16b   : > { %v1144_v29 = vpop.permute.xlu0 %1143 }
 0x16c   : > { %v1195_v0 = vpop.permute.xlu1 %1194  ;;  %v1434_v62 = vsel %vm1418_vm9, %v1401_v23, %v1144_v29 }
 0x16d   : > { %v1483_v47 = vsel %vm1451_vm10, %v1450_v42, %v1195_v0 }
 0x16f   : > { %v1177_v41 = vpop.permute.xlu0 %1176 }
 0x170   : > { %v1228_v37 = vpop.permute.xlu1 %1227  ;;  %v1465_v4 = vsel %vm1451_vm10, %v1432_v60, %v1177_v41 }
 0x171   : > { %v1514_v55 = vsel %vm1484_vm11, %v1481_v52, %v1228_v37 }
 0x173   : > { %v1179_v21 = vpop.permute.xlu0 %1178 }
 0x174   : > { %v1230_v8 = vpop.permute.xlu1 %1229  ;;  %v1467_v19 = vsel %vm1451_vm10, %v1434_v62, %v1179_v21  ;;  %v2697_v62 = vunpack.c.l.bf16 %v2734_v35 }
 0x175   : > { %v1516_v11 = vsel %vm1484_vm11, %v1483_v47, %v1230_v8 }
 0x177   : > { %v1212_v32 = vpop.permute.xlu0 %1211 }
 0x178   : > { %v1263_v28 = vpop.permute.xlu1 %1262  ;;  %v1498_v48 = vsel %vm1484_vm11, %v1465_v4, %v1212_v32  ;;  %v2735_v4 = vld [vmem:[%s4185_s22 + $0x48] sm:$0xff]  }
 0x179   : > { %v1547_v54 = vsel %vm1517_vm12, %v1514_v55, %v1263_v28  ;;  %v2701_v23 = vunpack.c.l.bf16 %v2735_v4 }
 0x17b   : > { %v1214_v17 = vpop.permute.xlu0 %1213 }
 0x17c   : > { %v1265_v63 = vpop.permute.xlu1 %1264  ;;  %v1500_v2 = vsel %vm1484_vm11, %v1467_v19, %v1214_v17  ;;  %v2702_v19 = vunpack.c.h.bf16 %v2735_v4 }
 0x17d   : > { %v1549_v58 = vsel %vm1517_vm12, %v1516_v11, %v1265_v63 }
 0x17f   : > { %v1247_v59 = vpop.permute.xlu0 %1246 }
 0x180   : > { %v1298_v45 = vpop.permute.xlu1 %1297  ;;  %v1531_v16 = vsel %vm1517_vm12, %v1498_v48, %v1247_v59 }
 0x181   : > { %v1580_v26 = vsel %vm1550_vm13, %v1547_v54, %v1298_v45 }
 0x183   : > { %v1249_v12 = vpop.permute.xlu0 %1248 }
 0x184   : > { %v1300_v25 = vpop.permute.xlu1 %1299  ;;  %v1533_v27 = vsel %vm1517_vm12, %v1500_v2, %v1249_v12 }
 0x185   : > { %v1582_v31 = vsel %vm1550_vm13, %v1549_v58, %v1300_v25 }
 0x187   : > { %v1282_v40 = vpop.permute.xlu0 %1281 }
 0x188   : > { %v1333_v34 = vpop.permute.xlu1 %1332  ;;  %v1564_v50 = vsel %vm1550_vm13, %v1531_v16, %v1282_v40 }
 0x189   : > { %v1613_v30 = vsel %vm1583_vm14, %v1580_v26, %v1333_v34 }
 0x18a   : > { %2795 = vmatprep.mubr.msk.bf16.mxu1 %vm1636_vm15, %v1613_v30 }
 0x18b   : > { %v1284_v15 = vpop.permute.xlu0 %1283 }
 0x18c   : > { %v1335_v20 = vpop.permute.xlu1 %1334  ;;  %v1566_v6 = vsel %vm1550_vm13, %v1533_v27, %v1284_v15  ;;  %v2698_v27 = vunpack.c.h.bf16 %v2734_v35 }
 0x18d   : > { %v1615_v10 = vsel %vm1583_vm14, %v1582_v31, %v1335_v20 }
 0x18e   : > { %2796 = vmatmul.mubr.msk.bf16.gmra.mrb[12].mxu1 %vm1636_vm15, %v1615_v10 }
 0x18f   : > { %v1317_v39 = vpop.permute.xlu0 %1316 }
 0x190   : > { %v1597_v18 = vsel %vm1583_vm14, %v1564_v50, %v1317_v39 }
 0x191   : > { %2779 = vmatprep.mubr.msk.bf16.mxu0 %vm1636_vm15, %v1597_v18 }
 0x193   : > { %v1319_v36 = vpop.permute.xlu0 %1318 }
 0x194   : > { %v1599_v22 = vsel %vm1583_vm14, %v1566_v6, %v1319_v36  ;;  %v2727_v36 = vld [vmem:[%s4185_s22 + $0x8] sm:$0xff]  }
 0x195   : > { %2780 = vmatmul.mubr.msk.bf16.gmra.mrb[12].mxu0 %vm1636_vm15, %v1599_v22 }
 0x1a5   : > { %v2785_v24 = vpop.f32.mrb[0].mxu1 }
 0x1a6   : > { %v1859_v43 = vmul.f32 %v2785_v24, %v4132_v1  ;;  %v1771_v9 = vpop.f32.mrb[1].mxu1 }
 0x1a7   : > { %v1857_v3 = vmul.f32 %v4132_v1, %v1771_v9  ;;  %v2786_v56 = vpop.f32.mrb[2].mxu1 }
 0x1a8   : > { %v4142_v33 = vadd.f32 %v4137_v53, %v1859_v43  ;;  %v1860_v13 = vmul.f32 %v2786_v56, %v4132_v1  ;;  %v1774_v38 = vpop.f32.mrb[3].mxu1  ;;  %v2664_v43 = vld [vmem:[%s4185_s22] sm:$0xff]  }
 0x1a9   : > { %v4146_v7 = vadd.f32 %v4137_v53, %v1857_v3  ;;  %v1858_v44 = vmul.f32 %v4132_v1, %v1774_v38 }
 0x1aa   : > { %v2581_v29 = vmul.f32 -1.442695, %v4142_v33  ;;  %v4151_v0 = vadd.f32 %v4137_v53, %v1860_v13  ;;  %v2669_v13 = vunpack.c.l.bf16 %v2727_v36 }
 0x1ab   : > { %v2579_v41 = vmul.f32 -1.442695, %v4146_v7  ;;  %v4155_v37 = vadd.f32 %v4137_v53, %v1858_v44 }
 0x1ac   : > { %v2769_v21 = vpop.f32.mrb[0].mxu0  ;;  %2845 = vpow2.f32 %v2581_v29  ;;  %v2582_v8 = vmul.f32 -1.442695, %v4151_v0  ;;  %v2665_v29 = vunpack.c.l.bf16 %v2664_v43 }
 0x1ad   : > { %v1843_v32 = vmul.f32 %v2769_v21, %v4132_v1  ;;  %v1707_v28 = vpop.f32.mrb[1].mxu0  ;;  %2847 = vpow2.f32 %v2579_v41  ;;  %v2580_v17 = vmul.f32 -1.442695, %v4155_v37 }
 0x1ae   : > { %v1841_v63 = vmul.f32 %v4132_v1, %v1707_v28  ;;  %v2770_v59 = vpop.f32.mrb[2].mxu0  ;;  %2849 = vpow2.f32 %v2582_v8  ;;  %v2670_v8 = vunpack.c.h.bf16 %v2727_v36 }
 0x1af   : > { %v4162_v45 = vadd.f32 %v4137_v53, %v1843_v32  ;;  %v1844_v51 = vmul.f32 %v2770_v59, %v4132_v1  ;;  %v1710_v61 = vpop.f32.mrb[3].mxu0  ;;  %2851 = vpow2.f32 %v2580_v17  ;;  %v2666_v17 = vunpack.c.h.bf16 %v2664_v43 }
 0x1b0   : > { %v4166_v12 = vadd.f32 %v4137_v53, %v1841_v63  ;;  %v1842_v5 = vmul.f32 %v4132_v1, %v1710_v61 }
 0x1b1   : > { %v2565_v25 = vmul.f32 -1.442695, %v4162_v45  ;;  %v4171_v52 = vadd.f32 %v4137_v53, %v1844_v51 }
 0x1b2   : > { %v2563_v46 = vmul.f32 -1.442695, %v4166_v12  ;;  %v4175_v55 = vadd.f32 %v4137_v53, %v1842_v5 }
 0x1b3   : > { %2853 = vpow2.f32 %v2565_v25  ;;  %v2566_v14 = vmul.f32 -1.442695, %v4171_v52 }
 0x1b4   : > { %2855 = vpow2.f32 %v2563_v46  ;;  %v2564_v54 = vmul.f32 -1.442695, %v4175_v55 }
 0x1b5   : > { %2857 = vpow2.f32 %v2566_v14 }
 0x1b6   : > { %v2846_v40 = vpop.eup %2845  ;;  %2859 = vpow2.f32 %v2564_v54 }
 0x1b7   : > { %v2848_v42 = vpop.eup %2847  ;;  %v2026_v26 = vadd.f32 1.0, %v2846_v40 }
 0x1b8   : > { %v2850_v34 = vpop.eup %2849  ;;  %v2024_v49 = vadd.f32 1.0, %v2848_v42 }
 0x1b9   : > { %v2852_v47 = vpop.eup %2851  ;;  %2861 = vrcp.f32 %v2026_v26  ;;  %v2027_v30 = vadd.f32 1.0, %v2850_v34 }
 0x1ba   : > { %2863 = vrcp.f32 %v2024_v49  ;;  %v2025_v57 = vadd.f32 1.0, %v2852_v47 }
 0x1bb   : > { %2865 = vrcp.f32 %v2027_v30 }
 0x1bc   : > { %2867 = vrcp.f32 %v2025_v57 }
 0x1bd   : > { %v2854_v11 = vpop.eup %2853 }
 0x1be   : > { %v2856_v60 = vpop.eup %2855  ;;  %v2010_v58 = vadd.f32 1.0, %v2854_v11 }
 0x1bf   : > { %v2858_v15 = vpop.eup %2857  ;;  %v2008_v31 = vadd.f32 1.0, %v2856_v60 }
 0x1c0   : > { %v2860_v20 = vpop.eup %2859  ;;  %2869 = vrcp.f32 %v2010_v58  ;;  %v2011_v48 = vadd.f32 1.0, %v2858_v15 }
 0x1c1   : > { %2871 = vrcp.f32 %v2008_v31  ;;  %v2009_v10 = vadd.f32 1.0, %v2860_v20 }
 0x1c2   : > { %2873 = vrcp.f32 %v2011_v48 }
 0x1c3   : > { %v2862_v16 = vpop.eup %2861  ;;  %2875 = vrcp.f32 %v2009_v10 }
 0x1c4   : > { %v2864_v50 = vpop.eup %2863  ;;  %v2122_v39 = vmul.f32 %v2862_v16, %v4142_v33 }
 0x1c5   : > { %v2866_v18 = vpop.eup %2865  ;;  %v2120_v2 = vmul.f32 %v2864_v50, %v4146_v7 }
 0x1c6   : > { %v2868_v6 = vpop.eup %2867  ;;  %v2218_v22 = vadd.f32 %v2701_v23, %v2122_v39  ;;  %v2123_v24 = vmul.f32 %v2866_v18, %v4151_v0 }
 0x1c7   : > { %v2216_v9 = vadd.f32 %v2697_v62, %v2120_v2  ;;  %v2121_v3 = vmul.f32 %v2868_v6, %v4155_v37 }
 0x1c8   : > { %v2649_v56 = vpack.c.bf16 %v2218_v22, %v2218_v22  ;;  %v2219_v33 = vadd.f32 %v2702_v19, %v2123_v24 }
 0x1c9   : > { %v2647_v38 = vpack.c.bf16 %v2216_v9, %v2216_v9  ;;  %v2217_v7 = vadd.f32 %v2698_v27, %v2121_v3 }
 0x1ca   : > { %v2870_v44 = vpop.eup %2869  ;;  %2379 = vst.msk [vmem:[%s4198_s25 + $0x48] sm:$0xf] %vm2360_vm0, %v2649_v56  ;;  %v2650_v0 = vpack.c.bf16 %v2219_v33, %v2219_v33 }
 0x1cb   : > { %v2872_v41 = vpop.eup %2871  ;;  %v2106_v21 = vmul.f32 %v2870_v44, %v4162_v45  ;;  %2377 = vst.msk [vmem:[%s4198_s25 + $0x40] sm:$0xf] %vm2360_vm0, %v2647_v38  ;;  %v2648_v37 = vpack.c.bf16 %v2217_v7, %v2217_v7 }
 0x1cc   : > { %v2874_v32 = vpop.eup %2873  ;;  %v2104_v28 = vmul.f32 %v2872_v41, %v4166_v12  ;;  %2380 = vst.msk [vmem:[%s4198_s25 + $0x4c] sm:$0xf] %vm2360_vm0, %v2650_v0  ;;  %v2737_v41 = vld [vmem:[%s4185_s22 + $0x58] sm:$0xff]  }
 0x1cd   : > { %v2876_v63 = vpop.eup %2875  ;;  %v2202_v59 = vadd.f32 %v2669_v13, %v2106_v21  ;;  %v2107_v51 = vmul.f32 %v2874_v32, %v4171_v52  ;;  %2378 = vst.msk [vmem:[%s4198_s25 + $0x44] sm:$0xf] %vm2360_vm0, %v2648_v37  ;;  %v2736_v37 = vld [vmem:[%s4185_s22 + $0x50] sm:$0xff]  }
 0x1ce   : > { %v2200_v45 = vadd.f32 %v2665_v29, %v2104_v28  ;;  %v2105_v61 = vmul.f32 %v2876_v63, %v4175_v55 }
 0x1cf   : > { %v2633_v5 = vpack.c.bf16 %v2202_v59, %v2202_v59  ;;  %v2203_v25 = vadd.f32 %v2670_v8, %v2107_v51  ;;  %v2705_v59 = vunpack.c.l.bf16 %v2736_v37 }
 0x1d0   : > { %v2631_v46 = vpack.c.bf16 %v2200_v45, %v2200_v45  ;;  %v2201_v14 = vadd.f32 %v2666_v17, %v2105_v61  ;;  %v2709_v17 = vunpack.c.l.bf16 %v2737_v41  ;;  %v2710_v61 = vunpack.c.h.bf16 %v2737_v41 }
 0x1d1   : > { %2363 = vst.msk [vmem:[%s4198_s25 + $0x8] sm:$0xf] %vm2360_vm0, %v2633_v5  ;;  %v2634_v12 = vpack.c.bf16 %v2203_v25, %v2203_v25 }
 0x1d2   : > { %2361 = vst.msk [vmem:[%s4198_s25] sm:$0xf] %vm2360_vm0, %v2631_v46  ;;  %v2632_v54 = vpack.c.bf16 %v2201_v14, %v2201_v14  ;;  %v2706_v46 = vunpack.c.h.bf16 %v2736_v37 }
 0x1d3   : > { %2364 = vst.msk [vmem:[%s4198_s25 + $0xc] sm:$0xf] %vm2360_vm0, %v2634_v12  ;;  %v2729_v12 = vld [vmem:[%s4185_s22 + $0x18] sm:$0xff]  }
 0x1d4   : > { %2362 = vst.msk [vmem:[%s4198_s25 + $0x4] sm:$0xf] %vm2360_vm0, %v2632_v54 }
 0x1e5   : > { %v2789_v52 = vpop.f32.mrb[4].mxu1 }
 0x1e6   : > { %v1863_v40 = vmul.f32 %v2789_v52, %v4132_v1  ;;  %v1787_v42 = vpop.f32.mrb[5].mxu1 }
 0x1e7   : > { %v1861_v55 = vmul.f32 %v4132_v1, %v1787_v42  ;;  %v2790_v26 = vpop.f32.mrb[6].mxu1 }
 0x1e8   : > { %v4225_v34 = vadd.f32 %v4137_v53, %v1863_v40  ;;  %v1864_v49 = vmul.f32 %v2790_v26, %v4132_v1  ;;  %v1790_v47 = vpop.f32.mrb[7].mxu1  ;;  %v2728_v40 = vld [vmem:[%s4185_s22 + $0x10] sm:$0xff]  }
 0x1e9   : > { %v4229_v30 = vadd.f32 %v4137_v53, %v1861_v55  ;;  %v1862_v57 = vmul.f32 %v4132_v1, %v1790_v47 }
 0x1ea   : > { %v2585_v11 = vmul.f32 -1.442695, %v4225_v34  ;;  %v4234_v60 = vadd.f32 %v4137_v53, %v1864_v49 }
 0x1eb   : > { %v2583_v58 = vmul.f32 -1.442695, %v4229_v30  ;;  %v4238_v15 = vadd.f32 %v4137_v53, %v1862_v57 }
 0x1ec   : > { %v2773_v4 = vpop.f32.mrb[4].mxu0  ;;  %2877 = vpow2.f32 %v2585_v11  ;;  %v2586_v31 = vmul.f32 -1.442695, %v4234_v60 }
 0x1ed   : > { %v1847_v20 = vmul.f32 %v2773_v4, %v4132_v1  ;;  %v1723_v35 = vpop.f32.mrb[5].mxu0  ;;  %2879 = vpow2.f32 %v2583_v58  ;;  %v2584_v48 = vmul.f32 -1.442695, %v4238_v15 }
 0x1ee   : > { %v1845_v10 = vmul.f32 %v4132_v1, %v1723_v35  ;;  %v2774_v23 = vpop.f32.mrb[6].mxu0  ;;  %2881 = vpow2.f32 %v2586_v31 }
 0x1ef   : > { %v4245_v16 = vadd.f32 %v4137_v53, %v1847_v20  ;;  %v1848_v62 = vmul.f32 %v2774_v23, %v4132_v1  ;;  %v1726_v50 = vpop.f32.mrb[7].mxu0  ;;  %2883 = vpow2.f32 %v2584_v48  ;;  %v2674_v48 = vunpack.c.h.bf16 %v2728_v40 }
 0x1f0   : > { %v4249_v39 = vadd.f32 %v4137_v53, %v1845_v10  ;;  %v1846_v19 = vmul.f32 %v4132_v1, %v1726_v50 }
 0x1f1   : > { %v2569_v18 = vmul.f32 -1.442695, %v4245_v16  ;;  %v4254_v2 = vadd.f32 %v4137_v53, %v1848_v62 }
 0x1f2   : > { %v2567_v27 = vmul.f32 -1.442695, %v4249_v39  ;;  %v4258_v6 = vadd.f32 %v4137_v53, %v1846_v19 }
 0x1f3   : > { %2885 = vpow2.f32 %v2569_v18  ;;  %v2570_v36 = vmul.f32 -1.442695, %v4254_v2 }
 0x1f4   : > { %2887 = vpow2.f32 %v2567_v27  ;;  %v2568_v22 = vmul.f32 -1.442695, %v4258_v6 }
 0x1f5   : > { %2889 = vpow2.f32 %v2570_v36 }
 0x1f6   : > { %v2878_v24 = vpop.eup %2877  ;;  %2891 = vpow2.f32 %v2568_v22 }
 0x1f7   : > { %v2880_v43 = vpop.eup %2879  ;;  %v2030_v9 = vadd.f32 1.0, %v2878_v24 }
 0x1f8   : > { %v2882_v3 = vpop.eup %2881  ;;  %v2028_v56 = vadd.f32 1.0, %v2880_v43 }
 0x1f9   : > { %v2884_v33 = vpop.eup %2883  ;;  %2893 = vrcp.f32 %v2030_v9  ;;  %v2031_v13 = vadd.f32 1.0, %v2882_v3 }
 0x1fa   : > { %2895 = vrcp.f32 %v2028_v56  ;;  %v2029_v38 = vadd.f32 1.0, %v2884_v33 }
 0x1fb   : > { %2897 = vrcp.f32 %v2031_v13 }
 0x1fc   : > { %2899 = vrcp.f32 %v2029_v38 }
 0x1fd   : > { %v2886_v7 = vpop.eup %2885 }
 0x1fe   : > { %v2888_v44 = vpop.eup %2887  ;;  %v2014_v29 = vadd.f32 1.0, %v2886_v7 }
 0x1ff   : > { %v2890_v0 = vpop.eup %2889  ;;  %v2012_v21 = vadd.f32 1.0, %v2888_v44 }
 0x200   : > { %v2892_v8 = vpop.eup %2891  ;;  %2901 = vrcp.f32 %v2014_v29  ;;  %v2015_v32 = vadd.f32 1.0, %v2890_v0 }
 0x201   : > { %2903 = vrcp.f32 %v2012_v21  ;;  %v2013_v28 = vadd.f32 1.0, %v2892_v8 }
 0x202   : > { %2905 = vrcp.f32 %v2015_v32 }
 0x203   : > { %v2894_v63 = vpop.eup %2893  ;;  %2907 = vrcp.f32 %v2013_v28 }
 0x204   : > { %v2896_v51 = vpop.eup %2895  ;;  %v2126_v45 = vmul.f32 %v2894_v63, %v4225_v34  ;;  %v2677_v34 = vunpack.c.l.bf16 %v2729_v12 }
 0x205   : > { %v2898_v5 = vpop.eup %2897  ;;  %v2124_v25 = vmul.f32 %v2896_v51, %v4229_v30  ;;  %v2673_v30 = vunpack.c.l.bf16 %v2728_v40 }
 0x206   : > { %v2900_v14 = vpop.eup %2899  ;;  %v2222_v54 = vadd.f32 %v2709_v17, %v2126_v45  ;;  %v2127_v52 = vmul.f32 %v2898_v5, %v4234_v60  ;;  %v2678_v60 = vunpack.c.h.bf16 %v2729_v12 }
 0x207   : > { %v2220_v42 = vadd.f32 %v2705_v59, %v2124_v25  ;;  %v2125_v55 = vmul.f32 %v2900_v14, %v4238_v15 }
 0x208   : > { %v2653_v26 = vpack.c.bf16 %v2222_v54, %v2222_v54  ;;  %v2223_v49 = vadd.f32 %v2710_v61, %v2127_v52 }
 0x209   : > { %v2651_v47 = vpack.c.bf16 %v2220_v42, %v2220_v42  ;;  %v2221_v57 = vadd.f32 %v2706_v46, %v2125_v55 }
 0x20a   : > { %v2902_v11 = vpop.eup %2901  ;;  %2383 = vst.msk [vmem:[%s4198_s25 + $0x58] sm:$0xf] %vm2360_vm0, %v2653_v26  ;;  %v2654_v58 = vpack.c.bf16 %v2223_v49, %v2223_v49 }
 0x20b   : > { %v2904_v4 = vpop.eup %2903  ;;  %v2110_v31 = vmul.f32 %v2902_v11, %v4245_v16  ;;  %2381 = vst.msk [vmem:[%s4198_s25 + $0x50] sm:$0xf] %vm2360_vm0, %v2651_v47  ;;  %v2652_v15 = vpack.c.bf16 %v2221_v57, %v2221_v57 }
 0x20c   : > { %v2906_v20 = vpop.eup %2905  ;;  %v2108_v35 = vmul.f32 %v2904_v4, %v4249_v39  ;;  %2384 = vst.msk [vmem:[%s4198_s25 + $0x5c] sm:$0xf] %vm2360_vm0, %v2654_v58  ;;  %v2739_v4 = vld [vmem:[%s4185_s22 + $0x68] sm:$0xff]  }
 0x20d   : > { %v2908_v10 = vpop.eup %2907  ;;  %v2206_v23 = vadd.f32 %v2677_v34, %v2110_v31  ;;  %v2111_v62 = vmul.f32 %v2906_v20, %v4254_v2  ;;  %2382 = vst.msk [vmem:[%s4198_s25 + $0x54] sm:$0xf] %vm2360_vm0, %v2652_v15  ;;  %v2738_v15 = vld [vmem:[%s4185_s22 + $0x60] sm:$0xff]  }
 0x20e   : > { %v2204_v16 = vadd.f32 %v2673_v30, %v2108_v35  ;;  %v2109_v50 = vmul.f32 %v2908_v10, %v4258_v6 }
 0x20f   : > { %v2637_v19 = vpack.c.bf16 %v2206_v23, %v2206_v23  ;;  %v2207_v18 = vadd.f32 %v2678_v60, %v2111_v62  ;;  %v2713_v23 = vunpack.c.l.bf16 %v2738_v15 }
 0x210   : > { %v2635_v27 = vpack.c.bf16 %v2204_v16, %v2204_v16  ;;  %v2205_v36 = vadd.f32 %v2674_v48, %v2109_v50  ;;  %v2717_v48 = vunpack.c.l.bf16 %v2739_v4  ;;  %v2718_v50 = vunpack.c.h.bf16 %v2739_v4 }
 0x211   : > { %2367 = vst.msk [vmem:[%s4198_s25 + $0x18] sm:$0xf] %vm2360_vm0, %v2637_v19  ;;  %v2638_v39 = vpack.c.bf16 %v2207_v18, %v2207_v18 }
 0x212   : > { %2365 = vst.msk [vmem:[%s4198_s25 + $0x10] sm:$0xf] %vm2360_vm0, %v2635_v27  ;;  %v2636_v22 = vpack.c.bf16 %v2205_v36, %v2205_v36  ;;  %v2714_v27 = vunpack.c.h.bf16 %v2738_v15 }
 0x213   : > { %2368 = vst.msk [vmem:[%s4198_s25 + $0x1c] sm:$0xf] %vm2360_vm0, %v2638_v39  ;;  %v2731_v39 = vld [vmem:[%s4185_s22 + $0x28] sm:$0xff]  }
 0x214   : > { %2366 = vst.msk [vmem:[%s4198_s25 + $0x14] sm:$0xf] %vm2360_vm0, %v2636_v22 }
 0x225   : > { %v2793_v2 = vpop.f32.mrb[8].mxu1 }
 0x226   : > { %v1867_v24 = vmul.f32 %v2793_v2, %v4132_v1  ;;  %v1803_v43 = vpop.f32.mrb[9].mxu1 }
 0x227   : > { %v1865_v6 = vmul.f32 %v4132_v1, %v1803_v43  ;;  %v2794_v9 = vpop.f32.mrb[10].mxu1 }
 0x228   : > { %v4293_v3 = vadd.f32 %v4137_v53, %v1867_v24  ;;  %v1868_v56 = vmul.f32 %v2794_v9, %v4132_v1  ;;  %v1806_v33 = vpop.f32.mrb[11].mxu1  ;;  %v2730_v24 = vld [vmem:[%s4185_s22 + $0x20] sm:$0xff]  }
 0x229   : > { %v4297_v13 = vadd.f32 %v4137_v53, %v1865_v6  ;;  %v1866_v38 = vmul.f32 %v4132_v1, %v1806_v33 }
 0x22a   : > { %v2589_v7 = vmul.f32 -1.442695, %v4293_v3  ;;  %v4302_v44 = vadd.f32 %v4137_v53, %v1868_v56 }
 0x22b   : > { %v2587_v29 = vmul.f32 -1.442695, %v4297_v13  ;;  %v4306_v0 = vadd.f32 %v4137_v53, %v1866_v38 }
 0x22c   : > { %v2777_v41 = vpop.f32.mrb[8].mxu0  ;;  %2909 = vpow2.f32 %v2589_v7  ;;  %v2590_v21 = vmul.f32 -1.442695, %v4302_v44 }
 0x22d   : > { %v1851_v8 = vmul.f32 %v2777_v41, %v4132_v1  ;;  %v1739_v37 = vpop.f32.mrb[9].mxu0  ;;  %2911 = vpow2.f32 %v2587_v29  ;;  %v2588_v32 = vmul.f32 -1.442695, %v4306_v0 }
 0x22e   : > { %v1849_v28 = vmul.f32 %v4132_v1, %v1739_v37  ;;  %v2778_v17 = vpop.f32.mrb[10].mxu0  ;;  %2913 = vpow2.f32 %v2590_v21 }
 0x22f   : > { %v4313_v63 = vadd.f32 %v4137_v53, %v1851_v8  ;;  %v1852_v59 = vmul.f32 %v2778_v17, %v4132_v1  ;;  %v1742_v51 = vpop.f32.mrb[11].mxu0  ;;  %2915 = vpow2.f32 %v2588_v32  ;;  %v2682_v32 = vunpack.c.h.bf16 %v2730_v24 }
 0x230   : > { %v4317_v45 = vadd.f32 %v4137_v53, %v1849_v28  ;;  %v1850_v61 = vmul.f32 %v4132_v1, %v1742_v51 }
 0x231   : > { %v2573_v5 = vmul.f32 -1.442695, %v4313_v63  ;;  %v4322_v25 = vadd.f32 %v4137_v53, %v1852_v59 }
 0x232   : > { %v2571_v46 = vmul.f32 -1.442695, %v4317_v45  ;;  %v4326_v14 = vadd.f32 %v4137_v53, %v1850_v61 }
 0x233   : > { %2917 = vpow2.f32 %v2573_v5  ;;  %v2574_v12 = vmul.f32 -1.442695, %v4322_v25 }
 0x234   : > { %2919 = vpow2.f32 %v2571_v46  ;;  %v2572_v54 = vmul.f32 -1.442695, %v4326_v14 }
 0x235   : > { %2921 = vpow2.f32 %v2574_v12 }
 0x236   : > { %v2910_v52 = vpop.eup %2909  ;;  %2923 = vpow2.f32 %v2572_v54 }
 0x237   : > { %v2912_v40 = vpop.eup %2911  ;;  %v2034_v42 = vadd.f32 1.0, %v2910_v52 }
 0x238   : > { %v2914_v55 = vpop.eup %2913  ;;  %v2032_v26 = vadd.f32 1.0, %v2912_v40 }
 0x239   : > { %v2916_v49 = vpop.eup %2915  ;;  %2925 = vrcp.f32 %v2034_v42  ;;  %v2035_v34 = vadd.f32 1.0, %v2914_v55 }
 0x23a   : > { %2927 = vrcp.f32 %v2032_v26  ;;  %v2033_v47 = vadd.f32 1.0, %v2916_v49 }
 0x23b   : > { %2929 = vrcp.f32 %v2035_v34 }
 0x23c   : > { %2931 = vrcp.f32 %v2033_v47 }
 0x23d   : > { %v2918_v57 = vpop.eup %2917 }
 0x23e   : > { %v2920_v11 = vpop.eup %2919  ;;  %v2018_v30 = vadd.f32 1.0, %v2918_v57 }
 0x23f   : > { %v2922_v58 = vpop.eup %2921  ;;  %v2016_v31 = vadd.f32 1.0, %v2920_v11 }
 0x240   : > { %v2924_v60 = vpop.eup %2923  ;;  %2933 = vrcp.f32 %v2018_v30  ;;  %v2019_v20 = vadd.f32 1.0, %v2922_v58 }
 0x241   : > { %2935 = vrcp.f32 %v2016_v31  ;;  %v2017_v35 = vadd.f32 1.0, %v2924_v60 }
 0x242   : > { %2937 = vrcp.f32 %v2019_v20 }
 0x243   : > { %v2926_v10 = vpop.eup %2925  ;;  %2939 = vrcp.f32 %v2017_v35 }
 0x244   : > { %v2928_v62 = vpop.eup %2927  ;;  %v2130_v16 = vmul.f32 %v2926_v10, %v4293_v3  ;;  %v2685_v3 = vunpack.c.l.bf16 %v2731_v39 }
 0x245   : > { %v2930_v19 = vpop.eup %2929  ;;  %v2128_v18 = vmul.f32 %v2928_v62, %v4297_v13  ;;  %v2681_v13 = vunpack.c.l.bf16 %v2730_v24 }
 0x246   : > { %v2932_v36 = vpop.eup %2931  ;;  %v2226_v22 = vadd.f32 %v2717_v48, %v2130_v16  ;;  %v2131_v2 = vmul.f32 %v2930_v19, %v4302_v44  ;;  %v2686_v44 = vunpack.c.h.bf16 %v2731_v39 }
 0x247   : > { %v2224_v43 = vadd.f32 %v2713_v23, %v2128_v18  ;;  %v2129_v6 = vmul.f32 %v2932_v36, %v4306_v0 }
 0x248   : > { %v2657_v9 = vpack.c.bf16 %v2226_v22, %v2226_v22  ;;  %v2227_v56 = vadd.f32 %v2718_v50, %v2131_v2 }
 0x249   : > { %v2655_v33 = vpack.c.bf16 %v2224_v43, %v2224_v43  ;;  %v2225_v38 = vadd.f32 %v2714_v27, %v2129_v6 }
 0x24a   : > { %v2934_v7 = vpop.eup %2933  ;;  %2387 = vst.msk [vmem:[%s4198_s25 + $0x68] sm:$0xf] %vm2360_vm0, %v2657_v9  ;;  %v2658_v29 = vpack.c.bf16 %v2227_v56, %v2227_v56 }
 0x24b   : > { %v2936_v41 = vpop.eup %2935  ;;  %v2114_v21 = vmul.f32 %v2934_v7, %v4313_v63  ;;  %2385 = vst.msk [vmem:[%s4198_s25 + $0x60] sm:$0xf] %vm2360_vm0, %v2655_v33  ;;  %v2656_v0 = vpack.c.bf16 %v2225_v38, %v2225_v38 }
 0x24c   : > { %v2938_v8 = vpop.eup %2937  ;;  %v2112_v37 = vmul.f32 %v2936_v41, %v4317_v45  ;;  %2388 = vst.msk [vmem:[%s4198_s25 + $0x6c] sm:$0xf] %vm2360_vm0, %v2658_v29 }
 0x24d   : > { %v2940_v28 = vpop.eup %2939  ;;  %v2210_v17 = vadd.f32 %v2685_v3, %v2114_v21  ;;  %v2115_v59 = vmul.f32 %v2938_v8, %v4322_v25  ;;  %2386 = vst.msk [vmem:[%s4198_s25 + $0x64] sm:$0xf] %vm2360_vm0, %v2656_v0  ;;  %v2740_v21 = vld [vmem:[%s4185_s22 + $0x70] sm:$0xff]  }
 0x24e   : > { %v2208_v63 = vadd.f32 %v2681_v13, %v2112_v37  ;;  %v2113_v51 = vmul.f32 %v2940_v28, %v4326_v14  ;;  %v2741_v13 = vld [vmem:[%s4185_s22 + $0x78] sm:$0xff]  }
 0x24f   : > { %v2641_v61 = vpack.c.bf16 %v2210_v17, %v2210_v17  ;;  %v2211_v5 = vadd.f32 %v2686_v44, %v2115_v59  ;;  %v2725_v8 = vunpack.c.l.bf16 %v2741_v13  ;;  %v2726_v59 = vunpack.c.h.bf16 %v2741_v13 }
 0x250   : > { %v2639_v46 = vpack.c.bf16 %v2208_v63, %v2208_v63  ;;  %v2209_v12 = vadd.f32 %v2682_v32, %v2113_v51  ;;  %v2721_v32 = vunpack.c.l.bf16 %v2740_v21 }
 0x251   : > { %2371 = vst.msk [vmem:[%s4198_s25 + $0x28] sm:$0xf] %vm2360_vm0, %v2641_v61  ;;  %v2642_v45 = vpack.c.bf16 %v2211_v5, %v2211_v5  ;;  %v2722_v61 = vunpack.c.h.bf16 %v2740_v21 }
 0x252   : > { %2369 = vst.msk [vmem:[%s4198_s25 + $0x20] sm:$0xf] %vm2360_vm0, %v2639_v46  ;;  %v2640_v54 = vpack.c.bf16 %v2209_v12, %v2209_v12  ;;  %v2733_v46 = vld [vmem:[%s4185_s22 + $0x38] sm:$0xff]  }
 0x253   : > { %2372 = vst.msk [vmem:[%s4198_s25 + $0x2c] sm:$0xf] %vm2360_vm0, %v2642_v45 }
 0x254   : > { %2370 = vst.msk [vmem:[%s4198_s25 + $0x24] sm:$0xf] %vm2360_vm0, %v2640_v54  ;;  %v2732_v54 = vld [vmem:[%s4185_s22 + $0x30] sm:$0xff]  }
 0x261   : > { %v2797_v25 = vpop.f32.mrb[12].mxu1 }
 0x262   : > { %v1871_v52 = vmul.f32 %v2797_v25, %v4132_v1  ;;  %v1819_v40 = vpop.f32.mrb[13].mxu1 }
 0x263   : > { %v1869_v14 = vmul.f32 %v4132_v1, %v1819_v40  ;;  %v2798_v42 = vpop.f32.mrb[14].mxu1 }
 0x264   : > { %v4361_v55 = vadd.f32 %v4137_v53, %v1871_v52  ;;  %v1872_v26 = vmul.f32 %v2798_v42, %v4132_v1  ;;  %v1822_v49 = vpop.f32.mrb[15].mxu1  ;;  %v2693_v42 = vunpack.c.l.bf16 %v2733_v46 }
 0x265   : > { %v4365_v34 = vadd.f32 %v4137_v53, %v1869_v14  ;;  %v1870_v47 = vmul.f32 %v4132_v1, %v1822_v49 }
 0x266   : > { %v2593_v57 = vmul.f32 -1.442695, %v4361_v55  ;;  %v4370_v11 = vadd.f32 %v4137_v53, %v1872_v26 }
 0x267   : > { %v2591_v30 = vmul.f32 -1.442695, %v4365_v34  ;;  %v4374_v58 = vadd.f32 %v4137_v53, %v1870_v47 }
 0x268   : > { %v2781_v4 = vpop.f32.mrb[12].mxu0  ;;  %2941 = vpow2.f32 %v2593_v57  ;;  %v2594_v31 = vmul.f32 -1.442695, %v4370_v11 }
 0x269   : > { %v1855_v60 = vmul.f32 %v2781_v4, %v4132_v1  ;;  %v1755_v15 = vpop.f32.mrb[13].mxu0  ;;  %2943 = vpow2.f32 %v2591_v30  ;;  %v2592_v20 = vmul.f32 -1.442695, %v4374_v58 }
 0x26a   : > { %v1853_v35 = vmul.f32 %v4132_v1, %v1755_v15  ;;  %v2782_v48 = vpop.f32.mrb[14].mxu0  ;;  %2945 = vpow2.f32 %v2594_v31 }
 0x26b   : > { %v4381_v10 = vadd.f32 %v4137_v53, %v1855_v60  ;;  %v1856_v23 = vmul.f32 %v2782_v48, %v4132_v1  ;;  %v1758_v62 = vpop.f32.mrb[15].mxu0  ;;  %2947 = vpow2.f32 %v2592_v20  ;;  %v2690_v60 = vunpack.c.h.bf16 %v2732_v54 }
 0x26c   : > { %v4385_v16 = vadd.f32 %v4137_v53, %v1853_v35  ;;  %v1854_v50 = vmul.f32 %v4132_v1, %v1758_v62 }
 0x26d   : > { %v2577_v19 = vmul.f32 -1.442695, %v4381_v10  ;;  %v4390_v18 = vadd.f32 %v4137_v53, %v1856_v23 }
 0x26e   : > { %v2575_v27 = vmul.f32 -1.442695, %v4385_v16  ;;  %v4394_v36 = vadd.f32 %v4137_v53, %v1854_v50 }
 0x26f   : > { %2949 = vpow2.f32 %v2577_v19  ;;  %v2578_v39 = vmul.f32 -1.442695, %v4390_v18 }
 0x270   : > { %2951 = vpow2.f32 %v2575_v27  ;;  %v2576_v22 = vmul.f32 -1.442695, %v4394_v36 }
 0x271   : > { %2953 = vpow2.f32 %v2578_v39 }
 0x272   : > { %v2942_v2 = vpop.eup %2941  ;;  %2955 = vpow2.f32 %v2576_v22 }
 0x273   : > { %v2944_v1 = vpop.eup %2943  ;;  %v2038_v24 = vadd.f32 1.0, %v2942_v2 }
 0x274   : > { %v2946_v43 = vpop.eup %2945  ;;  %v2036_v6 = vadd.f32 1.0, %v2944_v1 }
 0x275   : > { %v2948_v9 = vpop.eup %2947  ;;  %2957 = vrcp.f32 %v2038_v24  ;;  %v2039_v56 = vadd.f32 1.0, %v2946_v43 }
 0x276   : > { %2959 = vrcp.f32 %v2036_v6  ;;  %v2037_v53 = vadd.f32 1.0, %v2948_v9 }
 0x277   : > { %2961 = vrcp.f32 %v2039_v56 }
 0x278   : > { %2963 = vrcp.f32 %v2037_v53 }
 0x279   : > { %v2950_v3 = vpop.eup %2949 }
 0x27a   : > { %v2952_v33 = vpop.eup %2951  ;;  %v2022_v38 = vadd.f32 1.0, %v2950_v3 }
 0x27b   : > { %v2954_v7 = vpop.eup %2953  ;;  %v2020_v29 = vadd.f32 1.0, %v2952_v33 }
 0x27c   : > { %v2956_v41 = vpop.eup %2955  ;;  %2965 = vrcp.f32 %v2022_v38  ;;  %v2023_v44 = vadd.f32 1.0, %v2954_v7 }
 0x27d   : > { %2967 = vrcp.f32 %v2020_v29  ;;  %v2021_v0 = vadd.f32 1.0, %v2956_v41 }
 0x27e   : > { %2969 = vrcp.f32 %v2023_v44 }
 0x27f   : > { %v2958_v37 = vpop.eup %2957  ;;  %2971 = vrcp.f32 %v2021_v0 }
 0x280   : > { %v2960_v28 = vpop.eup %2959  ;;  %v2134_v17 = vmul.f32 %v2958_v37, %v4361_v55 }
 0x281   : > { %v2962_v63 = vpop.eup %2961  ;;  %v2132_v51 = vmul.f32 %v2960_v28, %v4365_v34  ;;  %v2689_v34 = vunpack.c.l.bf16 %v2732_v54 }
 0x282   : > { %v2964_v5 = vpop.eup %2963  ;;  %v2230_v12 = vadd.f32 %v2725_v8, %v2134_v17  ;;  %v2135_v45 = vmul.f32 %v2962_v63, %v4370_v11  ;;  %v2694_v11 = vunpack.c.h.bf16 %v2733_v46 }
 0x283   : > { %v2228_v25 = vadd.f32 %v2721_v32, %v2132_v51  ;;  %v2133_v52 = vmul.f32 %v2964_v5, %v4374_v58 }
 0x284   : > { %v2661_v40 = vpack.c.bf16 %v2230_v12, %v2230_v12  ;;  %v2231_v14 = vadd.f32 %v2726_v59, %v2135_v45 }
 0x285   : > { %v2659_v55 = vpack.c.bf16 %v2228_v25, %v2228_v25  ;;  %v2229_v26 = vadd.f32 %v2722_v61, %v2133_v52 }
 0x286   : > { %v2966_v49 = vpop.eup %2965  ;;  %2391 = vst.msk [vmem:[%s4198_s25 + $0x78] sm:$0xf] %vm2360_vm0, %v2661_v40  ;;  %v2662_v47 = vpack.c.bf16 %v2231_v14, %v2231_v14 }
 0x287   : > { %v2968_v57 = vpop.eup %2967  ;;  %v2118_v30 = vmul.f32 %v2966_v49, %v4381_v10  ;;  %2389 = vst.msk [vmem:[%s4198_s25 + $0x70] sm:$0xf] %vm2360_vm0, %v2659_v55  ;;  %v2660_v58 = vpack.c.bf16 %v2229_v26, %v2229_v26 }
 0x288   : > { %v2970_v4 = vpop.eup %2969  ;;  %v2116_v31 = vmul.f32 %v2968_v57, %v4385_v16  ;;  %2392 = vst.msk [vmem:[%s4198_s25 + $0x7c] sm:$0xf] %vm2360_vm0, %v2662_v47 }
 0x289   : > { %v2972_v15 = vpop.eup %2971  ;;  %v2214_v20 = vadd.f32 %v2693_v42, %v2118_v30  ;;  %v2119_v35 = vmul.f32 %v2970_v4, %v4390_v18  ;;  %2390 = vst.msk [vmem:[%s4198_s25 + $0x74] sm:$0xf] %vm2360_vm0, %v2660_v58 }
 0x28a   : > { %v2212_v48 = vadd.f32 %v2689_v34, %v2116_v31  ;;  %v2117_v10 = vmul.f32 %v2972_v15, %v4394_v36 }
 0x28b   : > { %v2645_v23 = vpack.c.bf16 %v2214_v20, %v2214_v20  ;;  %v2215_v62 = vadd.f32 %v2694_v11, %v2119_v35 }
 0x28c   : > { %v2643_v50 = vpack.c.bf16 %v2212_v48, %v2212_v48  ;;  %v2213_v19 = vadd.f32 %v2690_v60, %v2117_v10 }
 0x28d   : > { %2375 = vst.msk [vmem:[%s4198_s25 + $0x38] sm:$0xf] %vm2360_vm0, %v2645_v23  ;;  %v2646_v16 = vpack.c.bf16 %v2215_v62, %v2215_v62 }
 0x28e   : > { %2373 = vst.msk [vmem:[%s4198_s25 + $0x30] sm:$0xf] %vm2360_vm0, %v2643_v50  ;;  %v2644_v27 = vpack.c.bf16 %v2213_v19, %v2213_v19 }
 0x28f   : > { %2376 = vst.msk [vmem:[%s4198_s25 + $0x3c] sm:$0xf] %vm2360_vm0, %v2646_v16 }
 0x290   : > { %2374 = vst.msk [vmem:[%s4198_s25 + $0x34] sm:$0xf] %vm2360_vm0, %v2644_v27 }
 0x291 PF: > { %s15_s18 = sadd.s32 1, %s2979_s18  }
 0x292   : > { %p12_p4 = scmp.ge.s32.totalorder %s15_s18, 4  }
 0x294   :  { %14 = sbr.rel (!%p12_p4) target bundleno = 1 (0x1), region = 73 }

</bundles_post_ra>
